<compile_context>
chip_gen: v5e
topology: v5e:2x2
jax: 0.10.0
libtpu: 0.0.40
codegen_flags: <defaults>
</compile_context>

<pallas_src>
import math

import jax
import jax.numpy as jnp
import numpy as np
from jax.experimental import pallas as pl
from jax.experimental.pallas import tpu as pltpu

# ----------------------- model hyperparameters (small) -----------------------
WORD_SIZE = 100
EMBED = 32          # embedding_num
CLASS_NUM = 4
NHEAD = 2           # must divide SEQ
FEED = 64           # feed_num
N_BLOCKS = 2
HIDD = 50           # fixed by the module (self.hidd = 50)
BATCH = 2
SEQ = 30            # forced by x.view(-1, 30 * self.hidd)
MAX_LEN = 3000
EPS = 1e-5

CHUNK = SEQ // NHEAD          # 15  per-head chunk length
ROWS = BATCH * SEQ            # 60  collapsed (batch, position) rows
WIDE = SEQ * CLASS_NUM        # 120 (position, class) pairs in the head
CPAD = 128                    # lane-dense padded class / wide dimension

# ----------------------- packed-slab row offsets ------------------------------
W32_QKV = 4 * EMBED                     # rows per block: [wq, wk, wv, nw]
W32_FFN2 = N_BLOCKS * W32_QKV           # 256: start of the ffn-W2 section
W32_ROWS = W32_FFN2 + N_BLOCKS * FEED   # 384
W64_BIAS = N_BLOCKS * EMBED             # 64: start of per-block bias groups
W64_ROWS = W64_BIAS + N_BLOCKS * 8      # 80
HM_S1 = 0        # rows 0:2     segment-sum matrix S1         (lanes 0:ROWS)
HM_W1W = 8       # rows 8:40    wide head weight (E, WIDE)    (lanes 0:WIDE)
HM_MSEL = 40     # rows 40:100  row/position selection mask   (lanes 0:WIDE)
HM_BIAS = 104    # rows 104:164 attention block-diagonal bias (lanes 0:ROWS)
HM_ROWS = 168
RB_BEFF = CPAD   # row 128      folded head bias
RB_ROWS = 136


# --------------------------- single fused Pallas kernel ----------------------
def _fused_forward_kernel(x_ref, w32_ref, w64_ref, hm_ref, rb_ref, o_ref):
    # One invocation handles the whole batch; everything stays in VMEM/vregs.
    f32 = jnp.float32
    scale = 1.0 / math.sqrt(EMBED)               # torch divides by sqrt(E)

    x = x_ref[...]                                               # (ROWS, E)
    attn_bias = hm_ref[HM_BIAS:HM_BIAS + ROWS, 0:ROWS]           # (ROWS, ROWS)

    def layer_norm_proj(z, nw, nb, g, beta):
        # Norm module: LayerNorm(z @ W + b) * gamma + beta (used twice / block)
        h = jnp.dot(z, nw, preferred_element_type=f32) + nb
        mu = jnp.mean(h, axis=-1, keepdims=True)
        d = h - mu
        var = jnp.mean(d * d, axis=-1, keepdims=True)
        return d * jax.lax.rsqrt(var + EPS) * g + beta

    for blk in range(N_BLOCKS):                  # unrolled (N_BLOCKS = 2)
        base = blk * W32_QKV
        wq = w32_ref[base + 0 * EMBED: base + 1 * EMBED, :]
        wk = w32_ref[base + 1 * EMBED: base + 2 * EMBED, :]
        wv = w32_ref[base + 2 * EMBED: base + 3 * EMBED, :]
        nw = w32_ref[base + 3 * EMBED: base + 4 * EMBED, :]
        w2f = w32_ref[W32_FFN2 + blk * FEED: W32_FFN2 + (blk + 1) * FEED, :]
        w1f = w64_ref[blk * EMBED:(blk + 1) * EMBED, :]
        grp = w64_ref[W64_BIAS + blk * 8: W64_BIAS + blk * 8 + 8, :]   # (8,64)
        nb, lng = grp[0:1, :EMBED], grp[1:2, :EMBED]
        lnb, b2 = grp[2:3, :EMBED], grp[3:4, :EMBED]
        b1 = grp[4:5, :]

        # --- chunked "multi-head" self-attention over collapsed rows ---
        q = jnp.dot(x, wq, preferred_element_type=f32)           # (ROWS, E)
        k = jnp.dot(x, wk, preferred_element_type=f32)
        v = jnp.dot(x, wv, preferred_element_type=f32)
        s = jax.lax.dot_general(q, k, (((1,), (1,)), ((), ())),
                                preferred_element_type=f32) * scale + attn_bias
        s = s - jnp.max(s, axis=-1, keepdims=True)
        p = jnp.exp(s)
        p = p * pl.reciprocal(jnp.sum(p, axis=-1, keepdims=True), approx=True)
        att = jnp.dot(p, v, preferred_element_type=f32)          # (ROWS, E)

        # --- Norm + residual, feed-forward, Norm + residual ---
        n1 = layer_norm_proj(att, nw, nb, lng, lnb) + x
        h = jnp.maximum(jnp.dot(n1, w1f, preferred_element_type=f32) + b1, 0.0)
        ffn = jnp.dot(h, w2f, preferred_element_type=f32) + b2
        x = layer_norm_proj(ffn, nw, nb, lng, lnb) + n1

    # --- head: layer1 -> view(-1, 30*50) -> layer2, as three MXU matmuls ---
    w1wide = hm_ref[HM_W1W:HM_W1W + EMBED, :]        # (E, 128)   Weff[l,:,c]
    msel = hm_ref[HM_MSEL:HM_MSEL + ROWS, :]         # (ROWS, 128) keep l==r%SEQ
    s1 = hm_ref[HM_S1:HM_S1 + BATCH, 0:ROWS]         # (B, ROWS)  batch segment sum
    rsum = rb_ref[0:CPAD, :]                         # (128, 128) class gather
    beff = rb_ref[RB_BEFF:RB_BEFF + 1, :]            # (1, 128)   folded bias

    pos_cls = jnp.dot(x, w1wide, preferred_element_type=f32)              # (ROWS, 128)
    per_batch = jnp.dot(s1, pos_cls * msel, preferred_element_type=f32)   # (B, 128)
    logits = jnp.dot(per_batch, rsum, preferred_element_type=f32) + beff  # (B, 128)
    o_ref[...] = logits.astype(o_ref.dtype)          # one lane-dense store


# ------------------------------ full forward ---------------------------------
def transformer_forward(tokens, packed):
    # Embedding gather + positional add stay in XLA glue (fuse into one op);
    # the rest of the forward runs in a single, single-step pallas_call.
    x = jnp.take(packed["emb"], tokens, axis=0) + packed["pos"][:SEQ][None]
    x = x.reshape(ROWS, EMBED)                                   # (60, 32)

    out = pl.pallas_call(
        _fused_forward_kernel,
        out_shape=jax.ShapeDtypeStruct((BATCH, CPAD), jnp.float32),
        grid=(1,),
        in_specs=[
            pl.BlockSpec((ROWS, EMBED), lambda i: (0, 0)),       # activations
            pl.BlockSpec((W32_ROWS, EMBED), lambda i: (0, 0)),   # 32-lane weights
            pl.BlockSpec((W64_ROWS, FEED), lambda i: (0, 0)),    # 64-lane weights + biases
            pl.BlockSpec((HM_ROWS, CPAD), lambda i: (0, 0)),     # head consts + attn bias
            pl.BlockSpec((RB_ROWS, CPAD), lambda i: (0, 0)),     # class gather + head bias
        ],
        out_specs=pl.BlockSpec((BATCH, CPAD), lambda i: (0, 0)),
        compiler_params=pltpu.CompilerParams(dimension_semantics=("arbitrary",)),
    )(x, packed["w32"], packed["w64"], packed["hm"], packed["rb"])
    return out[:, :CLASS_NUM]


# ------------------------------ pure-JAX reference ---------------------------
def reference_forward(tokens, P):
    x = P["emb"][tokens]
    L = x.shape[1]
    x = x + P["pos"][:L][None]
    for blk in P["blocks"]:
        B, L, E = x.shape
        C = L // NHEAD
        xc = x.reshape(B, NHEAD, C, E)
        q = xc @ blk["wq"]
        k = xc @ blk["wk"]
        v = xc @ blk["wv"]
        s = jnp.einsum("bhqe,bhke->bhqk", q, k) / jnp.sqrt(jnp.float32(E))
        p = jax.nn.softmax(s, axis=-1)
        att = (p @ v).reshape(B, L, E)

        def norm(z):
            h = z @ blk["nw"] + blk["nb"]
            mu = h.mean(-1, keepdims=True)
            var = ((h - mu) ** 2).mean(-1, keepdims=True)
            return (h - mu) / jnp.sqrt(var + EPS) * blk["lng"] + blk["lnb"]

        n1 = norm(att) + x
        ffn = jnp.maximum(n1 @ blk["w1"] + blk["b1"], 0.0) @ blk["w2"] + blk["b2"]
        x = norm(ffn) + n1
    B, L, E = x.shape
    h = x @ P["l1_w"] + P["l1_b"]
    h = h.reshape(B, L * HIDD)
    return h @ P["l2_w"] + P["l2_b"]


# ------------------------------ parameter setup -------------------------------
def make_params(key):
    def dense(k, fan_in, fan_out):
        return (jax.random.normal(k, (fan_in, fan_out), jnp.float32)
                / jnp.sqrt(jnp.float32(fan_in)))

    keys = jax.random.split(key, 4 + N_BLOCKS)
    P = {}
    P["emb"] = jax.random.normal(keys[0], (WORD_SIZE, EMBED), jnp.float32)

    # positional table, torch semantics: t starts at 1
    t = jnp.arange(1, MAX_LEN + 1, dtype=jnp.float32)[:, None]
    wk = 1.0 / (10000.0 ** (jnp.arange(0, EMBED, 2, dtype=jnp.float32) / EMBED))
    angle = wk * t
    pos = jnp.zeros((MAX_LEN, EMBED), jnp.float32)
    pos = pos.at[:, ::2].set(jnp.sin(angle)).at[:, 1::2].set(jnp.cos(angle))
    P["pos"] = pos

    blocks = []
    for i in range(N_BLOCKS):
        bk = jax.random.split(keys[1 + i], 8)
        blocks.append(dict(
            wq=dense(bk[0], EMBED, EMBED),
            wk=dense(bk[1], EMBED, EMBED),
            wv=dense(bk[2], EMBED, EMBED),
            nw=dense(bk[3], EMBED, EMBED),
            nb=0.01 * jax.random.normal(bk[4], (1, EMBED), jnp.float32),
            lng=jnp.ones((1, EMBED), jnp.float32),
            lnb=jnp.zeros((1, EMBED), jnp.float32),
            w1=dense(bk[5], EMBED, FEED),
            b1=0.01 * jax.random.normal(bk[6], (1, FEED), jnp.float32),
            w2=dense(bk[7], FEED, EMBED),
            b2=jnp.zeros((1, EMBED), jnp.float32),
        ))
    P["blocks"] = blocks

    hk = jax.random.split(keys[1 + N_BLOCKS], 4)
    P["l1_w"] = dense(hk[0], EMBED, HIDD)
    P["l1_b"] = 0.01 * jax.random.normal(hk[1], (1, HIDD), jnp.float32)
    P["l2_w"] = dense(hk[2], SEQ * HIDD, CLASS_NUM)
    P["l2_b"] = 0.01 * jax.random.normal(hk[3], (1, CLASS_NUM), jnp.float32)
    return P


def pack_params(P):
    """Pack all weights/constants into 5 kernel inputs (done once, host-side)."""
    bs = P["blocks"]
    f32 = jnp.float32

    # --- w32: all (*,32)-lane weight matrices stacked on the leading axis ----
    rows = []
    for b in bs:
        rows += [b["wq"], b["wk"], b["wv"], b["nw"]]
    for b in bs:
        rows.append(b["w2"])
    w32 = jnp.concatenate(rows, axis=0).astype(f32)               # (384, 32)

    # --- w64: ffn W1 matrices + per-block bias groups (8 rows each) ----------
    def pad_lanes(v, lanes):
        return jnp.pad(v, ((0, 0), (0, lanes - v.shape[1])))
    rows = [b["w1"] for b in bs]
    for b in bs:
        rows.append(jnp.concatenate(
            [pad_lanes(b["nb"], FEED), pad_lanes(b["lng"], FEED),
             pad_lanes(b["lnb"], FEED), pad_lanes(b["b2"], FEED),
             b["b1"], jnp.zeros((3, FEED), f32)], axis=0))        # (8, 64)
    w64 = jnp.concatenate(rows, axis=0).astype(f32)               # (80, 64)

    # --- head: fold layer1 into layer2 (linear ∘ linear) -> wide weight ------
    w2_lhc = P["l2_w"].reshape(SEQ, HIDD, CLASS_NUM)              # (L, H, C)
    w1wide = jnp.einsum("eh,lhc->elc", P["l1_w"], w2_lhc).reshape(EMBED, WIDE)
    beff = jnp.einsum("h,lhc->c", P["l1_b"][0], w2_lhc) + P["l2_b"][0]

    j = np.arange(WIDE)
    r = np.arange(ROWS)
    s1 = (r[None, :] // SEQ == np.arange(BATCH)[:, None]).astype(np.float32)
    msel = ((j[None, :] // CLASS_NUM) == (r[:, None] % SEQ)).astype(np.float32)
    chunk_id = r // CHUNK     # (batch, head)-chunk id of each collapsed row
    attn_bias = np.where(chunk_id[:, None] == chunk_id[None, :],
                         0.0, -1e30).astype(np.float32)
    rsum = ((j[:, None] % CLASS_NUM) ==
            np.arange(CLASS_NUM)[None, :]).astype(np.float32)

    hm = jnp.zeros((HM_ROWS, CPAD), f32)
    hm = hm.at[HM_S1:HM_S1 + BATCH, 0:ROWS].set(jnp.asarray(s1))
    hm = hm.at[HM_W1W:HM_W1W + EMBED, 0:WIDE].set(w1wide)
    hm = hm.at[HM_MSEL:HM_MSEL + ROWS, 0:WIDE].set(jnp.asarray(msel))
    hm = hm.at[HM_BIAS:HM_BIAS + ROWS, 0:ROWS].set(jnp.asarray(attn_bias))

    rb = jnp.zeros((RB_ROWS, CPAD), f32)
    rb = rb.at[0:WIDE, 0:CLASS_NUM].set(jnp.asarray(rsum))
    rb = rb.at[RB_BEFF, 0:CLASS_NUM].set(beff)

    return dict(emb=P["emb"], pos=P["pos"], w32=w32, w64=w64, hm=hm, rb=rb)


# ----------------------------------- main -------------------------------------
if __name__ == "__main__":
    key = jax.random.PRNGKey(0)
    k_param, k_tok = jax.random.split(key)
    params = make_params(k_param)
    packed = pack_params(params)
    tokens = jax.random.randint(k_tok, (BATCH, SEQ), 0, WORD_SIZE, dtype=jnp.int32)

    fwd = jax.jit(transformer_forward)
    logits = jax.block_until_ready(fwd(tokens, packed))

    ref = jax.block_until_ready(reference_forward(tokens, params))
    assert logits.shape == (BATCH, CLASS_NUM), logits.shape
    np.testing.assert_allclose(np.asarray(logits), np.asarray(ref),
                               rtol=5e-2, atol=5e-2)
    print("KERNEL_OK")
</pallas_src>

<mosaic_0001>
module attributes {stable_mosaic.version = 11 : i64} {
  func.func @_fused_forward_kernel(%arg0: i32, %arg1: memref<60x32xf32, #tpu.memory_space<vmem>>, %arg2: memref<384x32xf32, #tpu.memory_space<vmem>>, %arg3: memref<80x64xf32, #tpu.memory_space<vmem>>, %arg4: memref<168x128xf32, #tpu.memory_space<vmem>>, %arg5: memref<136x128xf32, #tpu.memory_space<vmem>>, %arg6: memref<2x128xf32, #tpu.memory_space<vmem>>) attributes {dimension_semantics = [#tpu.dimension_semantics<arbitrary>], iteration_bounds = array<i64: 1>, scalar_prefetch = 0 : i64, scratch_operands = 0 : i64, tpu.core_type = #tpu.core_type<tc>, window_params = [{pipeline_mode = #tpu.pipeline_mode<synchronous>, transform_indices = @transform_0, window_bounds = array<i64: 60, 32>}, {pipeline_mode = #tpu.pipeline_mode<synchronous>, transform_indices = @transform_1, window_bounds = array<i64: 384, 32>}, {pipeline_mode = #tpu.pipeline_mode<synchronous>, transform_indices = @transform_2, window_bounds = array<i64: 80, 64>}, {pipeline_mode = #tpu.pipeline_mode<synchronous>, transform_indices = @transform_3, window_bounds = array<i64: 168, 128>}, {pipeline_mode = #tpu.pipeline_mode<synchronous>, transform_indices = @transform_4, window_bounds = array<i64: 136, 128>}, {pipeline_mode = #tpu.pipeline_mode<synchronous>, transform_indices = @transform_5, window_bounds = array<i64: 2, 128>}]} {
    %c0 = arith.constant 0 : index
    %c0_0 = arith.constant 0 : index
    %0 = vector.load %arg1[%c0, %c0_0] : memref<60x32xf32, #tpu.memory_space<vmem>>, vector<60x32xf32>
    %c104 = arith.constant 104 : index
    %c0_1 = arith.constant 0 : index
    %1 = vector.load %arg4[%c104, %c0_1] : memref<168x128xf32, #tpu.memory_space<vmem>>, vector<60x60xf32>
    %c0_2 = arith.constant 0 : index
    %c0_3 = arith.constant 0 : index
    %2 = vector.load %arg2[%c0_2, %c0_3] : memref<384x32xf32, #tpu.memory_space<vmem>>, vector<32x32xf32>
    %c32 = arith.constant 32 : index
    %c0_4 = arith.constant 0 : index
    %3 = vector.load %arg2[%c32, %c0_4] : memref<384x32xf32, #tpu.memory_space<vmem>>, vector<32x32xf32>
    %c64 = arith.constant 64 : index
    %c0_5 = arith.constant 0 : index
    %4 = vector.load %arg2[%c64, %c0_5] : memref<384x32xf32, #tpu.memory_space<vmem>>, vector<32x32xf32>
    %c96 = arith.constant 96 : index
    %c0_6 = arith.constant 0 : index
    %5 = vector.load %arg2[%c96, %c0_6] : memref<384x32xf32, #tpu.memory_space<vmem>>, vector<32x32xf32>
    %c256 = arith.constant 256 : index
    %c0_7 = arith.constant 0 : index
    %6 = vector.load %arg2[%c256, %c0_7] : memref<384x32xf32, #tpu.memory_space<vmem>>, vector<64x32xf32>
    %c0_8 = arith.constant 0 : index
    %c0_9 = arith.constant 0 : index
    %7 = vector.load %arg3[%c0_8, %c0_9] : memref<80x64xf32, #tpu.memory_space<vmem>>, vector<32x64xf32>
    %c64_10 = arith.constant 64 : index
    %c0_11 = arith.constant 0 : index
    %8 = vector.load %arg3[%c64_10, %c0_11] : memref<80x64xf32, #tpu.memory_space<vmem>>, vector<8x64xf32>
    %9 = vector.extract_strided_slice %8 {offsets = [0, 0], sizes = [1, 32], strides = [1, 1]} : vector<8x64xf32> to vector<1x32xf32>
    %10 = vector.extract_strided_slice %8 {offsets = [1, 0], sizes = [1, 32], strides = [1, 1]} : vector<8x64xf32> to vector<1x32xf32>
    %11 = vector.extract_strided_slice %8 {offsets = [2, 0], sizes = [1, 32], strides = [1, 1]} : vector<8x64xf32> to vector<1x32xf32>
    %12 = vector.extract_strided_slice %8 {offsets = [3, 0], sizes = [1, 32], strides = [1, 1]} : vector<8x64xf32> to vector<1x32xf32>
    %13 = vector.extract_strided_slice %8 {offsets = [4, 0], sizes = [1, 64], strides = [1, 1]} : vector<8x64xf32> to vector<1x64xf32>
    %cst = arith.constant dense<0.000000e+00> : vector<60x32xf32>
    %14 = tpu.matmul %0, %2, %cst {dimension_numbers = #tpu.dot_dimension_numbers<[1], [0], [0], [1], [0, 0, 1, 1], [], []>} : vector<60x32xf32>, vector<32x32xf32>, vector<60x32xf32> -> vector<60x32xf32>
    %cst_12 = arith.constant dense<0.000000e+00> : vector<60x32xf32>
    %15 = tpu.matmul %0, %3, %cst_12 {dimension_numbers = #tpu.dot_dimension_numbers<[1], [0], [0], [1], [0, 0, 1, 1], [], []>} : vector<60x32xf32>, vector<32x32xf32>, vector<60x32xf32> -> vector<60x32xf32>
    %cst_13 = arith.constant dense<0.000000e+00> : vector<60x32xf32>
    %16 = tpu.matmul %0, %4, %cst_13 {dimension_numbers = #tpu.dot_dimension_numbers<[1], [0], [0], [1], [0, 0, 1, 1], [], []>} : vector<60x32xf32>, vector<32x32xf32>, vector<60x32xf32> -> vector<60x32xf32>
    %cst_14 = arith.constant dense<0.000000e+00> : vector<60x60xf32>
    %17 = tpu.matmul %14, %15, %cst_14 {dimension_numbers = #tpu.dot_dimension_numbers<[1], [1], [0], [0], [0, 0, 1, 0], [], []>} : vector<60x32xf32>, vector<60x32xf32>, vector<60x60xf32> -> vector<60x60xf32>
    %cst_15 = arith.constant 0.176776692 : f32
    %18 = vector.broadcast %cst_15 : f32 to vector<60x60xf32>
    %19 = arith.mulf %17, %18 : vector<60x60xf32>
    %20 = arith.addf %19, %1 : vector<60x60xf32>
    %cst_16 = arith.constant dense<0xFF800000> : vector<60xf32>
    %21 = vector.multi_reduction <maximumf>, %20, %cst_16 [1] : vector<60x60xf32> to vector<60xf32>
    %22 = vector.shape_cast %21 : vector<60xf32> to vector<60x1xf32>
    %23 = vector.broadcast %22 : vector<60x1xf32> to vector<60x60xf32>
    %24 = arith.subf %20, %23 : vector<60x60xf32>
    %25 = math.exp %24 : vector<60x60xf32>
    %cst_17 = arith.constant dense<0.000000e+00> : vector<60xf32>
    %26 = vector.multi_reduction <add>, %25, %cst_17 [1] : vector<60x60xf32> to vector<60xf32>
    %27 = vector.shape_cast %26 : vector<60xf32> to vector<60x1xf32>
    %28 = tpu.reciprocal %27 {approx = true} : vector<60x1xf32> -> vector<60x1xf32>
    %29 = vector.broadcast %28 : vector<60x1xf32> to vector<60x60xf32>
    %30 = arith.mulf %25, %29 : vector<60x60xf32>
    %cst_18 = arith.constant dense<0.000000e+00> : vector<60x32xf32>
    %31 = tpu.matmul %30, %16, %cst_18 {dimension_numbers = #tpu.dot_dimension_numbers<[1], [0], [0], [1], [0, 0, 1, 1], [], []>} : vector<60x60xf32>, vector<60x32xf32>, vector<60x32xf32> -> vector<60x32xf32>
    %cst_19 = arith.constant dense<0.000000e+00> : vector<60x32xf32>
    %32 = tpu.matmul %31, %5, %cst_19 {dimension_numbers = #tpu.dot_dimension_numbers<[1], [0], [0], [1], [0, 0, 1, 1], [], []>} : vector<60x32xf32>, vector<32x32xf32>, vector<60x32xf32> -> vector<60x32xf32>
    %33 = vector.broadcast %9 : vector<1x32xf32> to vector<60x32xf32>
    %34 = arith.addf %32, %33 : vector<60x32xf32>
    %cst_20 = arith.constant dense<0.000000e+00> : vector<60xf32>
    %35 = vector.multi_reduction <add>, %34, %cst_20 [1] : vector<60x32xf32> to vector<60xf32>
    %36 = vector.shape_cast %35 : vector<60xf32> to vector<60x1xf32>
    %cst_21 = arith.constant 3.200000e+01 : f32
    %37 = vector.broadcast %cst_21 : f32 to vector<60x1xf32>
    %38 = arith.divf %36, %37 : vector<60x1xf32>
    %39 = vector.broadcast %38 : vector<60x1xf32> to vector<60x32xf32>
    %40 = arith.subf %34, %39 : vector<60x32xf32>
    %41 = arith.mulf %40, %40 : vector<60x32xf32>
    %cst_22 = arith.constant dense<0.000000e+00> : vector<60xf32>
    %42 = vector.multi_reduction <add>, %41, %cst_22 [1] : vector<60x32xf32> to vector<60xf32>
    %43 = vector.shape_cast %42 : vector<60xf32> to vector<60x1xf32>
    %cst_23 = arith.constant 3.200000e+01 : f32
    %44 = vector.broadcast %cst_23 : f32 to vector<60x1xf32>
    %45 = arith.divf %43, %44 : vector<60x1xf32>
    %cst_24 = arith.constant 9.99999974E-6 : f32
    %46 = vector.broadcast %cst_24 : f32 to vector<60x1xf32>
    %47 = arith.addf %45, %46 : vector<60x1xf32>
    %48 = math.rsqrt %47 : vector<60x1xf32>
    %49 = vector.broadcast %48 : vector<60x1xf32> to vector<60x32xf32>
    %50 = arith.mulf %40, %49 : vector<60x32xf32>
    %51 = vector.broadcast %10 : vector<1x32xf32> to vector<60x32xf32>
    %52 = arith.mulf %50, %51 : vector<60x32xf32>
    %53 = vector.broadcast %11 : vector<1x32xf32> to vector<60x32xf32>
    %54 = arith.addf %52, %53 : vector<60x32xf32>
    %55 = arith.addf %54, %0 : vector<60x32xf32>
    %cst_25 = arith.constant dense<0.000000e+00> : vector<60x64xf32>
    %56 = tpu.matmul %55, %7, %cst_25 {dimension_numbers = #tpu.dot_dimension_numbers<[1], [0], [0], [1], [0, 0, 1, 1], [], []>} : vector<60x32xf32>, vector<32x64xf32>, vector<60x64xf32> -> vector<60x64xf32>
    %57 = vector.broadcast %13 : vector<1x64xf32> to vector<60x64xf32>
    %58 = arith.addf %56, %57 : vector<60x64xf32>
    %cst_26 = arith.constant 0.000000e+00 : f32
    %59 = vector.broadcast %cst_26 : f32 to vector<60x64xf32>
    %60 = arith.maximumf %58, %59 : vector<60x64xf32>
    %cst_27 = arith.constant dense<0.000000e+00> : vector<60x32xf32>
    %61 = tpu.matmul %60, %6, %cst_27 {dimension_numbers = #tpu.dot_dimension_numbers<[1], [0], [0], [1], [0, 0, 1, 1], [], []>} : vector<60x64xf32>, vector<64x32xf32>, vector<60x32xf32> -> vector<60x32xf32>
    %62 = vector.broadcast %12 : vector<1x32xf32> to vector<60x32xf32>
    %63 = arith.addf %61, %62 : vector<60x32xf32>
    %cst_28 = arith.constant dense<0.000000e+00> : vector<60x32xf32>
    %64 = tpu.matmul %63, %5, %cst_28 {dimension_numbers = #tpu.dot_dimension_numbers<[1], [0], [0], [1], [0, 0, 1, 1], [], []>} : vector<60x32xf32>, vector<32x32xf32>, vector<60x32xf32> -> vector<60x32xf32>
    %65 = vector.broadcast %9 : vector<1x32xf32> to vector<60x32xf32>
    %66 = arith.addf %64, %65 : vector<60x32xf32>
    %cst_29 = arith.constant dense<0.000000e+00> : vector<60xf32>
    %67 = vector.multi_reduction <add>, %66, %cst_29 [1] : vector<60x32xf32> to vector<60xf32>
    %68 = vector.shape_cast %67 : vector<60xf32> to vector<60x1xf32>
    %cst_30 = arith.constant 3.200000e+01 : f32
    %69 = vector.broadcast %cst_30 : f32 to vector<60x1xf32>
    %70 = arith.divf %68, %69 : vector<60x1xf32>
    %71 = vector.broadcast %70 : vector<60x1xf32> to vector<60x32xf32>
    %72 = arith.subf %66, %71 : vector<60x32xf32>
    %73 = arith.mulf %72, %72 : vector<60x32xf32>
    %cst_31 = arith.constant dense<0.000000e+00> : vector<60xf32>
    %74 = vector.multi_reduction <add>, %73, %cst_31 [1] : vector<60x32xf32> to vector<60xf32>
    %75 = vector.shape_cast %74 : vector<60xf32> to vector<60x1xf32>
    %cst_32 = arith.constant 3.200000e+01 : f32
    %76 = vector.broadcast %cst_32 : f32 to vector<60x1xf32>
    %77 = arith.divf %75, %76 : vector<60x1xf32>
    %cst_33 = arith.constant 9.99999974E-6 : f32
    %78 = vector.broadcast %cst_33 : f32 to vector<60x1xf32>
    %79 = arith.addf %77, %78 : vector<60x1xf32>
    %80 = math.rsqrt %79 : vector<60x1xf32>
    %81 = vector.broadcast %80 : vector<60x1xf32> to vector<60x32xf32>
    %82 = arith.mulf %72, %81 : vector<60x32xf32>
    %83 = vector.broadcast %10 : vector<1x32xf32> to vector<60x32xf32>
    %84 = arith.mulf %82, %83 : vector<60x32xf32>
    %85 = vector.broadcast %11 : vector<1x32xf32> to vector<60x32xf32>
    %86 = arith.addf %84, %85 : vector<60x32xf32>
    %87 = arith.addf %86, %55 : vector<60x32xf32>
    %c128 = arith.constant 128 : index
    %c0_34 = arith.constant 0 : index
    %88 = vector.load %arg2[%c128, %c0_34] : memref<384x32xf32, #tpu.memory_space<vmem>>, vector<32x32xf32>
    %c160 = arith.constant 160 : index
    %c0_35 = arith.constant 0 : index
    %89 = vector.load %arg2[%c160, %c0_35] : memref<384x32xf32, #tpu.memory_space<vmem>>, vector<32x32xf32>
    %c192 = arith.constant 192 : index
    %c0_36 = arith.constant 0 : index
    %90 = vector.load %arg2[%c192, %c0_36] : memref<384x32xf32, #tpu.memory_space<vmem>>, vector<32x32xf32>
    %c224 = arith.constant 224 : index
    %c0_37 = arith.constant 0 : index
    %91 = vector.load %arg2[%c224, %c0_37] : memref<384x32xf32, #tpu.memory_space<vmem>>, vector<32x32xf32>
    %c320 = arith.constant 320 : index
    %c0_38 = arith.constant 0 : index
    %92 = vector.load %arg2[%c320, %c0_38] : memref<384x32xf32, #tpu.memory_space<vmem>>, vector<64x32xf32>
    %c32_39 = arith.constant 32 : index
    %c0_40 = arith.constant 0 : index
    %93 = vector.load %arg3[%c32_39, %c0_40] : memref<80x64xf32, #tpu.memory_space<vmem>>, vector<32x64xf32>
    %c72 = arith.constant 72 : index
    %c0_41 = arith.constant 0 : index
    %94 = vector.load %arg3[%c72, %c0_41] : memref<80x64xf32, #tpu.memory_space<vmem>>, vector<8x64xf32>
    %95 = vector.extract_strided_slice %94 {offsets = [0, 0], sizes = [1, 32], strides = [1, 1]} : vector<8x64xf32> to vector<1x32xf32>
    %96 = vector.extract_strided_slice %94 {offsets = [1, 0], sizes = [1, 32], strides = [1, 1]} : vector<8x64xf32> to vector<1x32xf32>
    %97 = vector.extract_strided_slice %94 {offsets = [2, 0], sizes = [1, 32], strides = [1, 1]} : vector<8x64xf32> to vector<1x32xf32>
    %98 = vector.extract_strided_slice %94 {offsets = [3, 0], sizes = [1, 32], strides = [1, 1]} : vector<8x64xf32> to vector<1x32xf32>
    %99 = vector.extract_strided_slice %94 {offsets = [4, 0], sizes = [1, 64], strides = [1, 1]} : vector<8x64xf32> to vector<1x64xf32>
    %cst_42 = arith.constant dense<0.000000e+00> : vector<60x32xf32>
    %100 = tpu.matmul %87, %88, %cst_42 {dimension_numbers = #tpu.dot_dimension_numbers<[1], [0], [0], [1], [0, 0, 1, 1], [], []>} : vector<60x32xf32>, vector<32x32xf32>, vector<60x32xf32> -> vector<60x32xf32>
    %cst_43 = arith.constant dense<0.000000e+00> : vector<60x32xf32>
    %101 = tpu.matmul %87, %89, %cst_43 {dimension_numbers = #tpu.dot_dimension_numbers<[1], [0], [0], [1], [0, 0, 1, 1], [], []>} : vector<60x32xf32>, vector<32x32xf32>, vector<60x32xf32> -> vector<60x32xf32>
    %cst_44 = arith.constant dense<0.000000e+00> : vector<60x32xf32>
    %102 = tpu.matmul %87, %90, %cst_44 {dimension_numbers = #tpu.dot_dimension_numbers<[1], [0], [0], [1], [0, 0, 1, 1], [], []>} : vector<60x32xf32>, vector<32x32xf32>, vector<60x32xf32> -> vector<60x32xf32>
    %cst_45 = arith.constant dense<0.000000e+00> : vector<60x60xf32>
    %103 = tpu.matmul %100, %101, %cst_45 {dimension_numbers = #tpu.dot_dimension_numbers<[1], [1], [0], [0], [0, 0, 1, 0], [], []>} : vector<60x32xf32>, vector<60x32xf32>, vector<60x60xf32> -> vector<60x60xf32>
    %cst_46 = arith.constant 0.176776692 : f32
    %104 = vector.broadcast %cst_46 : f32 to vector<60x60xf32>
    %105 = arith.mulf %103, %104 : vector<60x60xf32>
    %106 = arith.addf %105, %1 : vector<60x60xf32>
    %cst_47 = arith.constant dense<0xFF800000> : vector<60xf32>
    %107 = vector.multi_reduction <maximumf>, %106, %cst_47 [1] : vector<60x60xf32> to vector<60xf32>
    %108 = vector.shape_cast %107 : vector<60xf32> to vector<60x1xf32>
    %109 = vector.broadcast %108 : vector<60x1xf32> to vector<60x60xf32>
    %110 = arith.subf %106, %109 : vector<60x60xf32>
    %111 = math.exp %110 : vector<60x60xf32>
    %cst_48 = arith.constant dense<0.000000e+00> : vector<60xf32>
    %112 = vector.multi_reduction <add>, %111, %cst_48 [1] : vector<60x60xf32> to vector<60xf32>
    %113 = vector.shape_cast %112 : vector<60xf32> to vector<60x1xf32>
    %114 = tpu.reciprocal %113 {approx = true} : vector<60x1xf32> -> vector<60x1xf32>
    %115 = vector.broadcast %114 : vector<60x1xf32> to vector<60x60xf32>
    %116 = arith.mulf %111, %115 : vector<60x60xf32>
    %cst_49 = arith.constant dense<0.000000e+00> : vector<60x32xf32>
    %117 = tpu.matmul %116, %102, %cst_49 {dimension_numbers = #tpu.dot_dimension_numbers<[1], [0], [0], [1], [0, 0, 1, 1], [], []>} : vector<60x60xf32>, vector<60x32xf32>, vector<60x32xf32> -> vector<60x32xf32>
    %cst_50 = arith.constant dense<0.000000e+00> : vector<60x32xf32>
    %118 = tpu.matmul %117, %91, %cst_50 {dimension_numbers = #tpu.dot_dimension_numbers<[1], [0], [0], [1], [0, 0, 1, 1], [], []>} : vector<60x32xf32>, vector<32x32xf32>, vector<60x32xf32> -> vector<60x32xf32>
    %119 = vector.broadcast %95 : vector<1x32xf32> to vector<60x32xf32>
    %120 = arith.addf %118, %119 : vector<60x32xf32>
    %cst_51 = arith.constant dense<0.000000e+00> : vector<60xf32>
    %121 = vector.multi_reduction <add>, %120, %cst_51 [1] : vector<60x32xf32> to vector<60xf32>
    %122 = vector.shape_cast %121 : vector<60xf32> to vector<60x1xf32>
    %cst_52 = arith.constant 3.200000e+01 : f32
    %123 = vector.broadcast %cst_52 : f32 to vector<60x1xf32>
    %124 = arith.divf %122, %123 : vector<60x1xf32>
    %125 = vector.broadcast %124 : vector<60x1xf32> to vector<60x32xf32>
    %126 = arith.subf %120, %125 : vector<60x32xf32>
    %127 = arith.mulf %126, %126 : vector<60x32xf32>
    %cst_53 = arith.constant dense<0.000000e+00> : vector<60xf32>
    %128 = vector.multi_reduction <add>, %127, %cst_53 [1] : vector<60x32xf32> to vector<60xf32>
    %129 = vector.shape_cast %128 : vector<60xf32> to vector<60x1xf32>
    %cst_54 = arith.constant 3.200000e+01 : f32
    %130 = vector.broadcast %cst_54 : f32 to vector<60x1xf32>
    %131 = arith.divf %129, %130 : vector<60x1xf32>
    %cst_55 = arith.constant 9.99999974E-6 : f32
    %132 = vector.broadcast %cst_55 : f32 to vector<60x1xf32>
    %133 = arith.addf %131, %132 : vector<60x1xf32>
    %134 = math.rsqrt %133 : vector<60x1xf32>
    %135 = vector.broadcast %134 : vector<60x1xf32> to vector<60x32xf32>
    %136 = arith.mulf %126, %135 : vector<60x32xf32>
    %137 = vector.broadcast %96 : vector<1x32xf32> to vector<60x32xf32>
    %138 = arith.mulf %136, %137 : vector<60x32xf32>
    %139 = vector.broadcast %97 : vector<1x32xf32> to vector<60x32xf32>
    %140 = arith.addf %138, %139 : vector<60x32xf32>
    %141 = arith.addf %140, %87 : vector<60x32xf32>
    %cst_56 = arith.constant dense<0.000000e+00> : vector<60x64xf32>
    %142 = tpu.matmul %141, %93, %cst_56 {dimension_numbers = #tpu.dot_dimension_numbers<[1], [0], [0], [1], [0, 0, 1, 1], [], []>} : vector<60x32xf32>, vector<32x64xf32>, vector<60x64xf32> -> vector<60x64xf32>
    %143 = vector.broadcast %99 : vector<1x64xf32> to vector<60x64xf32>
    %144 = arith.addf %142, %143 : vector<60x64xf32>
    %cst_57 = arith.constant 0.000000e+00 : f32
    %145 = vector.broadcast %cst_57 : f32 to vector<60x64xf32>
    %146 = arith.maximumf %144, %145 : vector<60x64xf32>
    %cst_58 = arith.constant dense<0.000000e+00> : vector<60x32xf32>
    %147 = tpu.matmul %146, %92, %cst_58 {dimension_numbers = #tpu.dot_dimension_numbers<[1], [0], [0], [1], [0, 0, 1, 1], [], []>} : vector<60x64xf32>, vector<64x32xf32>, vector<60x32xf32> -> vector<60x32xf32>
    %148 = vector.broadcast %98 : vector<1x32xf32> to vector<60x32xf32>
    %149 = arith.addf %147, %148 : vector<60x32xf32>
    %cst_59 = arith.constant dense<0.000000e+00> : vector<60x32xf32>
    %150 = tpu.matmul %149, %91, %cst_59 {dimension_numbers = #tpu.dot_dimension_numbers<[1], [0], [0], [1], [0, 0, 1, 1], [], []>} : vector<60x32xf32>, vector<32x32xf32>, vector<60x32xf32> -> vector<60x32xf32>
    %151 = vector.broadcast %95 : vector<1x32xf32> to vector<60x32xf32>
    %152 = arith.addf %150, %151 : vector<60x32xf32>
    %cst_60 = arith.constant dense<0.000000e+00> : vector<60xf32>
    %153 = vector.multi_reduction <add>, %152, %cst_60 [1] : vector<60x32xf32> to vector<60xf32>
    %154 = vector.shape_cast %153 : vector<60xf32> to vector<60x1xf32>
    %cst_61 = arith.constant 3.200000e+01 : f32
    %155 = vector.broadcast %cst_61 : f32 to vector<60x1xf32>
    %156 = arith.divf %154, %155 : vector<60x1xf32>
    %157 = vector.broadcast %156 : vector<60x1xf32> to vector<60x32xf32>
    %158 = arith.subf %152, %157 : vector<60x32xf32>
    %159 = arith.mulf %158, %158 : vector<60x32xf32>
    %cst_62 = arith.constant dense<0.000000e+00> : vector<60xf32>
    %160 = vector.multi_reduction <add>, %159, %cst_62 [1] : vector<60x32xf32> to vector<60xf32>
    %161 = vector.shape_cast %160 : vector<60xf32> to vector<60x1xf32>
    %cst_63 = arith.constant 3.200000e+01 : f32
    %162 = vector.broadcast %cst_63 : f32 to vector<60x1xf32>
    %163 = arith.divf %161, %162 : vector<60x1xf32>
    %cst_64 = arith.constant 9.99999974E-6 : f32
    %164 = vector.broadcast %cst_64 : f32 to vector<60x1xf32>
    %165 = arith.addf %163, %164 : vector<60x1xf32>
    %166 = math.rsqrt %165 : vector<60x1xf32>
    %167 = vector.broadcast %166 : vector<60x1xf32> to vector<60x32xf32>
    %168 = arith.mulf %158, %167 : vector<60x32xf32>
    %169 = vector.broadcast %96 : vector<1x32xf32> to vector<60x32xf32>
    %170 = arith.mulf %168, %169 : vector<60x32xf32>
    %171 = vector.broadcast %97 : vector<1x32xf32> to vector<60x32xf32>
    %172 = arith.addf %170, %171 : vector<60x32xf32>
    %173 = arith.addf %172, %141 : vector<60x32xf32>
    %c8 = arith.constant 8 : index
    %c0_65 = arith.constant 0 : index
    %174 = vector.load %arg4[%c8, %c0_65] : memref<168x128xf32, #tpu.memory_space<vmem>>, vector<32x128xf32>
    %c40 = arith.constant 40 : index
    %c0_66 = arith.constant 0 : index
    %175 = vector.load %arg4[%c40, %c0_66] : memref<168x128xf32, #tpu.memory_space<vmem>>, vector<60x128xf32>
    %c0_67 = arith.constant 0 : index
    %c0_68 = arith.constant 0 : index
    %176 = vector.load %arg4[%c0_67, %c0_68] : memref<168x128xf32, #tpu.memory_space<vmem>>, vector<2x60xf32>
    %c0_69 = arith.constant 0 : index
    %c0_70 = arith.constant 0 : index
    %177 = vector.load %arg5[%c0_69, %c0_70] : memref<136x128xf32, #tpu.memory_space<vmem>>, vector<128x128xf32>
    %c128_71 = arith.constant 128 : index
    %c0_72 = arith.constant 0 : index
    %178 = vector.load %arg5[%c128_71, %c0_72] : memref<136x128xf32, #tpu.memory_space<vmem>>, vector<1x128xf32>
    %cst_73 = arith.constant dense<0.000000e+00> : vector<60x128xf32>
    %179 = tpu.matmul %173, %174, %cst_73 {dimension_numbers = #tpu.dot_dimension_numbers<[1], [0], [0], [1], [0, 0, 1, 1], [], []>} : vector<60x32xf32>, vector<32x128xf32>, vector<60x128xf32> -> vector<60x128xf32>
    %180 = arith.mulf %179, %175 : vector<60x128xf32>
    %cst_74 = arith.constant dense<0.000000e+00> : vector<2x128xf32>
    %181 = tpu.matmul %176, %180, %cst_74 {dimension_numbers = #tpu.dot_dimension_numbers<[1], [0], [0], [1], [0, 0, 1, 1], [], []>} : vector<2x60xf32>, vector<60x128xf32>, vector<2x128xf32> -> vector<2x128xf32>
    %cst_75 = arith.constant dense<0.000000e+00> : vector<2x128xf32>
    %182 = tpu.matmul %181, %177, %cst_75 {dimension_numbers = #tpu.dot_dimension_numbers<[1], [0], [0], [1], [0, 0, 1, 1], [], []>} : vector<2x128xf32>, vector<128x128xf32>, vector<2x128xf32> -> vector<2x128xf32>
    %183 = vector.broadcast %178 : vector<1x128xf32> to vector<2x128xf32>
    %184 = arith.addf %182, %183 : vector<2x128xf32>
    %c0_76 = arith.constant 0 : index
    %c0_77 = arith.constant 0 : index
    %185 = vector.load %arg6[%c0_76, %c0_77] : memref<2x128xf32, #tpu.memory_space<vmem>>, vector<2x128xf32>
    tpu.vector_store %arg6[%c0_76, %c0_77], %184 {strides = array<i32>} : memref<2x128xf32, #tpu.memory_space<vmem>>, vector<2x128xf32>,
    return
  }
  func.func @transform_0(%arg0: i32) -> (i32, i32) {
    %c0_i32 = arith.constant 0 : i32
    %c0_i32_0 = arith.constant 0 : i32
    %c0_i32_1 = arith.constant 0 : i32
    return %c0_i32, %c0_i32_0 : i32, i32
  }
  func.func @transform_1(%arg0: i32) -> (i32, i32) {
    %c0_i32 = arith.constant 0 : i32
    %c0_i32_0 = arith.constant 0 : i32
    %c0_i32_1 = arith.constant 0 : i32
    return %c0_i32, %c0_i32_0 : i32, i32
  }
  func.func @transform_2(%arg0: i32) -> (i32, i32) {
    %c0_i32 = arith.constant 0 : i32
    %c0_i32_0 = arith.constant 0 : i32
    %c0_i32_1 = arith.constant 0 : i32
    return %c0_i32, %c0_i32_0 : i32, i32
  }
  func.func @transform_3(%arg0: i32) -> (i32, i32) {
    %c0_i32 = arith.constant 0 : i32
    %c0_i32_0 = arith.constant 0 : i32
    %c0_i32_1 = arith.constant 0 : i32
    return %c0_i32, %c0_i32_0 : i32, i32
  }
  func.func @transform_4(%arg0: i32) -> (i32, i32) {
    %c0_i32 = arith.constant 0 : i32
    %c0_i32_0 = arith.constant 0 : i32
    %c0_i32_1 = arith.constant 0 : i32
    return %c0_i32, %c0_i32_0 : i32, i32
  }
  func.func @transform_5(%arg0: i32) -> (i32, i32) {
    %c0_i32 = arith.constant 0 : i32
    %c0_i32_0 = arith.constant 0 : i32
    %c0_i32_1 = arith.constant 0 : i32
    return %c0_i32, %c0_i32_0 : i32, i32
  }
}

</mosaic_0001>

<bundles_post_ra>
// kernel: transformer_forward.1
= control target key start
LH: loop header
LB: loop body
LE: loop exit
PB: predicated region body
PF: predicated region fallthrough
CT: control target
= control target key end

     0   :  { %s3945_s0 = inlined_call_operand.vmem [shape: f32[60,32], index: 0, kind: input, shape index: {}]   ;;  %s3946_s1 = inlined_call_operand.vmem [shape: f32[384,32], index: 1, kind: input, shape index: {}]   ;;  %s3947_s2 = inlined_call_operand.vmem [shape: f32[80,64], index: 2, kind: input, shape index: {}]   ;;  %s3948_s3 = inlined_call_operand.vmem [shape: f32[168,128], index: 3, kind: input, shape index: {}]   ;;  %s3949_s4 = inlined_call_operand.vmem [shape: f32[136,128], index: 4, kind: input, shape index: {}]   ;;  %s3950_s5 = inlined_call_operand.hbm [shape: f32[2,128], index: 5, kind: output, shape index: {}]  }
   0x1   :  { %v44_v0 = vld [vmem:[%s3946_s1 + $0x38] sm:$0xff]  ;;  %v43_v1 = vld [vmem:[%s3946_s1 + $0x30] sm:$0xff]  ;;  %v42_v2 = vld [vmem:[%s3946_s1 + $0x28] sm:$0xff] }
   0x2   :  { %144 = vmatpush.msra.mxu1 %v44_v0 }
   0x4   :  { %145 = vmatpush.msra.mxu1 %v43_v1 }
   0x5   :  { %10 = vsyncpa [#allocation3], 0  ;;  %v41_v3 = vld [vmem:[%s3946_s1 + $0x20] sm:$0xff]  ;;  %vm66_vm0 = vcmask 261120   ;;  %v2831_v5 = vld [vmem:[%s3945_s0 + $0x8] sm:$0xff]  ;;  %vm319_vm1 = vcmask 490496  }
   0x6   :  { %146 = vmatpush.msra.mxu1 %v42_v2  ;;  %v2824_v4 = vld [vmem:[%s3945_s0] sm:$0xff]  ;;  %v2838_v6 = vld [vmem:[%s3945_s0 + $0x10] sm:$0xff]  ;;  %v2845_v7 = vld [vmem:[%s3945_s0 + $0x18] sm:$0xff]  ;;  %vm341_vm2 = vcmask 486400   ;;  %vm433_vm3 = vcmask 1043456   ;;  %vm565_vm5 = vcmask 257024  }
   0x7   :  { %v40_v8 = vld [vmem:[%s3946_s1 + $0x18] sm:$0xff]  ;;  %v39_v9 = vld [vmem:[%s3946_s1 + $0x10] sm:$0xff]  ;;  %v38_v10 = vld [vmem:[%s3946_s1 + $0x8] sm:$0xff]  ;;  %s2778_s7 = smov [#allocation2]  }
   0x8   :  { %147 = vmatpush.msra.mxu1 %v41_v3  ;;  %103 = vmatpush.msra.mxu0 %v40_v8  ;;  %v37_v11 = vld [vmem:[%s3946_s1] sm:$0xff]  ;;  %v2873_v13 = vld [vmem:[%s3945_s0 + $0x28] sm:$0xff]  ;;  %v2882_v14 = vld [vmem:[%s3945_s0 + $0x30] sm:$0xff]  ;;  %s2426_s8 = sshll.u32 %s2778_s7, 4  ;;  %s2427_s8 = int_to_ptr.vmem [resolvable:$true] %s2426_s8 }
   0x9   :  { %2445 = vmatmul.msk.f32.vlgmr.msra.gmra.mxu1 %vm66_vm0, %v2824_v4  ;;  %v2864_v12 = vld [vmem:[%s3945_s0 + $0x20] sm:$0xff]  ;;  %v28_v15 = vld [vmem:[%s3945_s0 + $0x38] sm:$0xf]  ;;  %v47_v30 = vld [vmem:[%s3946_s1 + $0x50] sm:$0xff] }
   0xa   :  { %104 = vmatpush.msra.mxu0 %v39_v9  ;;  %v48_v29 = vld [vmem:[%s3946_s1 + $0x58] sm:$0xff]  ;;  %v46_v31 = vld [vmem:[%s3946_s1 + $0x48] sm:$0xff]  ;;  %v45_v32 = vld [vmem:[%s3946_s1 + $0x40] sm:$0xff] }
   0xb   :  { %185 = vmatpush.msra.mxu2 %v48_v29  ;;  %v29_v37 = vld [vmem:[%s3948_s3 + $0x68] sm:$0xff]  ;;  %v30_v42 = vld [vmem:[%s3948_s3 + $0x70] sm:$0xff]  ;;  %v31_v47 = vld [vmem:[%s3948_s3 + $0x78] sm:$0xff] }
   0xc   :  { %105 = vmatpush.msra.mxu0 %v38_v10  ;;  %v32_v52 = vld [vmem:[%s3948_s3 + $0x80] sm:$0xff]  ;;  %v33_v57 = vld [vmem:[%s3948_s3 + $0x88] sm:$0xff]  ;;  %v34_v62 = vld [vmem:[%s3948_s3 + $0x90] sm:$0xff] }
   0xd   :  { %186 = vmatpush.msra.mxu2 %v47_v30  ;;  %v35_v3 = vld [vmem:[%s3948_s3 + $0x98] sm:$0xff] }
   0xe   :  { %106 = vmatpush.msra.mxu0 %v37_v11 }
   0xf   :  { %2437 = vmatmul.msk.f32.vlgmr.msra.gmra.mxu0 %vm66_vm0, %v2824_v4  ;;  %187 = vmatpush.msra.mxu2 %v46_v31 }
  0x11   :  { %2446 = vmatmul.msk.f32.gmra.mxu1 %vm66_vm0, %v2831_v5  ;;  %188 = vmatpush.msra.mxu2 %v45_v32 }
  0x12   :  { %2453 = vmatmul.msk.f32.vlgmr.msra.gmra.mxu2 %vm66_vm0, %v2824_v4 }
  0x17   :  { %2438 = vmatmul.msk.f32.gmra.mxu0 %vm66_vm0, %v2831_v5 }
  0x19   :  { %2447 = vmatmul.msk.f32.gmra.mxu1 %vm66_vm0, %v2838_v6 }
  0x1a   :  { %2454 = vmatmul.msk.f32.gmra.mxu2 %vm66_vm0, %v2831_v5 }
  0x1f   :  { %2439 = vmatmul.msk.f32.gmra.mxu0 %vm66_vm0, %v2838_v6 }
  0x21   :  { %2448 = vmatmul.msk.f32.gmra.mxu1 %vm66_vm0, %v2845_v7 }
  0x22   :  { %2455 = vmatmul.msk.f32.gmra.mxu2 %vm66_vm0, %v2838_v6 }
  0x27   :  { %2440 = vmatmul.msk.f32.gmra.mxu0 %vm66_vm0, %v2845_v7 }
  0x29   :  { %2449 = vmatmul.msk.f32.gmra.mxu1 %vm66_vm0, %v2864_v12 }
  0x2a   :  { %2456 = vmatmul.msk.f32.gmra.mxu2 %vm66_vm0, %v2845_v7 }
  0x2f   :  { %2441 = vmatmul.msk.f32.gmra.mxu0 %vm66_vm0, %v2864_v12 }
  0x31   :  { %2450 = vmatmul.msk.f32.gmra.mxu1 %vm66_vm0, %v2873_v13 }
  0x32   :  { %2457 = vmatmul.msk.f32.gmra.mxu2 %vm66_vm0, %v2864_v12 }
  0x37   :  { %2442 = vmatmul.msk.f32.gmra.mxu0 %vm66_vm0, %v2873_v13 }
  0x39   :  { %2451 = vmatmul.msk.f32.gmra.mxu1 %vm66_vm0, %v2882_v14 }
  0x3a   :  { %2458 = vmatmul.msk.f32.gmra.mxu2 %vm66_vm0, %v2873_v13 }
  0x3f   :  { %2443 = vmatmul.msk.f32.gmra.mxu0 %vm66_vm0, %v2882_v14 }
  0x41   :  { %2452 = vmatmul.msk.f32.gmra.mxu1 %vm66_vm0, %v28_v15 }
  0x42   :  { %2459 = vmatmul.msk.f32.gmra.mxu2 %vm66_vm0, %v2882_v14 }
  0x47   :  { %2444 = vmatmul.msk.f32.gmra.mxu0 %vm66_vm0, %v28_v15 }
  0x4a   :  { %2460 = vmatmul.msk.f32.gmra.mxu2 %vm66_vm0, %v28_v15  ;;  %v36_v15 = vld [vmem:[%s3948_s3 + $0xa0] sm:$0xf] }
  0x86   :  { %v149_v16 = vpop.f32.mrf.mxu1 }
  0x8c   :  { %v108_v24 = vpop.f32.mrf.mxu0 }
  0x8e   :  { %v152_v17 = vpop.f32.mrf.mxu1 }
  0x94   :  { %v111_v25 = vpop.f32.mrf.mxu0 }
  0x96   :  { %v155_v18 = vpop.f32.mrf.mxu1 }
  0x9c   :  { %v114_v26 = vpop.f32.mrf.mxu0 }
  0x9e   :  { %v158_v19 = vpop.f32.mrf.mxu1 }
  0xa4   :  { %v117_v27 = vpop.f32.mrf.mxu0 }
  0xa6   :  { %v161_v20 = vpop.f32.mrf.mxu1 }
  0xac   :  { %v120_v28 = vpop.f32.mrf.mxu0 }
  0xae   :  { %v164_v21 = vpop.f32.mrf.mxu1 }
  0xb4   :  { %v123_v33 = vpop.f32.mrf.mxu0 }
  0xb6   :  { %v167_v22 = vpop.f32.mrf.mxu1 }
  0xbc   :  { %v126_v34 = vpop.f32.mrf.mxu0 }
  0xbe   :  { %v170_v23 = vpop.f32.mrf.mxu1 }
  0xbf   :  { %2461 = vmatpush.xpose.msk.msra.mxu3 %vm66_vm0, %v170_v23 }
  0xc3   :  { %2462 = vmatpush.xpose.msk.msra.mxu3 %vm66_vm0, %v167_v22 }
  0xc4   :  { %v129_v35 = vpop.f32.mrf.mxu0 }
  0xc7   :  { %2463 = vmatpush.xpose.msk.msra.mxu3 %vm66_vm0, %v164_v21 }
  0xcb   :  { %2464 = vmatpush.xpose.msk.msra.mxu3 %vm66_vm0, %v161_v20 }
  0xcf   :  { %2465 = vmatpush.xpose.msk.msra.mxu3 %vm66_vm0, %v158_v19  ;;  %v190_v19 = vpop.f32.mrf.mxu2 }
  0xd3   :  { %2466 = vmatpush.xpose.msk.msra.mxu3 %vm66_vm0, %v155_v18 }
  0xd7   :  { %2467 = vmatpush.xpose.msk.msra.mxu3 %vm66_vm0, %v152_v17  ;;  %v193_v20 = vpop.f32.mrf.mxu2 }
  0xdb   :  { %2468 = vmatpush.xpose.msk.msra.mxu3 %vm66_vm0, %v149_v16 }
  0xde   :  { %2469 = vmatmul.msk.f32.vlgmr.msra.gmra.mxu3 %vm66_vm0, %v108_v24 }
  0xdf   :  { %v196_v21 = vpop.f32.mrf.mxu2 }
  0xe6   :  { %2470 = vmatmul.msk.f32.gmra.mxu3 %vm66_vm0, %v111_v25 }
  0xe7   :  { %v199_v22 = vpop.f32.mrf.mxu2 }
  0xee   :  { %2471 = vmatmul.msk.f32.gmra.mxu3 %vm66_vm0, %v114_v26 }
  0xef   :  { %v202_v23 = vpop.f32.mrf.mxu2 }
  0xf6   :  { %2472 = vmatmul.msk.f32.gmra.mxu3 %vm66_vm0, %v117_v27 }
  0xf7   :  { %v205_v27 = vpop.f32.mrf.mxu2 }
  0xfe   :  { %2473 = vmatmul.msk.f32.gmra.mxu3 %vm66_vm0, %v120_v28 }
 0x106   :  { %2474 = vmatmul.msk.f32.gmra.mxu3 %vm66_vm0, %v123_v33  ;;  %v208_v33 = vpop.f32.mrf.mxu2 }
 0x10e   :  { %2475 = vmatmul.msk.f32.gmra.mxu3 %vm66_vm0, %v126_v34 }
 0x116   :  { %2476 = vmatmul.msk.f32.gmra.mxu3 %vm66_vm0, %v129_v35 }
 0x161   :  { %v279_v36 = vpop.f32.mrf.mxu3 }
 0x162   :  { %v303_v38 = vmul.f32 0.17677669, %v279_v36 }
 0x164   :  { %v311_v39 = vadd.f32 %v303_v38, %v29_v37 }
 0x166   :  { %v320_v40 = vsel %vm319_vm1, %v311_v39, -inf }
 0x167   :  { %321 = vmax.xlane.f32.xlu0 %v320_v40 }
 0x169   :  { %v282_v41 = vpop.f32.mrf.mxu3 }
 0x16a   :  { %v304_v43 = vmul.f32 0.17677669, %v282_v41 }
 0x16c   :  { %v312_v44 = vadd.f32 %v304_v43, %v30_v42 }
 0x16e   :  { %v323_v45 = vsel %vm319_vm1, %v312_v44, -inf }
 0x16f   :  { %324 = vmax.xlane.f32.xlu0 %v323_v45 }
 0x171   :  { %v285_v46 = vpop.f32.mrf.mxu3 }
 0x172   :  { %v305_v48 = vmul.f32 0.17677669, %v285_v46 }
 0x174   :  { %v313_v49 = vadd.f32 %v305_v48, %v31_v47 }
 0x176   :  { %v326_v50 = vsel %vm319_vm1, %v313_v49, -inf }
 0x177   :  { %327 = vmax.xlane.f32.xlu1 %v326_v50 }
 0x179   :  { %v288_v51 = vpop.f32.mrf.mxu3 }
 0x17a   :  { %v306_v53 = vmul.f32 0.17677669, %v288_v51 }
 0x17c   :  { %v314_v54 = vadd.f32 %v306_v53, %v32_v52 }
 0x17e   :  { %v329_v55 = vsel %vm319_vm1, %v314_v54, -inf }
 0x17f   :  { %330 = vmax.xlane.f32.xlu1 %v329_v55 }
 0x181   :  { %v291_v56 = vpop.f32.mrf.mxu3 }
 0x182   :  { %v307_v58 = vmul.f32 0.17677669, %v291_v56 }
 0x184   :  { %v2963_v59 = vadd.f32 %v307_v58, %v33_v57 }
 0x186   :  { %v332_v60 = vsel %vm319_vm1, %v2963_v59, -inf }
 0x187   :  { %333 = vmax.xlane.f32.xlu2 %v332_v60 }
 0x189   :  { %v294_v61 = vpop.f32.mrf.mxu3 }
 0x18a   :  { %v308_v63 = vmul.f32 0.17677669, %v294_v61 }
 0x18c   :  { %v2970_v0 = vadd.f32 %v308_v63, %v34_v62 }
 0x18e   :  { %v335_v1 = vsel %vm319_vm1, %v2970_v0, -inf }
 0x18f   :  { %336 = vmax.xlane.f32.xlu2 %v335_v1 }
 0x191   :  { %v297_v2 = vpop.f32.mrf.mxu3 }
 0x192   :  { %v309_v8 = vmul.f32 0.17677669, %v297_v2 }
 0x194   :  { %v2977_v9 = vadd.f32 %v309_v8, %v35_v3 }
 0x196   :  { %v338_v10 = vsel %vm319_vm1, %v2977_v9, -inf }
 0x197   :  { %339 = vmax.xlane.f32.xlu0 %v338_v10 }
 0x199   :  { %v300_v11 = vpop.f32.mrf.mxu3 }
 0x19a   :  { %v310_v16 = vmul.f32 0.17677669, %v300_v11 }
 0x19c   :  { %v2984_v17 = vadd.f32 %v310_v16, %v36_v15 }
 0x19e   :  { %v342_v18 = vsel %vm341_vm2, %v2984_v17, -inf }
 0x19f   :  { %343 = vmax.xlane.f32.xlu2 %v342_v18 }
 0x1da   :  { %v322_v24 = vpop.xlane.xlu0 %321 }
 0x1db   :  { %v345_v25 = vsub.f32 %v311_v39, %v322_v24  ;;  %v211_v39 = vpop.f32.mrf.mxu2  ;;  %v51_v24 = vld [vmem:[%s3946_s1 + $0x70] sm:$0xff] }
 0x1dc   :  { %2477 = vmatpush.msk.msrb.mxu0 %vm433_vm3, %v211_v39 }
 0x1dd   :  { %v353_v26 = vmul.f32 1.442695, %v345_v25  ;;  %v50_v25 = vld [vmem:[%s3946_s1 + $0x68] sm:$0xff] }
 0x1de   :  { %446 = vmatpush.msrb.mxu0 %v208_v33 }
 0x1df   :  { %2612 = vpow2.f32 %v353_v26 }
 0x1e0   :  { %447 = vmatpush.msrb.mxu0 %v205_v27 }
 0x1e2   :  { %v325_v28 = vpop.xlane.xlu0 %324  ;;  %448 = vmatpush.msrb.mxu0 %v202_v23  ;;  %v52_v23 = vld [vmem:[%s3946_s1 + $0x78] sm:$0xff] }
 0x1e3   :  { %v346_v29 = vsub.f32 %v312_v44, %v325_v28  ;;  %515 = vmatpush.msrb.mxu1 %v52_v23 }
 0x1e4   :  { %449 = vmatpush.msrb.mxu0 %v199_v22 }
 0x1e5   :  { %v2988_v30 = vpop.eup %2612  ;;  %v355_v31 = vmul.f32 1.442695, %v346_v29  ;;  %516 = vmatpush.msrb.mxu1 %v51_v24 }
 0x1e6   :  { %v369_v32 = vsel %vm319_vm1, %v2988_v30, 0.0  ;;  %450 = vmatpush.msrb.mxu0 %v196_v21 }
 0x1e7   :  { %2614 = vpow2.f32 %v355_v31  ;;  %370 = vadd.xlane.f32.xlu1 %v369_v32  ;;  %517 = vmatpush.msrb.mxu1 %v50_v25 }
 0x1e8   :  { %451 = vmatpush.msrb.mxu0 %v193_v20 }
 0x1ea   :  { %v328_v34 = vpop.xlane.xlu1 %327  ;;  %452 = vmatpush.msrb.mxu0 %v190_v19 }
 0x1eb   :  { %v347_v35 = vsub.f32 %v313_v49, %v328_v34 }
 0x1ec   :  { %931 = vmatpush.msra.mxu0 %v52_v23 }
 0x1ed   :  { %v2615_v36 = vpop.eup %2614  ;;  %v357_v37 = vmul.f32 1.442695, %v347_v35 }
 0x1ee   :  { %v372_v38 = vsel %vm319_vm1, %v2615_v36, 0.0  ;;  %932 = vmatpush.msra.mxu0 %v51_v24 }
 0x1ef   :  { %2616 = vpow2.f32 %v357_v37  ;;  %373 = vadd.xlane.f32.xlu0 %v372_v38  ;;  %v49_v37 = vld [vmem:[%s3946_s1 + $0x60] sm:$0xff] }
 0x1f0   :  { %933 = vmatpush.msra.mxu0 %v50_v25  ;;  %518 = vmatpush.msrb.mxu1 %v49_v37 }
 0x1f2   :  { %v331_v40 = vpop.xlane.xlu1 %330  ;;  %934 = vmatpush.msra.mxu0 %v49_v37 }
 0x1f3   :  { %v348_v41 = vsub.f32 %v314_v54, %v331_v40 }
 0x1f5   :  { %v2617_v42 = vpop.eup %2616  ;;  %v359_v43 = vmul.f32 1.442695, %v348_v41 }
 0x1f6   :  { %v375_v44 = vsel %vm319_vm1, %v2617_v42, 0.0 }
 0x1f7   :  { %2618 = vpow2.f32 %v359_v43  ;;  %376 = vadd.xlane.f32.xlu1 %v375_v44 }
 0x1fa   :  { %v334_v45 = vpop.xlane.xlu2 %333 }
 0x1fb   :  { %v349_v46 = vsub.f32 %v2963_v59, %v334_v45 }
 0x1fd   :  { %v2619_v47 = vpop.eup %2618  ;;  %v361_v48 = vmul.f32 1.442695, %v349_v46  ;;  %v3036_v46 = vld [vmem:[%s3947_s2 + $0x40] sm:$0xff] }
 0x1fe   :  { %v378_v49 = vsel %vm319_vm1, %v2619_v47, 0.0 }
 0x1ff   :  { %2620 = vpow2.f32 %v361_v48  ;;  %379 = vadd.xlane.f32.xlu2 %v378_v49 }
 0x202   :  { %v337_v50 = vpop.xlane.xlu2 %336 }
 0x203   :  { %v350_v51 = vsub.f32 %v2970_v0, %v337_v50 }
 0x205   :  { %v2621_v52 = vpop.eup %2620  ;;  %v363_v53 = vmul.f32 1.442695, %v350_v51 }
 0x206   :  { %v381_v54 = vsel %vm319_vm1, %v2621_v52, 0.0 }
 0x207   :  { %2622 = vpow2.f32 %v363_v53  ;;  %382 = vadd.xlane.f32.xlu0 %v381_v54 }
 0x20a   :  { %v340_v55 = vpop.xlane.xlu0 %339 }
 0x20b   :  { %v351_v56 = vsub.f32 %v2977_v9, %v340_v55 }
 0x20d   :  { %v2623_v57 = vpop.eup %2622  ;;  %v365_v58 = vmul.f32 1.442695, %v351_v56 }
 0x20e   :  { %v384_v59 = vsel %vm319_vm1, %v2623_v57, 0.0 }
 0x20f   :  { %2624 = vpow2.f32 %v365_v58  ;;  %385 = vadd.xlane.f32.xlu1 %v384_v59 }
 0x212   :  { %v344_v60 = vpop.xlane.xlu2 %343 }
 0x213   :  { %v352_v61 = vsub.f32 %v2984_v17, %v344_v60 }
 0x215   :  { %v2625_v62 = vpop.eup %2624  ;;  %v367_v63 = vmul.f32 1.442695, %v352_v61 }
 0x216   :  { %v387_v0 = vsel %vm319_vm1, %v2625_v62, 0.0 }
 0x217   :  { %2626 = vpow2.f32 %v367_v63  ;;  %388 = vadd.xlane.f32.xlu2 %v387_v0 }
 0x21d   :  { %v2627_v1 = vpop.eup %2626 }
 0x21e   :  { %v390_v2 = vsel %vm341_vm2, %v2627_v1, 0.0 }
 0x21f   :  { %391 = vadd.xlane.f32.xlu0 %v390_v2 }
 0x25a   :  { %v371_v3 = vpop.xlane.xlu1 %370 }
 0x25b   :  { %2628 = vrcp.f32 %v371_v3 }
 0x261   :  { %v2629_v8 = vpop.eup %2628 }
 0x262   :  { %v374_v9 = vpop.xlane.xlu0 %373  ;;  %v401_v10 = vmul.f32 %v2629_v8, %v2988_v30 }
 0x263   :  { %2630 = vrcp.f32 %v374_v9  ;;  %v2777_v9 = vmov 32.0  }
 0x264   :  { %2478 = vmatmul.msk.f32.vlgmr.msrb.gmra.mxu0 %vm319_vm1, %v401_v10 }
 0x269   :  { %v2631_v11 = vpop.eup %2630 }
 0x26a   :  { %v377_v15 = vpop.xlane.xlu1 %376  ;;  %v402_v16 = vmul.f32 %v2631_v11, %v2615_v36 }
 0x26b   :  { %2632 = vrcp.f32 %v377_v15 }
 0x26c   :  { %2479 = vmatmul.msk.f32.gmra.mxu0 %vm319_vm1, %v402_v16 }
 0x271   :  { %v2633_v17 = vpop.eup %2632 }
 0x272   :  { %v380_v18 = vpop.xlane.xlu2 %379  ;;  %v403_v19 = vmul.f32 %v2633_v17, %v2617_v42 }
 0x273   :  { %2634 = vrcp.f32 %v380_v18 }
 0x274   :  { %2480 = vmatmul.msk.f32.gmra.mxu0 %vm319_vm1, %v403_v19 }
 0x279   :  { %v2635_v20 = vpop.eup %2634 }
 0x27a   :  { %v383_v21 = vpop.xlane.xlu0 %382  ;;  %v404_v22 = vmul.f32 %v2635_v20, %v2619_v47  ;;  %v3039_v47 = vperm.slane %v3036_v46, 0 }
 0x27b   :  { %2636 = vrcp.f32 %v383_v21 }
 0x27c   :  { %2481 = vmatmul.msk.f32.gmra.mxu0 %vm319_vm1, %v404_v22 }
 0x281   :  { %v2637_v26 = vpop.eup %2636 }
 0x282   :  { %v386_v27 = vpop.xlane.xlu1 %385  ;;  %v405_v28 = vmul.f32 %v2637_v26, %v2621_v52 }
 0x283   :  { %2638 = vrcp.f32 %v386_v27 }
 0x284   :  { %2482 = vmatmul.msk.f32.gmra.mxu0 %vm319_vm1, %v405_v28 }
 0x289   :  { %v2639_v29 = vpop.eup %2638 }
 0x28a   :  { %v389_v30 = vpop.xlane.xlu2 %388  ;;  %v406_v31 = vmul.f32 %v2639_v29, %v2623_v57 }
 0x28b   :  { %2640 = vrcp.f32 %v389_v30 }
 0x28c   :  { %2483 = vmatmul.msk.f32.gmra.mxu0 %vm319_vm1, %v406_v31 }
 0x291   :  { %v2641_v32 = vpop.eup %2640 }
 0x292   :  { %v392_v33 = vpop.xlane.xlu0 %391  ;;  %v407_v34 = vmul.f32 %v2641_v32, %v2625_v62 }
 0x293   :  { %2642 = vrcp.f32 %v392_v33 }
 0x294   :  { %2484 = vmatmul.msk.f32.gmra.mxu0 %vm319_vm1, %v407_v34  ;;  %2644 = vrcp.f32 %v2777_v9 }
 0x299   :  { %v2643_v35 = vpop.eup %2642 }
 0x29a   :  { %v408_v36 = vmul.f32 %v2643_v35, %v2627_v1  ;;  %v2645_v10 = vpop.eup %2644 }
 0x29b   :  { %v570_v11 = vmul.f32 32.0, %v2645_v10  ;;  %vm574_vm4 = vweird.f32 %v2645_v10 }
 0x29c   :  { %2485 = vmatmul.msk.f32.gmra.mxu0 %vm319_vm1, %v408_v36 }
 0x29d   :  { %v571_v15 = vsub.f32 1.0, %v570_v11 }
 0x29f   :  { %v572_v16 = vmul.f32 %v2645_v10, %v571_v15 }
 0x2a1   :  { %v573_v17 = vadd.f32 %v2645_v10, %v572_v16 }
 0x2a3   :  { %v3055_v18 = vsel %vm574_vm4, %v2645_v10, %v573_v17 }
 0x2e1   :  { %v454_v38 = vpop.f32.mrf.mxu0 }
 0x2e2   :  { %2486 = vmatmul.msk.f32.vlgmr.msrb.gmra.mxu1 %vm66_vm0, %v454_v38 }
 0x2e9   :  { %v457_v39 = vpop.f32.mrf.mxu0 }
 0x2ea   :  { %2487 = vmatmul.msk.f32.gmra.mxu1 %vm66_vm0, %v457_v39 }
 0x2f1   :  { %v460_v40 = vpop.f32.mrf.mxu0 }
 0x2f2   :  { %2488 = vmatmul.msk.f32.gmra.mxu1 %vm66_vm0, %v460_v40 }
 0x2f9   :  { %v463_v41 = vpop.f32.mrf.mxu0 }
 0x2fa   :  { %2489 = vmatmul.msk.f32.gmra.mxu1 %vm66_vm0, %v463_v41 }
 0x301   :  { %v466_v42 = vpop.f32.mrf.mxu0 }
 0x302   :  { %2490 = vmatmul.msk.f32.gmra.mxu1 %vm66_vm0, %v466_v42 }
 0x309   :  { %v469_v43 = vpop.f32.mrf.mxu0 }
 0x30a   :  { %2491 = vmatmul.msk.f32.gmra.mxu1 %vm66_vm0, %v469_v43 }
 0x311   :  { %v472_v44 = vpop.f32.mrf.mxu0 }
 0x312   :  { %2492 = vmatmul.msk.f32.gmra.mxu1 %vm66_vm0, %v472_v44 }
 0x319   :  { %v475_v45 = vpop.f32.mrf.mxu0 }
 0x31a   :  { %2493 = vmatmul.msk.f32.gmra.mxu1 %vm66_vm0, %v475_v45 }
 0x35f   :  { %v520_v48 = vpop.f32.mrf.mxu1 }
 0x360   :  { %v521_v49 = vadd.f32 %v520_v48, %v3039_v47 }
 0x362   :  { %v544_v50 = vsel %vm66_vm0, %v521_v49, 0.0 }
 0x363   :  { %545 = vadd.xlane.f32.xlu1 %v544_v50 }
 0x367   :  { %v523_v51 = vpop.f32.mrf.mxu1 }
 0x368   :  { %v524_v52 = vadd.f32 %v523_v51, %v3039_v47 }
 0x36a   :  { %v547_v53 = vsel %vm66_vm0, %v524_v52, 0.0 }
 0x36b   :  { %548 = vadd.xlane.f32.xlu2 %v547_v53 }
 0x36f   :  { %v526_v54 = vpop.f32.mrf.mxu1 }
 0x370   :  { %v527_v55 = vadd.f32 %v526_v54, %v3039_v47 }
 0x372   :  { %v550_v56 = vsel %vm66_vm0, %v527_v55, 0.0 }
 0x373   :  { %551 = vadd.xlane.f32.xlu0 %v550_v56 }
 0x377   :  { %v529_v57 = vpop.f32.mrf.mxu1 }
 0x378   :  { %v530_v58 = vadd.f32 %v529_v57, %v3039_v47 }
 0x37a   :  { %v553_v59 = vsel %vm66_vm0, %v530_v58, 0.0 }
 0x37b   :  { %554 = vadd.xlane.f32.xlu1 %v553_v59  ;;  %v64_v59 = vld [vmem:[%s3947_s2 + $0x18] sm:$0xff] }
 0x37c   :  { %791 = vmatpush.msrb.mxu2 %v64_v59 }
 0x37f   :  { %v532_v60 = vpop.f32.mrf.mxu1 }
 0x380   :  { %v533_v61 = vadd.f32 %v532_v60, %v3039_v47  ;;  %v63_v60 = vld [vmem:[%s3947_s2 + $0x10] sm:$0xff] }
 0x381   :  { %792 = vmatpush.msrb.mxu2 %v63_v60 }
 0x382   :  { %v556_v62 = vsel %vm66_vm0, %v533_v61, 0.0 }
 0x383   :  { %557 = vadd.xlane.f32.xlu2 %v556_v62  ;;  %v61_v62 = vld [vmem:[%s3947_s2] sm:$0xff] }
 0x387   :  { %v535_v63 = vpop.f32.mrf.mxu1 }
 0x388   :  { %v536_v0 = vadd.f32 %v535_v63, %v3039_v47 }
 0x38a   :  { %v559_v1 = vsel %vm66_vm0, %v536_v0, 0.0 }
 0x38b   :  { %560 = vadd.xlane.f32.xlu0 %v559_v1 }
 0x38f   :  { %v538_v2 = vpop.f32.mrf.mxu1 }
 0x390   :  { %v539_v3 = vadd.f32 %v538_v2, %v3039_v47 }
 0x392   :  { %v562_v8 = vsel %vm66_vm0, %v539_v3, 0.0 }
 0x393   :  { %563 = vadd.xlane.f32.xlu2 %v562_v8 }
 0x397   :  { %v541_v24 = vpop.f32.mrf.mxu1 }
 0x398   :  { %v542_v27 = vadd.f32 %v541_v24, %v3039_v47 }
 0x39a   :  { %v566_v30 = vsel %vm565_vm5, %v542_v27, 0.0 }
 0x3d6   :  { %v546_v19 = vpop.xlane.xlu1 %545 }
 0x3d7   :  { %v576_v20 = vmul.f32 %v3055_v18, %v546_v19 }
 0x3d9   :  { %v3058_v21 = vsub.f32 %v521_v49, %v576_v20 }
 0x3db   :  { %v592_v22 = vmul.f32 %v3058_v21, %v3058_v21 }
 0x3dd   :  { %v600_v23 = vsel %vm66_vm0, %v592_v22, 0.0 }
 0x3de   :  { %601 = vadd.xlane.f32.xlu1 %v600_v23  ;;  %v549_v25 = vpop.xlane.xlu2 %548 }
 0x3df   :  { %v577_v26 = vmul.f32 %v3055_v18, %v549_v25 }
 0x3e1   :  { %v3065_v28 = vsub.f32 %v524_v52, %v577_v26 }
 0x3e3   :  { %v593_v29 = vmul.f32 %v3065_v28, %v3065_v28 }
 0x3e5   :  { %v603_v31 = vsel %vm66_vm0, %v593_v29, 0.0 }
 0x3e6   :  { %v552_v32 = vpop.xlane.xlu0 %551  ;;  %567 = vadd.xlane.f32.xlu1 %v566_v30  ;;  %604 = vadd.xlane.f32.xlu0 %v603_v31  ;;  %v3123_v31 = vperm.slane %v3036_v46, 1 }
 0x3e7   :  { %v578_v33 = vmul.f32 %v3055_v18, %v552_v32 }
 0x3e9   :  { %v3072_v34 = vsub.f32 %v527_v55, %v578_v33 }
 0x3eb   :  { %v594_v35 = vmul.f32 %v3072_v34, %v3072_v34 }
 0x3ed   :  { %v606_v36 = vsel %vm66_vm0, %v594_v35, 0.0 }
 0x3ee   :  { %v555_v37 = vpop.xlane.xlu1 %554  ;;  %607 = vadd.xlane.f32.xlu2 %v606_v36  ;;  %v3127_v36 = vperm.slane %v3036_v46, 2 }
 0x3ef   :  { %v579_v38 = vmul.f32 %v3055_v18, %v555_v37 }
 0x3f1   :  { %v3078_v39 = vsub.f32 %v530_v58, %v579_v38 }
 0x3f3   :  { %v595_v40 = vmul.f32 %v3078_v39, %v3078_v39 }
 0x3f5   :  { %v609_v41 = vsel %vm66_vm0, %v595_v40, 0.0 }
 0x3f6   :  { %610 = vadd.xlane.f32.xlu0 %v609_v41  ;;  %v558_v42 = vpop.xlane.xlu2 %557 }
 0x3f7   :  { %v580_v43 = vmul.f32 %v3055_v18, %v558_v42 }
 0x3f9   :  { %v3084_v44 = vsub.f32 %v533_v61, %v580_v43  ;;  %v62_v61 = vld [vmem:[%s3947_s2 + $0x8] sm:$0xff] }
 0x3fa   :  { %793 = vmatpush.msrb.mxu2 %v62_v61 }
 0x3fb   :  { %v596_v45 = vmul.f32 %v3084_v44, %v3084_v44 }
 0x3fc   :  { %794 = vmatpush.msrb.mxu2 %v61_v62 }
 0x3fd   :  { %v612_v48 = vsel %vm66_vm0, %v596_v45, 0.0 }
 0x3fe   :  { %v561_v49 = vpop.xlane.xlu0 %560  ;;  %613 = vadd.xlane.f32.xlu1 %v612_v48 }
 0x3ff   :  { %v581_v50 = vmul.f32 %v3055_v18, %v561_v49 }
 0x401   :  { %v3090_v51 = vsub.f32 %v536_v0, %v581_v50 }
 0x403   :  { %v597_v52 = vmul.f32 %v3090_v51, %v3090_v51 }
 0x405   :  { %v615_v53 = vsel %vm66_vm0, %v597_v52, 0.0 }
 0x406   :  { %616 = vadd.xlane.f32.xlu2 %v615_v53  ;;  %v564_v54 = vpop.xlane.xlu2 %563 }
 0x407   :  { %v582_v55 = vmul.f32 %v3055_v18, %v564_v54 }
 0x409   :  { %v3096_v56 = vsub.f32 %v539_v3, %v582_v55 }
 0x40b   :  { %v598_v57 = vmul.f32 %v3096_v56, %v3096_v56 }
 0x40d   :  { %v618_v58 = vsel %vm66_vm0, %v598_v57, 0.0 }
 0x40e   :  { %619 = vadd.xlane.f32.xlu0 %v618_v58 }
 0x451   :  { %v602_v63 = vpop.xlane.xlu1 %601 }
 0x452   :  { %v624_v0 = vmul.f32 %v602_v63, %v3055_v18 }
 0x454   :  { %v632_v1 = vadd.f32 1e-05, %v624_v0 }
 0x456   :  { %2646 = vrsqrt.f32 %v632_v1  ;;  %vm646_vm7 = vweird.f32 %v632_v1 }
 0x459   :  { %v568_v2 = vpop.xlane.xlu1 %567  ;;  %v605_v3 = vpop.xlane.xlu0 %604 }
 0x45a   :  { %v583_v8 = vmul.f32 %v3055_v18, %v568_v2  ;;  %v625_v9 = vmul.f32 %v605_v3, %v3055_v18 }
 0x45c   :  { %v2647_v10 = vpop.eup %2646  ;;  %v3116_v11 = vsub.f32 %v542_v27, %v583_v8  ;;  %v633_v15 = vadd.f32 1e-05, %v625_v9 }
 0x45d   :  { %v641_v16 = vmul.f32 %v2647_v10, %v632_v1  ;;  %vm647_vm6 = vweird.f32 %v2647_v10 }
 0x45e   :  { %2648 = vrsqrt.f32 %v633_v15  ;;  %v599_v17 = vmul.f32 %v3116_v11, %v3116_v11  ;;  %vm648_vm8 = vmor %vm646_vm7, %vm647_vm6  ;;  %vm656_vm10 = vweird.f32 %v633_v15 }
 0x45f   :  { %v642_v19 = vmul.f32 %v2647_v10, %v641_v16 }
 0x460   :  { %v621_v20 = vsel %vm565_vm5, %v599_v17, 0.0 }
 0x461   :  { %v643_v22 = vmul.f32 0.5, %v642_v19  ;;  %622 = vadd.xlane.f32.xlu1 %v621_v20  ;;  %v608_v23 = vpop.xlane.xlu2 %607 }
 0x462   :  { %v626_v24 = vmul.f32 %v608_v23, %v3055_v18 }
 0x463   :  { %v644_v25 = vsub.f32 1.5, %v643_v22 }
 0x464   :  { %v2649_v26 = vpop.eup %2648  ;;  %v634_v29 = vadd.f32 1e-05, %v626_v24 }
 0x465   :  { %v645_v27 = vmul.f32 %v2647_v10, %v644_v25  ;;  %v651_v30 = vmul.f32 %v2649_v26, %v633_v15  ;;  %vm657_vm9 = vweird.f32 %v2649_v26 }
 0x466   :  { %2650 = vrsqrt.f32 %v634_v29  ;;  %vm658_vm11 = vmor %vm656_vm10, %vm657_vm9  ;;  %vm666_vm13 = vweird.f32 %v634_v29 }
 0x467   :  { %v649_v32 = vsel %vm648_vm8, %v2647_v10, %v645_v27  ;;  %v652_v33 = vmul.f32 %v2649_v26, %v651_v30 }
 0x468   :  { %v720_v35 = vmul.f32 %v649_v32, %v3058_v21 }
 0x469   :  { %v653_v37 = vmul.f32 0.5, %v652_v33  ;;  %v611_v38 = vpop.xlane.xlu0 %610 }
 0x46a   :  { %v627_v40 = vmul.f32 %v611_v38, %v3055_v18  ;;  %v729_v41 = vmul.f32 %v3123_v31, %v720_v35 }
 0x46b   :  { %v654_v42 = vsub.f32 1.5, %v653_v37 }
 0x46c   :  { %v2651_v43 = vpop.eup %2650  ;;  %v635_v45 = vadd.f32 1e-05, %v627_v40  ;;  %v738_v48 = vadd.f32 %v3127_v36, %v729_v41 }
 0x46d   :  { %v655_v49 = vmul.f32 %v2649_v26, %v654_v42  ;;  %v661_v50 = vmul.f32 %v2651_v43, %v634_v29  ;;  %vm667_vm12 = vweird.f32 %v2651_v43 }
 0x46e   :  { %2652 = vrsqrt.f32 %v635_v45  ;;  %v3133_v21 = vadd.f32 %v738_v48, %v2824_v4  ;;  %vm668_vm14 = vmor %vm666_vm13, %vm667_vm12  ;;  %vm676_vm4 = vweird.f32 %v635_v45 }
 0x46f   :  { %v659_v52 = vsel %vm658_vm11, %v2649_v26, %v655_v49  ;;  %v662_v53 = vmul.f32 %v2651_v43, %v661_v50 }
 0x470   :  { %v721_v54 = vmul.f32 %v659_v52, %v3065_v28  ;;  %2494 = vmatmul.msk.f32.vlgmr.msrb.gmra.mxu2 %vm66_vm0, %v3133_v21 }
 0x471   :  { %v663_v55 = vmul.f32 0.5, %v662_v53  ;;  %v614_v57 = vpop.xlane.xlu1 %613 }
 0x472   :  { %v628_v58 = vmul.f32 %v614_v57, %v3055_v18  ;;  %v730_v59 = vmul.f32 %v3123_v31, %v721_v54 }
 0x473   :  { %v664_v60 = vsub.f32 1.5, %v663_v55 }
 0x474   :  { %v2653_v61 = vpop.eup %2652  ;;  %v636_v62 = vadd.f32 1e-05, %v628_v58  ;;  %v739_v4 = vadd.f32 %v3127_v36, %v730_v59 }
 0x475   :  { %v665_v63 = vmul.f32 %v2651_v43, %v664_v60  ;;  %v671_v0 = vmul.f32 %v2653_v61, %v635_v45  ;;  %vm677_vm15 = vweird.f32 %v2653_v61 }
 0x476   :  { %2654 = vrsqrt.f32 %v636_v62  ;;  %v3142_v28 = vadd.f32 %v739_v4, %v2831_v5  ;;  %vm678_vm6 = vmor %vm676_vm4, %vm677_vm15  ;;  %vm686_vm8 = vweird.f32 %v636_v62 }
 0x477   :  { %v669_v1 = vsel %vm668_vm14, %v2651_v43, %v665_v63  ;;  %v672_v2 = vmul.f32 %v2653_v61, %v671_v0 }
 0x478   :  { %v722_v3 = vmul.f32 %v669_v1, %v3072_v34  ;;  %2495 = vmatmul.msk.f32.gmra.mxu2 %vm66_vm0, %v3142_v28  ;;  %v58_v1 = vld [vmem:[%s3946_s1 + $0x128] sm:$0xff] }
 0x479   :  { %v673_v8 = vmul.f32 0.5, %v672_v2  ;;  %v617_v9 = vpop.xlane.xlu2 %616  ;;  %v56_v2 = vld [vmem:[%s3946_s1 + $0x118] sm:$0xff] }
 0x47a   :  { %v629_v10 = vmul.f32 %v617_v9, %v3055_v18  ;;  %v731_v15 = vmul.f32 %v3123_v31, %v722_v3  ;;  %v55_v3 = vld [vmem:[%s3946_s1 + $0x110] sm:$0xff]  ;;  %v54_v9 = vld [vmem:[%s3946_s1 + $0x108] sm:$0xff] }
 0x47b   :  { %v674_v16 = vsub.f32 1.5, %v673_v8 }
 0x47c   :  { %v2655_v17 = vpop.eup %2654  ;;  %v637_v19 = vadd.f32 1e-05, %v629_v10  ;;  %v740_v5 = vadd.f32 %v3127_v36, %v731_v15  ;;  %v53_v15 = vld [vmem:[%s3946_s1 + $0x100] sm:$0xff] }
 0x47d   :  { %v675_v20 = vmul.f32 %v2653_v61, %v674_v16  ;;  %v681_v22 = vmul.f32 %v2655_v17, %v636_v62  ;;  %vm687_vm7 = vweird.f32 %v2655_v17 }
 0x47e   :  { %2656 = vrsqrt.f32 %v637_v19  ;;  %v3151_v34 = vadd.f32 %v740_v5, %v2838_v6  ;;  %vm688_vm9 = vmor %vm686_vm8, %vm687_vm7  ;;  %vm696_vm11 = vweird.f32 %v637_v19  ;;  %vm829_vm8 = vcmask 523264  }
 0x47f   :  { %v679_v23 = vsel %vm678_vm6, %v2653_v61, %v675_v20  ;;  %v682_v24 = vmul.f32 %v2655_v17, %v681_v22 }
 0x480   :  { %v723_v25 = vmul.f32 %v679_v23, %v3078_v39  ;;  %2496 = vmatmul.msk.f32.gmra.mxu2 %vm66_vm0, %v3151_v34 }
 0x481   :  { %v683_v26 = vmul.f32 0.5, %v682_v24  ;;  %v620_v29 = vpop.xlane.xlu0 %619 }
 0x482   :  { %v630_v27 = vmul.f32 %v620_v29, %v3055_v18  ;;  %v732_v30 = vmul.f32 %v3123_v31, %v723_v25 }
 0x483   :  { %v684_v32 = vsub.f32 1.5, %v683_v26 }
 0x484   :  { %v2657_v33 = vpop.eup %2656  ;;  %v638_v35 = vadd.f32 1e-05, %v630_v27  ;;  %v741_v6 = vadd.f32 %v3127_v36, %v732_v30  ;;  %v754_v27 = vperm.slane %v3036_v46, 4  ;;  %v2742_v30 = vld [vmem:[%s3945_s0 + $0x38] sm:$0xf]  ;;  %s2428_s0 = sshll.u32 %s3950_s5, 4  ;;  %s2429_s0 = int_to_ptr.hbm [resolvable:$true] %s2428_s0 }
 0x485   :  { %v685_v37 = vmul.f32 %v2655_v17, %v684_v32  ;;  %v691_v38 = vmul.f32 %v2657_v33, %v637_v19  ;;  %vm697_vm10 = vweird.f32 %v2657_v33 }
 0x486   :  { %2658 = vrsqrt.f32 %v638_v35  ;;  %v3160_v39 = vadd.f32 %v741_v6, %v2845_v7  ;;  %vm698_vm12 = vmor %vm696_vm11, %vm697_vm10  ;;  %vm706_vm14 = vweird.f32 %v638_v35 }
 0x487   :  { %v689_v40 = vsel %vm688_vm9, %v2655_v17, %v685_v37  ;;  %v692_v41 = vmul.f32 %v2657_v33, %v691_v38 }
 0x488   :  { %v724_v42 = vmul.f32 %v689_v40, %v3084_v44  ;;  %2497 = vmatmul.msk.f32.gmra.mxu2 %vm66_vm0, %v3160_v39 }
 0x489   :  { %v693_v43 = vmul.f32 0.5, %v692_v41 }
 0x48a   :  { %v733_v45 = vmul.f32 %v3123_v31, %v724_v42 }
 0x48b   :  { %v694_v48 = vsub.f32 1.5, %v693_v43 }
 0x48c   :  { %v2659_v49 = vpop.eup %2658  ;;  %v742_v50 = vadd.f32 %v3127_v36, %v733_v45 }
 0x48d   :  { %v695_v52 = vmul.f32 %v2657_v33, %v694_v48  ;;  %v701_v53 = vmul.f32 %v2659_v49, %v638_v35  ;;  %vm707_vm13 = vweird.f32 %v2659_v49 }
 0x48e   :  { %v3168_v7 = vadd.f32 %v742_v50, %v2864_v12  ;;  %vm708_vm15 = vmor %vm706_vm14, %vm707_vm13 }
 0x48f   :  { %v699_v54 = vsel %vm698_vm12, %v2657_v33, %v695_v52  ;;  %v702_v44 = vmul.f32 %v2659_v49, %v701_v53 }
 0x490   :  { %v725_v55 = vmul.f32 %v699_v54, %v3090_v51  ;;  %2498 = vmatmul.msk.f32.gmra.mxu2 %vm66_vm0, %v3168_v7 }
 0x491   :  { %v703_v57 = vmul.f32 0.5, %v702_v44 }
 0x492   :  { %v734_v58 = vmul.f32 %v3123_v31, %v725_v55 }
 0x493   :  { %v704_v59 = vsub.f32 1.5, %v703_v57 }
 0x494   :  { %v743_v60 = vadd.f32 %v3127_v36, %v734_v58 }
 0x495   :  { %v705_v61 = vmul.f32 %v2659_v49, %v704_v59 }
 0x496   :  { %v3176_v12 = vadd.f32 %v743_v60, %v2873_v13  ;;  %v60_v13 = vld [vmem:[%s3946_s1 + $0x138] sm:$0xff] }
 0x497   :  { %v709_v62 = vsel %vm708_vm15, %v2659_v49, %v705_v61  ;;  %862 = vmatpush.msrb.mxu3 %v60_v13  ;;  %v828_v61 = vperm.slane %v3036_v46, 3 }
 0x498   :  { %v726_v4 = vmul.f32 %v709_v62, %v3096_v56  ;;  %2499 = vmatmul.msk.f32.gmra.mxu2 %vm66_vm0, %v3176_v12  ;;  %v59_v56 = vld [vmem:[%s3946_s1 + $0x130] sm:$0xff] }
 0x499   :  { %863 = vmatpush.msrb.mxu3 %v59_v56 }
 0x49a   :  { %v735_v51 = vmul.f32 %v3123_v31, %v726_v4 }
 0x49b   :  { %864 = vmatpush.msrb.mxu3 %v58_v1 }
 0x49c   :  { %v744_v63 = vadd.f32 %v3127_v36, %v735_v51 }
 0x49e   :  { %v3184_v0 = vadd.f32 %v744_v63, %v2882_v14  ;;  %v57_v14 = vld [vmem:[%s3946_s1 + $0x120] sm:$0xff] }
 0x49f   :  { %865 = vmatpush.msrb.mxu3 %v57_v14 }
 0x4a0   :  { %2500 = vmatmul.msk.f32.gmra.mxu2 %vm66_vm0, %v3184_v0 }
 0x4a1   :  { %866 = vmatpush.msrb.mxu3 %v56_v2 }
 0x4a3   :  { %867 = vmatpush.msrb.mxu3 %v55_v3 }
 0x4a5   :  { %868 = vmatpush.msrb.mxu3 %v54_v9 }
 0x4a7   :  { %869 = vmatpush.msrb.mxu3 %v53_v15 }
 0x4d4   :  { %v623_v8 = vpop.xlane.xlu1 %622 }
 0x4d5   :  { %v631_v10 = vmul.f32 %v623_v8, %v3055_v18 }
 0x4d7   :  { %v639_v16 = vadd.f32 1e-05, %v631_v10 }
 0x4d9   :  { %2660 = vrsqrt.f32 %v639_v16  ;;  %vm716_vm6 = vweird.f32 %v639_v16 }
 0x4df   :  { %v2661_v17 = vpop.eup %2660 }
 0x4e0   :  { %v711_v19 = vmul.f32 %v2661_v17, %v639_v16  ;;  %vm717_vm4 = vweird.f32 %v2661_v17 }
 0x4e1   :  { %vm718_vm7 = vmor %vm716_vm6, %vm717_vm4 }
 0x4e2   :  { %v712_v5 = vmul.f32 %v2661_v17, %v711_v19 }
 0x4e4   :  { %v713_v20 = vmul.f32 0.5, %v712_v5 }
 0x4e6   :  { %v714_v22 = vsub.f32 1.5, %v713_v20 }
 0x4e8   :  { %v715_v23 = vmul.f32 %v2661_v17, %v714_v22 }
 0x4ea   :  { %v719_v24 = vsel %vm718_vm7, %v2661_v17, %v715_v23 }
 0x4eb   :  { %v727_v25 = vmul.f32 %v719_v24, %v3116_v11 }
 0x4ed   :  { %v736_v26 = vmul.f32 %v3123_v31, %v727_v25 }
 0x4ef   :  { %v745_v29 = vadd.f32 %v3127_v36, %v736_v26 }
 0x4f1   :  { %v3220_v32 = vadd.f32 %v2742_v30, %v745_v29 }
 0x4f3   :  { %v796_v33 = vpop.f32.mrf.mxu2  ;;  %2501 = vmatmul.msk.f32.gmra.mxu2 %vm66_vm0, %v3220_v32 }
 0x4f4   :  { %v797_v35 = vadd.f32 %v796_v33, %v754_v27 }
 0x4f6   :  { %v820_v6 = vmax.f32 %v797_v35, 0.0 }
 0x4f8   :  { %2502 = vmatmul.msk.f32.vlgmr.msrb.gmra.mxu3 %vm829_vm8, %v820_v6 }
 0x4fb   :  { %v799_v11 = vpop.f32.mrf.mxu2 }
 0x4fc   :  { %v800_v37 = vadd.f32 %v799_v11, %v754_v27 }
 0x4fe   :  { %v821_v38 = vmax.f32 %v800_v37, 0.0 }
 0x500   :  { %2503 = vmatmul.msk.f32.gmra.mxu3 %vm829_vm8, %v821_v38 }
 0x503   :  { %v802_v40 = vpop.f32.mrf.mxu2 }
 0x504   :  { %v803_v41 = vadd.f32 %v802_v40, %v754_v27 }
 0x506   :  { %v822_v42 = vmax.f32 %v803_v41, 0.0 }
 0x508   :  { %2504 = vmatmul.msk.f32.gmra.mxu3 %vm829_vm8, %v822_v42 }
 0x50b   :  { %v805_v43 = vpop.f32.mrf.mxu2 }
 0x50c   :  { %v806_v45 = vadd.f32 %v805_v43, %v754_v27 }
 0x50e   :  { %v823_v48 = vmax.f32 %v806_v45, 0.0 }
 0x510   :  { %2505 = vmatmul.msk.f32.gmra.mxu3 %vm829_vm8, %v823_v48 }
 0x513   :  { %v808_v49 = vpop.f32.mrf.mxu2 }
 0x514   :  { %v809_v50 = vadd.f32 %v808_v49, %v754_v27 }
 0x516   :  { %v824_v52 = vmax.f32 %v809_v50, 0.0 }
 0x518   :  { %2506 = vmatmul.msk.f32.gmra.mxu3 %vm829_vm8, %v824_v52 }
 0x51b   :  { %v811_v53 = vpop.f32.mrf.mxu2 }
 0x51c   :  { %v812_v54 = vadd.f32 %v811_v53, %v754_v27 }
 0x51e   :  { %v825_v44 = vmax.f32 %v812_v54, 0.0 }
 0x520   :  { %2507 = vmatmul.msk.f32.gmra.mxu3 %vm829_vm8, %v825_v44 }
 0x523   :  { %v814_v55 = vpop.f32.mrf.mxu2 }
 0x524   :  { %v815_v57 = vadd.f32 %v814_v55, %v754_v27 }
 0x526   :  { %v826_v58 = vmax.f32 %v815_v57, 0.0 }
 0x528   :  { %2508 = vmatmul.msk.f32.gmra.mxu3 %vm829_vm8, %v826_v58 }
 0x576   :  { %v817_v59 = vpop.f32.mrf.mxu2 }
 0x577   :  { %v818_v60 = vadd.f32 %v817_v59, %v754_v27 }
 0x579   :  { %v827_v62 = vmax.f32 %v818_v60, 0.0 }
 0x57b   :  { %v871_v4 = vpop.f32.mrf.mxu3  ;;  %2509 = vmatmul.msk.f32.gmra.mxu3 %vm829_vm8, %v827_v62 }
 0x57c   :  { %v872_v51 = vadd.f32 %v871_v4, %v828_v61 }
 0x57e   :  { %2510 = vmatmul.msk.f32.vlgmr.msra.gmra.mxu0 %vm66_vm0, %v872_v51 }
 0x583   :  { %v874_v63 = vpop.f32.mrf.mxu3 }
 0x584   :  { %v875_v13 = vadd.f32 %v874_v63, %v828_v61 }
 0x586   :  { %2511 = vmatmul.msk.f32.gmra.mxu0 %vm66_vm0, %v875_v13 }
 0x58b   :  { %v877_v56 = vpop.f32.mrf.mxu3 }
 0x58c   :  { %v878_v1 = vadd.f32 %v877_v56, %v828_v61 }
 0x58e   :  { %2512 = vmatmul.msk.f32.gmra.mxu0 %vm66_vm0, %v878_v1 }
 0x593   :  { %v880_v14 = vpop.f32.mrf.mxu3 }
 0x594   :  { %v881_v2 = vadd.f32 %v880_v14, %v828_v61 }
 0x596   :  { %2513 = vmatmul.msk.f32.gmra.mxu0 %vm66_vm0, %v881_v2 }
 0x59b   :  { %v883_v46 = vpop.f32.mrf.mxu3 }
 0x59c   :  { %v884_v3 = vadd.f32 %v883_v46, %v828_v61 }
 0x59e   :  { %2514 = vmatmul.msk.f32.gmra.mxu0 %vm66_vm0, %v884_v3 }
 0x5a3   :  { %v886_v8 = vpop.f32.mrf.mxu3 }
 0x5a4   :  { %v887_v9 = vadd.f32 %v886_v8, %v828_v61 }
 0x5a6   :  { %2515 = vmatmul.msk.f32.gmra.mxu0 %vm66_vm0, %v887_v9 }
 0x5ab   :  { %v889_v10 = vpop.f32.mrf.mxu3 }
 0x5ac   :  { %v890_v15 = vadd.f32 %v889_v10, %v828_v61 }
 0x5ae   :  { %2516 = vmatmul.msk.f32.gmra.mxu0 %vm66_vm0, %v890_v15 }
 0x5fb   :  { %v936_v16 = vpop.f32.mrf.mxu0 }
 0x5fc   :  { %v937_v17 = vadd.f32 %v936_v16, %v3039_v47 }
 0x5fe   :  { %v892_v19 = vpop.f32.mrf.mxu3  ;;  %v960_v5 = vsel %vm66_vm0, %v937_v17, 0.0 }
 0x5ff   :  { %v893_v20 = vadd.f32 %v892_v19, %v828_v61  ;;  %961 = vadd.xlane.f32.xlu2 %v960_v5 }
 0x601   :  { %2517 = vmatmul.msk.f32.gmra.mxu0 %vm66_vm0, %v893_v20 }
 0x603   :  { %v939_v22 = vpop.f32.mrf.mxu0 }
 0x604   :  { %v940_v23 = vadd.f32 %v939_v22, %v3039_v47 }
 0x606   :  { %v963_v24 = vsel %vm66_vm0, %v940_v23, 0.0 }
 0x607   :  { %964 = vadd.xlane.f32.xlu0 %v963_v24 }
 0x60b   :  { %v942_v25 = vpop.f32.mrf.mxu0 }
 0x60c   :  { %v943_v26 = vadd.f32 %v942_v25, %v3039_v47  ;;  %v1163_v25 = vld [vmem:[%s3946_s1 + $0x98] sm:$0xff] }
 0x60d   :  { %1225 = vmatpush.msra.mxu1 %v1163_v25 }
 0x60e   :  { %v966_v29 = vsel %vm66_vm0, %v943_v26, 0.0 }
 0x60f   :  { %967 = vadd.xlane.f32.xlu1 %v966_v29  ;;  %v1171_v29 = vld [vmem:[%s3946_s1 + $0xd8] sm:$0xff] }
 0x610   :  { %1307 = vmatpush.msra.mxu3 %v1171_v29 }
 0x613   :  { %v945_v27 = vpop.f32.mrf.mxu0 }
 0x614   :  { %v946_v30 = vadd.f32 %v945_v27, %v3039_v47  ;;  %v1162_v27 = vld [vmem:[%s3946_s1 + $0x90] sm:$0xff] }
 0x615   :  { %1226 = vmatpush.msra.mxu1 %v1162_v27 }
 0x616   :  { %v969_v33 = vsel %vm66_vm0, %v946_v30, 0.0 }
 0x617   :  { %970 = vadd.xlane.f32.xlu2 %v969_v33  ;;  %v1170_v33 = vld [vmem:[%s3946_s1 + $0xd0] sm:$0xff] }
 0x618   :  { %1308 = vmatpush.msra.mxu3 %v1170_v33 }
 0x61b   :  { %v948_v35 = vpop.f32.mrf.mxu0 }
 0x61c   :  { %v949_v6 = vadd.f32 %v948_v35, %v3039_v47  ;;  %v1161_v35 = vld [vmem:[%s3946_s1 + $0x88] sm:$0xff] }
 0x61d   :  { %1227 = vmatpush.msra.mxu1 %v1161_v35 }
 0x61e   :  { %v972_v11 = vsel %vm66_vm0, %v949_v6, 0.0 }
 0x61f   :  { %973 = vadd.xlane.f32.xlu0 %v972_v11  ;;  %v1169_v11 = vld [vmem:[%s3946_s1 + $0xc8] sm:$0xff] }
 0x620   :  { %1309 = vmatpush.msra.mxu3 %v1169_v11 }
 0x623   :  { %v951_v37 = vpop.f32.mrf.mxu0 }
 0x624   :  { %v952_v38 = vadd.f32 %v951_v37, %v3039_v47  ;;  %v1160_v37 = vld [vmem:[%s3946_s1 + $0x80] sm:$0xff] }
 0x625   :  { %1228 = vmatpush.msra.mxu1 %v1160_v37 }
 0x626   :  { %v975_v40 = vsel %vm66_vm0, %v952_v38, 0.0 }
 0x627   :  { %976 = vadd.xlane.f32.xlu1 %v975_v40  ;;  %v1168_v40 = vld [vmem:[%s3946_s1 + $0xc0] sm:$0xff] }
 0x628   :  { %1310 = vmatpush.msra.mxu3 %v1168_v40 }
 0x62b   :  { %v954_v41 = vpop.f32.mrf.mxu0 }
 0x62c   :  { %v955_v42 = vadd.f32 %v954_v41, %v3039_v47 }
 0x62e   :  { %v978_v43 = vsel %vm66_vm0, %v955_v42, 0.0 }
 0x62f   :  { %979 = vadd.xlane.f32.xlu0 %v978_v43 }
 0x672   :  { %v962_v45 = vpop.xlane.xlu2 %961 }
 0x673   :  { %v984_v48 = vmul.f32 %v962_v45, %v3055_v18 }
 0x675   :  { %v3256_v49 = vsub.f32 %v937_v17, %v984_v48 }
 0x677   :  { %v1000_v50 = vmul.f32 %v3256_v49, %v3256_v49 }
 0x679   :  { %v1008_v52 = vsel %vm66_vm0, %v1000_v50, 0.0 }
 0x67a   :  { %v965_v53 = vpop.xlane.xlu0 %964  ;;  %1009 = vadd.xlane.f32.xlu2 %v1008_v52 }
 0x67b   :  { %v985_v54 = vmul.f32 %v965_v53, %v3055_v18 }
 0x67d   :  { %v3262_v44 = vsub.f32 %v940_v23, %v985_v54 }
 0x67e   :  { %v957_v55 = vpop.f32.mrf.mxu0 }
 0x67f   :  { %v3265_v57 = vadd.f32 %v957_v55, %v3039_v47  ;;  %v1001_v58 = vmul.f32 %v3262_v44, %v3262_v44 }
 0x681   :  { %v1011_v59 = vsel %vm66_vm0, %v1001_v58, 0.0  ;;  %v981_v60 = vsel %vm565_vm5, %v3265_v57, 0.0 }
 0x682   :  { %v968_v61 = vpop.xlane.xlu1 %967  ;;  %1012 = vadd.xlane.f32.xlu1 %v1011_v59  ;;  %982 = vadd.xlane.f32.xlu2 %v981_v60 }
 0x683   :  { %v986_v62 = vmul.f32 %v968_v61, %v3055_v18 }
 0x685   :  { %v3273_v4 = vsub.f32 %v943_v26, %v986_v62  ;;  %v1167_v26 = vld [vmem:[%s3946_s1 + $0xb8] sm:$0xff] }
 0x686   :  { %1266 = vmatpush.msra.mxu2 %v1167_v26 }
 0x687   :  { %v1002_v51 = vmul.f32 %v3273_v4, %v3273_v4 }
 0x689   :  { %v1014_v47 = vsel %vm66_vm0, %v1002_v51, 0.0 }
 0x68a   :  { %1015 = vadd.xlane.f32.xlu0 %v1014_v47  ;;  %v971_v63 = vpop.xlane.xlu2 %970 }
 0x68b   :  { %v987_v13 = vmul.f32 %v971_v63, %v3055_v18 }
 0x68d   :  { %v3279_v56 = vsub.f32 %v946_v30, %v987_v13  ;;  %v1166_v30 = vld [vmem:[%s3946_s1 + $0xb0] sm:$0xff] }
 0x68e   :  { %1267 = vmatpush.msra.mxu2 %v1166_v30 }
 0x68f   :  { %v1003_v1 = vmul.f32 %v3279_v56, %v3279_v56 }
 0x691   :  { %v1017_v14 = vsel %vm66_vm0, %v1003_v1, 0.0 }
 0x692   :  { %v974_v2 = vpop.xlane.xlu0 %973  ;;  %1018 = vadd.xlane.f32.xlu1 %v1017_v14 }
 0x693   :  { %v988_v46 = vmul.f32 %v974_v2, %v3055_v18 }
 0x695   :  { %v3285_v3 = vsub.f32 %v949_v6, %v988_v46  ;;  %v1165_v6 = vld [vmem:[%s3946_s1 + $0xa8] sm:$0xff] }
 0x696   :  { %1268 = vmatpush.msra.mxu2 %v1165_v6 }
 0x697   :  { %v1004_v8 = vmul.f32 %v3285_v3, %v3285_v3 }
 0x699   :  { %v1020_v9 = vsel %vm66_vm0, %v1004_v8, 0.0 }
 0x69a   :  { %v977_v10 = vpop.xlane.xlu1 %976  ;;  %1021 = vadd.xlane.f32.xlu2 %v1020_v9 }
 0x69b   :  { %v989_v15 = vmul.f32 %v977_v10, %v3055_v18 }
 0x69d   :  { %v3291_v16 = vsub.f32 %v952_v38, %v989_v15  ;;  %v1164_v38 = vld [vmem:[%s3946_s1 + $0xa0] sm:$0xff] }
 0x69e   :  { %1269 = vmatpush.msra.mxu2 %v1164_v38 }
 0x69f   :  { %v1005_v17 = vmul.f32 %v3291_v16, %v3291_v16 }
 0x6a1   :  { %v1023_v19 = vsel %vm66_vm0, %v1005_v17, 0.0 }
 0x6a2   :  { %v980_v5 = vpop.xlane.xlu0 %979  ;;  %1024 = vadd.xlane.f32.xlu0 %v1023_v19 }
 0x6a3   :  { %v990_v20 = vmul.f32 %v980_v5, %v3055_v18 }
 0x6a5   :  { %v3297_v22 = vsub.f32 %v955_v42, %v990_v20 }
 0x6a7   :  { %v1006_v23 = vmul.f32 %v3297_v22, %v3297_v22 }
 0x6a9   :  { %v1026_v24 = vsel %vm66_vm0, %v1006_v23, 0.0 }
 0x6aa   :  { %1027 = vadd.xlane.f32.xlu1 %v1026_v24 }
 0x6ed   :  { %v1010_v41 = vpop.xlane.xlu2 %1009 }
 0x6ee   :  { %v1032_v42 = vmul.f32 %v1010_v41, %v3055_v18 }
 0x6f0   :  { %v1040_v43 = vadd.f32 1e-05, %v1032_v42 }
 0x6f2   :  { %2662 = vrsqrt.f32 %v1040_v43  ;;  %vm1054_vm10 = vweird.f32 %v1040_v43 }
 0x6f5   :  { %v1013_v45 = vpop.xlane.xlu1 %1012  ;;  %v983_v48 = vpop.xlane.xlu2 %982 }
 0x6f6   :  { %v1033_v50 = vmul.f32 %v1013_v45, %v3055_v18  ;;  %v991_v52 = vmul.f32 %v983_v48, %v3055_v18 }
 0x6f8   :  { %v2663_v53 = vpop.eup %2662  ;;  %v1041_v54 = vadd.f32 1e-05, %v1033_v50  ;;  %v3342_v55 = vsub.f32 %v3265_v57, %v991_v52 }
 0x6f9   :  { %v1049_v58 = vmul.f32 %v2663_v53, %v1040_v43  ;;  %vm1055_vm9 = vweird.f32 %v2663_v53 }
 0x6fa   :  { %2664 = vrsqrt.f32 %v1041_v54  ;;  %v1007_v59 = vmul.f32 %v3342_v55, %v3342_v55  ;;  %vm1056_vm11 = vmor %vm1054_vm10, %vm1055_vm9  ;;  %vm1064_vm13 = vweird.f32 %v1041_v54 }
 0x6fb   :  { %v1050_v60 = vmul.f32 %v2663_v53, %v1049_v58 }
 0x6fc   :  { %v1029_v61 = vsel %vm565_vm5, %v1007_v59, 0.0 }
 0x6fd   :  { %v1051_v62 = vmul.f32 0.5, %v1050_v60  ;;  %v1016_v51 = vpop.xlane.xlu0 %1015  ;;  %1030 = vadd.xlane.f32.xlu2 %v1029_v61 }
 0x6fe   :  { %v1034_v47 = vmul.f32 %v1016_v51, %v3055_v18 }
 0x6ff   :  { %v1052_v63 = vsub.f32 1.5, %v1051_v62 }
 0x700   :  { %v2665_v13 = vpop.eup %2664  ;;  %v1042_v1 = vadd.f32 1e-05, %v1034_v47 }
 0x701   :  { %v1053_v14 = vmul.f32 %v2663_v53, %v1052_v63  ;;  %v1059_v57 = vmul.f32 %v2665_v13, %v1041_v54  ;;  %vm1065_vm12 = vweird.f32 %v2665_v13 }
 0x702   :  { %2666 = vrsqrt.f32 %v1042_v1  ;;  %vm1066_vm14 = vmor %vm1064_vm13, %vm1065_vm12  ;;  %vm1074_vm4 = vweird.f32 %v1042_v1 }
 0x703   :  { %v1057_v2 = vsel %vm1056_vm11, %v2663_v53, %v1053_v14  ;;  %v1060_v46 = vmul.f32 %v2665_v13, %v1059_v57 }
 0x704   :  { %v1128_v8 = vmul.f32 %v1057_v2, %v3256_v49 }
 0x705   :  { %v1061_v9 = vmul.f32 0.5, %v1060_v46  ;;  %v1019_v10 = vpop.xlane.xlu1 %1018 }
 0x706   :  { %v1136_v15 = vmul.f32 %v1128_v8, %v3123_v31  ;;  %v1035_v17 = vmul.f32 %v1019_v10, %v3055_v18 }
 0x707   :  { %v1062_v19 = vsub.f32 1.5, %v1061_v9 }
 0x708   :  { %v2667_v5 = vpop.eup %2666  ;;  %v1144_v20 = vadd.f32 %v1136_v15, %v3127_v36  ;;  %v1043_v23 = vadd.f32 1e-05, %v1035_v17 }
 0x709   :  { %v1063_v24 = vmul.f32 %v2665_v13, %v1062_v19  ;;  %v1069_v25 = vmul.f32 %v2667_v5, %v1042_v1  ;;  %vm1075_vm15 = vweird.f32 %v2667_v5 }
 0x70a   :  { %2668 = vrsqrt.f32 %v1043_v23  ;;  %v3353_v26 = vadd.f32 %v1144_v20, %v3133_v21  ;;  %vm1076_vm6 = vmor %vm1074_vm4, %vm1075_vm15  ;;  %vm1084_vm9 = vweird.f32 %v1043_v23 }
 0x70b   :  { %v1067_v49 = vsel %vm1066_vm14, %v2665_v13, %v1063_v24  ;;  %v1070_v29 = vmul.f32 %v2667_v5, %v1069_v25 }
 0x70c   :  { %v1129_v27 = vmul.f32 %v1067_v49, %v3262_v44  ;;  %2518 = vmatmul.msk.f32.vlgmr.msra.gmra.mxu1 %vm66_vm0, %v3353_v26  ;;  %2526 = vmatmul.msk.f32.vlgmr.msra.gmra.mxu2 %vm66_vm0, %v3353_v26 }
 0x70d   :  { %v1071_v30 = vmul.f32 0.5, %v1070_v29  ;;  %2534 = vmatmul.msk.f32.vlgmr.msra.gmra.mxu3 %vm66_vm0, %v3353_v26  ;;  %v1022_v33 = vpop.xlane.xlu2 %1021 }
 0x70e   :  { %v1036_v35 = vmul.f32 %v1022_v33, %v3055_v18  ;;  %v1137_v21 = vmul.f32 %v1129_v27, %v3123_v31 }
 0x70f   :  { %v1072_v6 = vsub.f32 1.5, %v1071_v30 }
 0x710   :  { %v2669_v11 = vpop.eup %2668  ;;  %v1044_v37 = vadd.f32 1e-05, %v1036_v35  ;;  %v1145_v44 = vadd.f32 %v1137_v21, %v3127_v36 }
 0x711   :  { %v1073_v38 = vmul.f32 %v2667_v5, %v1072_v6  ;;  %v1079_v40 = vmul.f32 %v2669_v11, %v1043_v23  ;;  %vm1085_vm7 = vweird.f32 %v2669_v11 }
 0x712   :  { %2670 = vrsqrt.f32 %v1044_v37  ;;  %v3366_v41 = vadd.f32 %v1145_v44, %v3142_v28  ;;  %vm1086_vm10 = vmor %vm1084_vm9, %vm1085_vm7  ;;  %vm1094_vm12 = vweird.f32 %v1044_v37 }
 0x713   :  { %v1077_v42 = vsel %vm1076_vm6, %v2667_v5, %v1073_v38  ;;  %v1080_v43 = vmul.f32 %v2669_v11, %v1079_v40 }
 0x714   :  { %v1130_v45 = vmul.f32 %v1077_v42, %v3273_v4  ;;  %2519 = vmatmul.msk.f32.gmra.mxu1 %vm66_vm0, %v3366_v41  ;;  %2527 = vmatmul.msk.f32.gmra.mxu2 %vm66_vm0, %v3366_v41 }
 0x715   :  { %v1081_v48 = vmul.f32 0.5, %v1080_v43  ;;  %2535 = vmatmul.msk.f32.gmra.mxu3 %vm66_vm0, %v3366_v41  ;;  %v1025_v50 = vpop.xlane.xlu0 %1024 }
 0x716   :  { %v1037_v52 = vmul.f32 %v1025_v50, %v3055_v18  ;;  %v1138_v28 = vmul.f32 %v1130_v45, %v3123_v31 }
 0x717   :  { %v1082_v53 = vsub.f32 1.5, %v1081_v48 }
 0x718   :  { %v2671_v54 = vpop.eup %2670  ;;  %v1045_v58 = vadd.f32 1e-05, %v1037_v52  ;;  %v1146_v4 = vadd.f32 %v1138_v28, %v3127_v36 }
 0x719   :  { %v1083_v59 = vmul.f32 %v2669_v11, %v1082_v53  ;;  %v1089_v60 = vmul.f32 %v2671_v54, %v1044_v37  ;;  %vm1095_vm11 = vweird.f32 %v2671_v54 }
 0x71a   :  { %2672 = vrsqrt.f32 %v1045_v58  ;;  %v3379_v61 = vadd.f32 %v1146_v4, %v3151_v34  ;;  %vm1096_vm13 = vmor %vm1094_vm12, %vm1095_vm11  ;;  %vm1104_vm15 = vweird.f32 %v1045_v58 }
 0x71b   :  { %v1087_v62 = vsel %vm1086_vm10, %v2669_v11, %v1083_v59  ;;  %v1090_v51 = vmul.f32 %v2671_v54, %v1089_v60 }
 0x71c   :  { %v1131_v47 = vmul.f32 %v1087_v62, %v3279_v56  ;;  %2520 = vmatmul.msk.f32.gmra.mxu1 %vm66_vm0, %v3379_v61  ;;  %2528 = vmatmul.msk.f32.gmra.mxu2 %vm66_vm0, %v3379_v61 }
 0x71d   :  { %v1091_v63 = vmul.f32 0.5, %v1090_v51  ;;  %2536 = vmatmul.msk.f32.gmra.mxu3 %vm66_vm0, %v3379_v61  ;;  %v1028_v13 = vpop.xlane.xlu1 %1027 }
 0x71e   :  { %v1038_v1 = vmul.f32 %v1028_v13, %v3055_v18  ;;  %v1139_v34 = vmul.f32 %v1131_v47, %v3123_v31 }
 0x71f   :  { %v1092_v14 = vsub.f32 1.5, %v1091_v63 }
 0x720   :  { %v2673_v57 = vpop.eup %2672  ;;  %v1046_v2 = vadd.f32 1e-05, %v1038_v1  ;;  %v1147_v56 = vadd.f32 %v1139_v34, %v3127_v36 }
 0x721   :  { %v1093_v46 = vmul.f32 %v2671_v54, %v1092_v14  ;;  %v1099_v8 = vmul.f32 %v2673_v57, %v1045_v58  ;;  %vm1105_vm14 = vweird.f32 %v2673_v57 }
 0x722   :  { %2674 = vrsqrt.f32 %v1046_v2  ;;  %v3392_v9 = vadd.f32 %v1147_v56, %v3160_v39  ;;  %vm1106_vm4 = vmor %vm1104_vm15, %vm1105_vm14  ;;  %vm1114_vm7 = vweird.f32 %v1046_v2 }
 0x723   :  { %v1097_v10 = vsel %vm1096_vm13, %v2671_v54, %v1093_v46  ;;  %v1100_v15 = vmul.f32 %v2673_v57, %v1099_v8 }
 0x724   :  { %v1132_v17 = vmul.f32 %v1097_v10, %v3285_v3  ;;  %2521 = vmatmul.msk.f32.gmra.mxu1 %vm66_vm0, %v3392_v9  ;;  %2529 = vmatmul.msk.f32.gmra.mxu2 %vm66_vm0, %v3392_v9 }
 0x725   :  { %v1101_v19 = vmul.f32 0.5, %v1100_v15  ;;  %2537 = vmatmul.msk.f32.gmra.mxu3 %vm66_vm0, %v3392_v9 }
 0x726   :  { %v1140_v5 = vmul.f32 %v1132_v17, %v3123_v31 }
 0x727   :  { %v1102_v20 = vsub.f32 1.5, %v1101_v19 }
 0x728   :  { %v2675_v39 = vpop.eup %2674  ;;  %v1148_v23 = vadd.f32 %v1140_v5, %v3127_v36 }
 0x729   :  { %v1103_v24 = vmul.f32 %v2673_v57, %v1102_v20  ;;  %v1109_v3 = vmul.f32 %v2675_v39, %v1046_v2  ;;  %vm1115_vm6 = vweird.f32 %v2675_v39 }
 0x72a   :  { %v3404_v25 = vadd.f32 %v1148_v23, %v3168_v7  ;;  %vm1116_vm9 = vmor %vm1114_vm7, %vm1115_vm6 }
 0x72b   :  { %v1107_v49 = vsel %vm1106_vm4, %v2673_v57, %v1103_v24  ;;  %v1110_v29 = vmul.f32 %v2675_v39, %v1109_v3 }
 0x72c   :  { %v1133_v27 = vmul.f32 %v1107_v49, %v3291_v16  ;;  %2522 = vmatmul.msk.f32.gmra.mxu1 %vm66_vm0, %v3404_v25  ;;  %2530 = vmatmul.msk.f32.gmra.mxu2 %vm66_vm0, %v3404_v25 }
 0x72d   :  { %v1111_v30 = vmul.f32 0.5, %v1110_v29  ;;  %2538 = vmatmul.msk.f32.gmra.mxu3 %vm66_vm0, %v3404_v25  ;;  %v2744_v29 = vld [vmem:[%s3948_s3 + $0x70] sm:$0xff] }
 0x72e   :  { %v1141_v33 = vmul.f32 %v1133_v27, %v3123_v31 }
 0x72f   :  { %v1112_v35 = vsub.f32 1.5, %v1111_v30 }
 0x730   :  { %v1149_v7 = vadd.f32 %v1141_v33, %v3127_v36 }
 0x731   :  { %v1113_v21 = vmul.f32 %v2675_v39, %v1112_v35 }
 0x732   :  { %v3416_v16 = vadd.f32 %v1149_v7, %v3176_v12  ;;  %v2745_v7 = vld [vmem:[%s3948_s3 + $0x78] sm:$0xff] }
 0x733   :  { %v1117_v6 = vsel %vm1116_vm9, %v2675_v39, %v1113_v21  ;;  %v2743_v39 = vld [vmem:[%s3948_s3 + $0x68] sm:$0xff] }
 0x734   :  { %v1134_v11 = vmul.f32 %v1117_v6, %v3297_v22  ;;  %2523 = vmatmul.msk.f32.gmra.mxu1 %vm66_vm0, %v3416_v16  ;;  %2531 = vmatmul.msk.f32.gmra.mxu2 %vm66_vm0, %v3416_v16 }
 0x735   :  { %2539 = vmatmul.msk.f32.gmra.mxu3 %vm66_vm0, %v3416_v16 }
 0x736   :  { %v1142_v37 = vmul.f32 %v1134_v11, %v3123_v31 }
 0x738   :  { %v1150_v44 = vadd.f32 %v1142_v37, %v3127_v36 }
 0x73a   :  { %v3428_v38 = vadd.f32 %v1150_v44, %v3184_v0  ;;  %v2746_v44 = vld [vmem:[%s3948_s3 + $0x80] sm:$0xff] }
 0x73c   :  { %2524 = vmatmul.msk.f32.gmra.mxu1 %vm66_vm0, %v3428_v38  ;;  %2532 = vmatmul.msk.f32.gmra.mxu2 %vm66_vm0, %v3428_v38 }
 0x73d   :  { %2540 = vmatmul.msk.f32.gmra.mxu3 %vm66_vm0, %v3428_v38 }
 0x770   :  { %v1031_v12 = vpop.xlane.xlu2 %1030 }
 0x771   :  { %v1039_v22 = vmul.f32 %v1031_v12, %v3055_v18 }
 0x773   :  { %v1047_v40 = vadd.f32 1e-05, %v1039_v22 }
 0x775   :  { %2676 = vrsqrt.f32 %v1047_v40  ;;  %vm1124_vm11 = vweird.f32 %v1047_v40 }
 0x77b   :  { %v2677_v42 = vpop.eup %2676 }
 0x77c   :  { %v1119_v43 = vmul.f32 %v2677_v42, %v1047_v40  ;;  %vm1125_vm10 = vweird.f32 %v2677_v42 }
 0x77d   :  { %vm1126_vm12 = vmor %vm1124_vm11, %vm1125_vm10 }
 0x77e   :  { %v1120_v45 = vmul.f32 %v2677_v42, %v1119_v43  ;;  %v2747_v43 = vld [vmem:[%s3948_s3 + $0x88] sm:$0xff] }
 0x780   :  { %v1121_v48 = vmul.f32 0.5, %v1120_v45 }
 0x782   :  { %v1122_v0 = vsub.f32 1.5, %v1121_v48 }
 0x784   :  { %v1123_v50 = vmul.f32 %v2677_v42, %v1122_v0 }
 0x786   :  { %v1127_v52 = vsel %vm1126_vm12, %v2677_v42, %v1123_v50 }
 0x787   :  { %v1135_v28 = vmul.f32 %v1127_v52, %v3342_v55  ;;  %v2748_v52 = vld [vmem:[%s3948_s3 + $0x90] sm:$0xff] }
 0x789   :  { %v1143_v53 = vmul.f32 %v1135_v28, %v3123_v31  ;;  %v1230_v2 = vpop.f32.mrf.mxu1 }
 0x78b   :  { %v1151_v54 = vadd.f32 %v1143_v53, %v3127_v36 }
 0x78d   :  { %v3441_v58 = vadd.f32 %v1151_v54, %v3220_v32 }
 0x78f   :  { %2525 = vmatmul.msk.f32.gmra.mxu1 %vm66_vm0, %v3441_v58  ;;  %2533 = vmatmul.msk.f32.gmra.mxu2 %vm66_vm0, %v3441_v58  ;;  %v1271_v4 = vpop.f32.mrf.mxu2 }
 0x790   :  { %2541 = vmatmul.msk.f32.gmra.mxu3 %vm66_vm0, %v3441_v58  ;;  %v1312_v59 = vpop.f32.mrf.mxu3 }
 0x791   :  { %v1233_v56 = vpop.f32.mrf.mxu1 }
 0x797   :  { %v1274_v60 = vpop.f32.mrf.mxu2 }
 0x798   :  { %v1315_v55 = vpop.f32.mrf.mxu3 }
 0x799   :  { %v1236_v46 = vpop.f32.mrf.mxu1 }
 0x79f   :  { %v1277_v62 = vpop.f32.mrf.mxu2 }
 0x7a0   :  { %v1318_v31 = vpop.f32.mrf.mxu3 }
 0x7a1   :  { %v1239_v8 = vpop.f32.mrf.mxu1 }
 0x7a7   :  { %v1280_v51 = vpop.f32.mrf.mxu2 }
 0x7a8   :  { %v1321_v36 = vpop.f32.mrf.mxu3 }
 0x7a9   :  { %v1242_v10 = vpop.f32.mrf.mxu1 }
 0x7af   :  { %v1283_v47 = vpop.f32.mrf.mxu2 }
 0x7b0   :  { %v1324_v32 = vpop.f32.mrf.mxu3 }
 0x7b1   :  { %v1245_v15 = vpop.f32.mrf.mxu1 }
 0x7b7   :  { %v1286_v63 = vpop.f32.mrf.mxu2 }
 0x7b8   :  { %v1327_v13 = vpop.f32.mrf.mxu3 }
 0x7b9   :  { %v1248_v17 = vpop.f32.mrf.mxu1 }
 0x7bf   :  { %v1289_v1 = vpop.f32.mrf.mxu2 }
 0x7c0   :  { %v1330_v34 = vpop.f32.mrf.mxu3 }
 0x80c   :  { %v1251_v19 = vpop.f32.mrf.mxu1 }
 0x812   :  { %v1292_v14 = vpop.f32.mrf.mxu2 }
 0x813   :  { %v1333_v57 = vpop.f32.mrf.mxu3  ;;  %2542 = vmatpush.xpose.msk.msrb.mxu0 %vm66_vm0, %v1292_v14 }
 0x814   :  { %2558 = vmatpush.msk.msrb.mxu1 %vm433_vm3, %v1333_v57 }
 0x816   :  { %1565 = vmatpush.msrb.mxu1 %v1330_v34 }
 0x817   :  { %2543 = vmatpush.xpose.msk.msrb.mxu0 %vm66_vm0, %v1289_v1 }
 0x818   :  { %1566 = vmatpush.msrb.mxu1 %v1327_v13 }
 0x81a   :  { %1567 = vmatpush.msrb.mxu1 %v1324_v32 }
 0x81b   :  { %2544 = vmatpush.xpose.msk.msrb.mxu0 %vm66_vm0, %v1286_v63 }
 0x81c   :  { %1568 = vmatpush.msrb.mxu1 %v1321_v36 }
 0x81e   :  { %1569 = vmatpush.msrb.mxu1 %v1318_v31 }
 0x81f   :  { %2545 = vmatpush.xpose.msk.msrb.mxu0 %vm66_vm0, %v1283_v47 }
 0x820   :  { %1570 = vmatpush.msrb.mxu1 %v1315_v55 }
 0x822   :  { %1571 = vmatpush.msrb.mxu1 %v1312_v59  ;;  %v2749_v59 = vld [vmem:[%s3948_s3 + $0x98] sm:$0xff] }
 0x823   :  { %2546 = vmatpush.xpose.msk.msrb.mxu0 %vm66_vm0, %v1280_v51  ;;  %v2750_v51 = vld [vmem:[%s3948_s3 + $0xa0] sm:$0xf] }
 0x827   :  { %2547 = vmatpush.xpose.msk.msrb.mxu0 %vm66_vm0, %v1277_v62 }
 0x82b   :  { %2548 = vmatpush.xpose.msk.msrb.mxu0 %vm66_vm0, %v1274_v60 }
 0x82f   :  { %2549 = vmatpush.xpose.msk.msrb.mxu0 %vm66_vm0, %v1271_v4 }
 0x832   :  { %2550 = vmatmul.msk.f32.vlgmr.msrb.gmra.mxu0 %vm66_vm0, %v1230_v2 }
 0x83a   :  { %2551 = vmatmul.msk.f32.gmra.mxu0 %vm66_vm0, %v1233_v56 }
 0x842   :  { %2552 = vmatmul.msk.f32.gmra.mxu0 %vm66_vm0, %v1236_v46 }
 0x84a   :  { %2553 = vmatmul.msk.f32.gmra.mxu0 %vm66_vm0, %v1239_v8 }
 0x852   :  { %2554 = vmatmul.msk.f32.gmra.mxu0 %vm66_vm0, %v1242_v10 }
 0x85a   :  { %2555 = vmatmul.msk.f32.gmra.mxu0 %vm66_vm0, %v1245_v15 }
 0x862   :  { %2556 = vmatmul.msk.f32.gmra.mxu0 %vm66_vm0, %v1248_v17 }
 0x86a   :  { %2557 = vmatmul.msk.f32.gmra.mxu0 %vm66_vm0, %v1251_v19 }
 0x8af   :  { %v1401_v5 = vpop.f32.mrf.mxu0 }
 0x8b0   :  { %v1425_v20 = vmul.f32 0.17677669, %v1401_v5 }
 0x8b2   :  { %v1433_v23 = vadd.f32 %v2743_v39, %v1425_v20 }
 0x8b4   :  { %v1441_v24 = vsel %vm319_vm1, %v1433_v23, -inf }
 0x8b5   :  { %1442 = vmax.xlane.f32.xlu0 %v1441_v24 }
 0x8b7   :  { %v1404_v3 = vpop.f32.mrf.mxu0 }
 0x8b8   :  { %v1426_v49 = vmul.f32 0.17677669, %v1404_v3 }
 0x8ba   :  { %v1434_v27 = vadd.f32 %v2744_v29, %v1426_v49 }
 0x8bc   :  { %v1444_v30 = vsel %vm319_vm1, %v1434_v27, -inf }
 0x8bd   :  { %1445 = vmax.xlane.f32.xlu1 %v1444_v30 }
 0x8bf   :  { %v1407_v33 = vpop.f32.mrf.mxu0 }
 0x8c0   :  { %v1427_v35 = vmul.f32 0.17677669, %v1407_v33 }
 0x8c2   :  { %v1435_v21 = vadd.f32 %v2745_v7, %v1427_v35 }
 0x8c4   :  { %v1447_v6 = vsel %vm319_vm1, %v1435_v21, -inf }
 0x8c5   :  { %1448 = vmax.xlane.f32.xlu2 %v1447_v6 }
 0x8c7   :  { %v1410_v11 = vpop.f32.mrf.mxu0 }
 0x8c8   :  { %v1428_v37 = vmul.f32 0.17677669, %v1410_v11 }
 0x8ca   :  { %v1436_v12 = vadd.f32 %v2746_v44, %v1428_v37 }
 0x8cc   :  { %v1450_v22 = vsel %vm319_vm1, %v1436_v12, -inf }
 0x8cd   :  { %1451 = vmax.xlane.f32.xlu0 %v1450_v22 }
 0x8cf   :  { %v1413_v40 = vpop.f32.mrf.mxu0 }
 0x8d0   :  { %v1429_v42 = vmul.f32 0.17677669, %v1413_v40 }
 0x8d2   :  { %v1437_v45 = vadd.f32 %v2747_v43, %v1429_v42 }
 0x8d4   :  { %v1453_v48 = vsel %vm319_vm1, %v1437_v45, -inf }
 0x8d5   :  { %1454 = vmax.xlane.f32.xlu1 %v1453_v48 }
 0x8d7   :  { %v1416_v0 = vpop.f32.mrf.mxu0 }
 0x8d8   :  { %v1430_v50 = vmul.f32 0.17677669, %v1416_v0 }
 0x8da   :  { %v1438_v28 = vadd.f32 %v2748_v52, %v1430_v50 }
 0x8dc   :  { %v1456_v53 = vsel %vm319_vm1, %v1438_v28, -inf }
 0x8dd   :  { %1457 = vmax.xlane.f32.xlu2 %v1456_v53 }
 0x8df   :  { %v1419_v54 = vpop.f32.mrf.mxu0 }
 0x8e0   :  { %v1431_v4 = vmul.f32 0.17677669, %v1419_v54 }
 0x8e2   :  { %v1439_v60 = vadd.f32 %v2749_v59, %v1431_v4 }
 0x8e4   :  { %v1459_v55 = vsel %vm319_vm1, %v1439_v60, -inf }
 0x8e5   :  { %1460 = vmax.xlane.f32.xlu0 %v1459_v55 }
 0x8e7   :  { %v1422_v62 = vpop.f32.mrf.mxu0 }
 0x8e8   :  { %v1432_v31 = vmul.f32 0.17677669, %v1422_v62 }
 0x8ea   :  { %v1440_v36 = vadd.f32 %v2750_v51, %v1432_v31 }
 0x8ec   :  { %v1462_v47 = vsel %vm341_vm2, %v1440_v36, -inf }
 0x8ed   :  { %1463 = vmax.xlane.f32.xlu2 %v1462_v47  ;;  %v1174_v47 = vld [vmem:[%s3946_s1 + $0xf0] sm:$0xff] }
 0x928   :  { %v1443_v32 = vpop.xlane.xlu0 %1442 }
 0x929   :  { %v1465_v63 = vsub.f32 %v1433_v23, %v1443_v32  ;;  %v1173_v32 = vld [vmem:[%s3946_s1 + $0xe8] sm:$0xff] }
 0x92b   :  { %v1473_v13 = vmul.f32 1.442695, %v1465_v63 }
 0x92d   :  { %2678 = vpow2.f32 %v1473_v13 }
 0x930   :  { %v1446_v1 = vpop.xlane.xlu1 %1445 }
 0x931   :  { %v1466_v34 = vsub.f32 %v1434_v27, %v1446_v1 }
 0x933   :  { %v2679_v14 = vpop.eup %2678  ;;  %v1475_v57 = vmul.f32 1.442695, %v1466_v34 }
 0x934   :  { %v1489_v2 = vsel %vm319_vm1, %v2679_v14, 0.0 }
 0x935   :  { %2680 = vpow2.f32 %v1475_v57  ;;  %1490 = vadd.xlane.f32.xlu1 %v1489_v2 }
 0x938   :  { %v1449_v56 = vpop.xlane.xlu2 %1448 }
 0x939   :  { %v1467_v46 = vsub.f32 %v1435_v21, %v1449_v56 }
 0x93b   :  { %v2681_v8 = vpop.eup %2680  ;;  %v1477_v10 = vmul.f32 1.442695, %v1467_v46 }
 0x93c   :  { %v1492_v15 = vsel %vm319_vm1, %v2681_v8, 0.0 }
 0x93d   :  { %2682 = vpow2.f32 %v1477_v10  ;;  %1493 = vadd.xlane.f32.xlu0 %v1492_v15  ;;  %v1172_v15 = vld [vmem:[%s3946_s1 + $0xe0] sm:$0xff] }
 0x940   :  { %v1452_v17 = vpop.xlane.xlu0 %1451 }
 0x941   :  { %v1468_v19 = vsub.f32 %v1436_v12, %v1452_v17 }
 0x943   :  { %v2683_v5 = vpop.eup %2682  ;;  %v1479_v20 = vmul.f32 1.442695, %v1468_v19 }
 0x944   :  { %v1495_v39 = vsel %vm319_vm1, %v2683_v5, 0.0 }
 0x945   :  { %2684 = vpow2.f32 %v1479_v20  ;;  %1496 = vadd.xlane.f32.xlu1 %v1495_v39 }
 0x948   :  { %v1455_v23 = vpop.xlane.xlu1 %1454 }
 0x949   :  { %v1469_v24 = vsub.f32 %v1437_v45, %v1455_v23 }
 0x94b   :  { %v2685_v3 = vpop.eup %2684  ;;  %v1481_v49 = vmul.f32 1.442695, %v1469_v24 }
 0x94c   :  { %v1498_v29 = vsel %vm319_vm1, %v2685_v3, 0.0 }
 0x94d   :  { %2686 = vpow2.f32 %v1481_v49  ;;  %1499 = vadd.xlane.f32.xlu2 %v1498_v29  ;;  %v3537_v49 = vld [vmem:[%s3947_s2 + $0x48] sm:$0xff] }
 0x94e   :  { %v3540_v29 = vperm.slane %v3537_v49, 0 }
 0x950   :  { %v1458_v27 = vpop.xlane.xlu2 %1457 }
 0x951   :  { %v1470_v30 = vsub.f32 %v1438_v28, %v1458_v27 }
 0x953   :  { %v2687_v33 = vpop.eup %2686  ;;  %v1483_v35 = vmul.f32 1.442695, %v1470_v30 }
 0x954   :  { %v1501_v7 = vsel %vm319_vm1, %v2687_v33, 0.0 }
 0x955   :  { %2688 = vpow2.f32 %v1483_v35  ;;  %1502 = vadd.xlane.f32.xlu0 %v1501_v7 }
 0x958   :  { %v1461_v21 = vpop.xlane.xlu0 %1460 }
 0x959   :  { %v1471_v6 = vsub.f32 %v1439_v60, %v1461_v21 }
 0x95b   :  { %v2689_v11 = vpop.eup %2688  ;;  %v1485_v37 = vmul.f32 1.442695, %v1471_v6 }
 0x95c   :  { %v1504_v44 = vsel %vm319_vm1, %v2689_v11, 0.0 }
 0x95d   :  { %2690 = vpow2.f32 %v1485_v37  ;;  %1505 = vadd.xlane.f32.xlu1 %v1504_v44 }
 0x960   :  { %v1464_v12 = vpop.xlane.xlu2 %1463 }
 0x961   :  { %v1472_v22 = vsub.f32 %v1440_v36, %v1464_v12  ;;  %v1175_v36 = vld [vmem:[%s3946_s1 + $0xf8] sm:$0xff] }
 0x962   :  { %1634 = vmatpush.msrb.mxu2 %v1175_v36  ;;  %2041 = vmatpush.msra.mxu1 %v1175_v36 }
 0x963   :  { %v2691_v40 = vpop.eup %2690  ;;  %v1487_v42 = vmul.f32 1.442695, %v1472_v22 }
 0x964   :  { %v1507_v43 = vsel %vm319_vm1, %v2691_v40, 0.0  ;;  %1635 = vmatpush.msrb.mxu2 %v1174_v47  ;;  %2042 = vmatpush.msra.mxu1 %v1174_v47 }
 0x965   :  { %2692 = vpow2.f32 %v1487_v42  ;;  %1508 = vadd.xlane.f32.xlu2 %v1507_v43 }
 0x966   :  { %1636 = vmatpush.msrb.mxu2 %v1173_v32  ;;  %2043 = vmatpush.msra.mxu1 %v1173_v32 }
 0x968   :  { %1637 = vmatpush.msrb.mxu2 %v1172_v15  ;;  %2044 = vmatpush.msra.mxu1 %v1172_v15 }
 0x96b   :  { %v2693_v45 = vpop.eup %2692 }
 0x96c   :  { %v1510_v48 = vsel %vm341_vm2, %v2693_v45, 0.0 }
 0x96d   :  { %1511 = vadd.xlane.f32.xlu0 %v1510_v48 }
 0x9a8   :  { %v1491_v0 = vpop.xlane.xlu1 %1490 }
 0x9a9   :  { %2694 = vrcp.f32 %v1491_v0 }
 0x9af   :  { %v2695_v50 = vpop.eup %2694 }
 0x9b0   :  { %v1521_v52 = vmul.f32 %v2695_v50, %v2679_v14  ;;  %v1494_v28 = vpop.xlane.xlu0 %1493 }
 0x9b1   :  { %2696 = vrcp.f32 %v1494_v28 }
 0x9b2   :  { %2559 = vmatmul.msk.f32.vlgmr.msrb.gmra.mxu1 %vm319_vm1, %v1521_v52 }
 0x9b7   :  { %v2697_v53 = vpop.eup %2696 }
 0x9b8   :  { %v1497_v54 = vpop.xlane.xlu1 %1496  ;;  %v1522_v4 = vmul.f32 %v2697_v53, %v2681_v8 }
 0x9b9   :  { %2698 = vrcp.f32 %v1497_v54 }
 0x9ba   :  { %2560 = vmatmul.msk.f32.gmra.mxu1 %vm319_vm1, %v1522_v4 }
 0x9bf   :  { %v2699_v59 = vpop.eup %2698 }
 0x9c0   :  { %v1500_v60 = vpop.xlane.xlu2 %1499  ;;  %v1523_v55 = vmul.f32 %v2699_v59, %v2683_v5 }
 0x9c1   :  { %2700 = vrcp.f32 %v1500_v60 }
 0x9c2   :  { %2561 = vmatmul.msk.f32.gmra.mxu1 %vm319_vm1, %v1523_v55 }
 0x9c7   :  { %v2701_v62 = vpop.eup %2700 }
 0x9c8   :  { %v1503_v31 = vpop.xlane.xlu0 %1502  ;;  %v1524_v51 = vmul.f32 %v2701_v62, %v2685_v3 }
 0x9c9   :  { %2702 = vrcp.f32 %v1503_v31 }
 0x9ca   :  { %2562 = vmatmul.msk.f32.gmra.mxu1 %vm319_vm1, %v1524_v51 }
 0x9cf   :  { %v2703_v63 = vpop.eup %2702 }
 0x9d0   :  { %v1506_v13 = vpop.xlane.xlu1 %1505  ;;  %v1525_v1 = vmul.f32 %v2703_v63, %v2687_v33 }
 0x9d1   :  { %2704 = vrcp.f32 %v1506_v13 }
 0x9d2   :  { %2563 = vmatmul.msk.f32.gmra.mxu1 %vm319_vm1, %v1525_v1 }
 0x9d7   :  { %v2705_v34 = vpop.eup %2704 }
 0x9d8   :  { %v1509_v14 = vpop.xlane.xlu2 %1508  ;;  %v1526_v57 = vmul.f32 %v2705_v34, %v2689_v11 }
 0x9d9   :  { %2706 = vrcp.f32 %v1509_v14 }
 0x9da   :  { %2564 = vmatmul.msk.f32.gmra.mxu1 %vm319_vm1, %v1526_v57 }
 0x9df   :  { %v2707_v2 = vpop.eup %2706 }
 0x9e0   :  { %v1512_v56 = vpop.xlane.xlu0 %1511  ;;  %v1527_v46 = vmul.f32 %v2707_v2, %v2691_v40 }
 0x9e1   :  { %2708 = vrcp.f32 %v1512_v56 }
 0x9e2   :  { %2565 = vmatmul.msk.f32.gmra.mxu1 %vm319_vm1, %v1527_v46 }
 0x9e7   :  { %v2709_v8 = vpop.eup %2708 }
 0x9e8   :  { %v1528_v10 = vmul.f32 %v2709_v8, %v2693_v45 }
 0x9ea   :  { %2566 = vmatmul.msk.f32.gmra.mxu1 %vm319_vm1, %v1528_v10 }
 0xa2f   :  { %v1573_v17 = vpop.f32.mrf.mxu1 }
 0xa30   :  { %2567 = vmatmul.msk.f32.vlgmr.msrb.gmra.mxu2 %vm66_vm0, %v1573_v17 }
 0xa37   :  { %v1576_v19 = vpop.f32.mrf.mxu1 }
 0xa38   :  { %2568 = vmatmul.msk.f32.gmra.mxu2 %vm66_vm0, %v1576_v19 }
 0xa3f   :  { %v1579_v5 = vpop.f32.mrf.mxu1 }
 0xa40   :  { %2569 = vmatmul.msk.f32.gmra.mxu2 %vm66_vm0, %v1579_v5 }
 0xa47   :  { %v1582_v20 = vpop.f32.mrf.mxu1 }
 0xa48   :  { %2570 = vmatmul.msk.f32.gmra.mxu2 %vm66_vm0, %v1582_v20 }
 0xa4f   :  { %v1585_v39 = vpop.f32.mrf.mxu1 }
 0xa50   :  { %2571 = vmatmul.msk.f32.gmra.mxu2 %vm66_vm0, %v1585_v39 }
 0xa57   :  { %v1588_v23 = vpop.f32.mrf.mxu1 }
 0xa58   :  { %2572 = vmatmul.msk.f32.gmra.mxu2 %vm66_vm0, %v1588_v23 }
 0xa5f   :  { %v1591_v24 = vpop.f32.mrf.mxu1 }
 0xa60   :  { %2573 = vmatmul.msk.f32.gmra.mxu2 %vm66_vm0, %v1591_v24 }
 0xa67   :  { %v1594_v3 = vpop.f32.mrf.mxu1 }
 0xa68   :  { %2574 = vmatmul.msk.f32.gmra.mxu2 %vm66_vm0, %v1594_v3 }
 0xab3   :  { %v1639_v27 = vpop.f32.mrf.mxu2 }
 0xab4   :  { %v1640_v30 = vadd.f32 %v1639_v27, %v3540_v29 }
 0xab6   :  { %v1663_v33 = vsel %vm66_vm0, %v1640_v30, 0.0 }
 0xab7   :  { %1664 = vadd.xlane.f32.xlu1 %v1663_v33 }
 0xabb   :  { %v1642_v35 = vpop.f32.mrf.mxu2 }
 0xabc   :  { %v1643_v7 = vadd.f32 %v1642_v35, %v3540_v29 }
 0xabe   :  { %v1666_v21 = vsel %vm66_vm0, %v1643_v7, 0.0 }
 0xabf   :  { %1667 = vadd.xlane.f32.xlu2 %v1666_v21 }
 0xac3   :  { %v1645_v6 = vpop.f32.mrf.mxu2 }
 0xac4   :  { %v1646_v11 = vadd.f32 %v1645_v6, %v3540_v29  ;;  %v1187_v6 = vld [vmem:[%s3947_s2 + $0x38] sm:$0xff] }
 0xac5   :  { %1902 = vmatpush.msrb.mxu3 %v1187_v6 }
 0xac6   :  { %v1669_v37 = vsel %vm66_vm0, %v1646_v11, 0.0 }
 0xac7   :  { %1670 = vadd.xlane.f32.xlu0 %v1669_v37  ;;  %v1185_v37 = vld [vmem:[%s3947_s2 + $0x28] sm:$0xff] }
 0xacb   :  { %v1648_v44 = vpop.f32.mrf.mxu2 }
 0xacc   :  { %v1649_v12 = vadd.f32 %v1648_v44, %v3540_v29  ;;  %v1184_v44 = vld [vmem:[%s3947_s2 + $0x20] sm:$0xff] }
 0xace   :  { %v1672_v22 = vsel %vm66_vm0, %v1649_v12, 0.0 }
 0xacf   :  { %1673 = vadd.xlane.f32.xlu1 %v1672_v22 }
 0xad3   :  { %v1651_v40 = vpop.f32.mrf.mxu2 }
 0xad4   :  { %v1652_v42 = vadd.f32 %v1651_v40, %v3540_v29 }
 0xad6   :  { %v1675_v43 = vsel %vm66_vm0, %v1652_v42, 0.0 }
 0xad7   :  { %1676 = vadd.xlane.f32.xlu2 %v1675_v43 }
 0xadb   :  { %v1654_v45 = vpop.f32.mrf.mxu2 }
 0xadc   :  { %v1655_v48 = vadd.f32 %v1654_v45, %v3540_v29 }
 0xade   :  { %v1678_v0 = vsel %vm66_vm0, %v1655_v48, 0.0 }
 0xadf   :  { %1679 = vadd.xlane.f32.xlu0 %v1678_v0 }
 0xae3   :  { %v1657_v50 = vpop.f32.mrf.mxu2 }
 0xae4   :  { %v1658_v52 = vadd.f32 %v1657_v50, %v3540_v29 }
 0xae6   :  { %v1681_v28 = vsel %vm66_vm0, %v1658_v52, 0.0 }
 0xae7   :  { %1682 = vadd.xlane.f32.xlu2 %v1681_v28 }
 0xaeb   :  { %v1660_v55 = vpop.f32.mrf.mxu2 }
 0xaec   :  { %v1661_v51 = vadd.f32 %v1660_v55, %v3540_v29 }
 0xaee   :  { %v1684_v32 = vsel %vm565_vm5, %v1661_v51, 0.0 }
 0xb2a   :  { %v1665_v53 = vpop.xlane.xlu1 %1664 }
 0xb2b   :  { %v1687_v54 = vmul.f32 %v1665_v53, %v3055_v18 }
 0xb2d   :  { %v3557_v4 = vsub.f32 %v1640_v30, %v1687_v54 }
 0xb2f   :  { %v1703_v59 = vmul.f32 %v3557_v4, %v3557_v4 }
 0xb31   :  { %v1711_v60 = vsel %vm66_vm0, %v1703_v59, 0.0 }
 0xb32   :  { %1712 = vadd.xlane.f32.xlu1 %v1711_v60  ;;  %v1668_v62 = vpop.xlane.xlu2 %1667 }
 0xb33   :  { %v1688_v31 = vmul.f32 %v1668_v62, %v3055_v18 }
 0xb35   :  { %v3564_v36 = vsub.f32 %v1643_v7, %v1688_v31 }
 0xb37   :  { %v1704_v47 = vmul.f32 %v3564_v36, %v3564_v36 }
 0xb39   :  { %v1714_v63 = vsel %vm66_vm0, %v1704_v47, 0.0 }
 0xb3a   :  { %v1671_v13 = vpop.xlane.xlu0 %1670  ;;  %1685 = vadd.xlane.f32.xlu1 %v1684_v32  ;;  %1715 = vadd.xlane.f32.xlu0 %v1714_v63 }
 0xb3b   :  { %v1689_v1 = vmul.f32 %v1671_v13, %v3055_v18  ;;  %v3622_v13 = vperm.slane %v3537_v49, 1 }
 0xb3d   :  { %v3571_v34 = vsub.f32 %v1646_v11, %v1689_v1  ;;  %v1186_v11 = vld [vmem:[%s3947_s2 + $0x30] sm:$0xff] }
 0xb3e   :  { %1903 = vmatpush.msrb.mxu3 %v1186_v11 }
 0xb3f   :  { %v1705_v14 = vmul.f32 %v3571_v34, %v3571_v34 }
 0xb40   :  { %1904 = vmatpush.msrb.mxu3 %v1185_v37 }
 0xb41   :  { %v1717_v57 = vsel %vm66_vm0, %v1705_v14, 0.0 }
 0xb42   :  { %v1674_v2 = vpop.xlane.xlu1 %1673  ;;  %1718 = vadd.xlane.f32.xlu2 %v1717_v57  ;;  %1905 = vmatpush.msrb.mxu3 %v1184_v44  ;;  %v3625_v57 = vperm.slane %v3537_v49, 2 }
 0xb43   :  { %v1690_v56 = vmul.f32 %v1674_v2, %v3055_v18 }
 0xb45   :  { %v3577_v46 = vsub.f32 %v1649_v12, %v1690_v56 }
 0xb47   :  { %v1706_v8 = vmul.f32 %v3577_v46, %v3577_v46 }
 0xb49   :  { %v1720_v10 = vsel %vm66_vm0, %v1706_v8, 0.0 }
 0xb4a   :  { %1721 = vadd.xlane.f32.xlu0 %v1720_v10  ;;  %v1677_v15 = vpop.xlane.xlu2 %1676 }
 0xb4b   :  { %v1691_v17 = vmul.f32 %v1677_v15, %v3055_v18 }
 0xb4d   :  { %v3583_v19 = vsub.f32 %v1652_v42, %v1691_v17 }
 0xb4f   :  { %v1707_v5 = vmul.f32 %v3583_v19, %v3583_v19 }
 0xb51   :  { %v1723_v20 = vsel %vm66_vm0, %v1707_v5, 0.0 }
 0xb52   :  { %v1680_v39 = vpop.xlane.xlu0 %1679  ;;  %1724 = vadd.xlane.f32.xlu1 %v1723_v20 }
 0xb53   :  { %v1692_v23 = vmul.f32 %v1680_v39, %v3055_v18 }
 0xb55   :  { %v3589_v24 = vsub.f32 %v1655_v48, %v1692_v23 }
 0xb57   :  { %v1708_v3 = vmul.f32 %v3589_v24, %v3589_v24 }
 0xb59   :  { %v1726_v27 = vsel %vm66_vm0, %v1708_v3, 0.0 }
 0xb5a   :  { %1727 = vadd.xlane.f32.xlu2 %v1726_v27  ;;  %v1683_v30 = vpop.xlane.xlu2 %1682 }
 0xb5b   :  { %v1693_v33 = vmul.f32 %v1683_v30, %v3055_v18 }
 0xb5d   :  { %v3595_v35 = vsub.f32 %v1658_v52, %v1693_v33 }
 0xb5f   :  { %v1709_v7 = vmul.f32 %v3595_v35, %v3595_v35 }
 0xb61   :  { %v1729_v21 = vsel %vm66_vm0, %v1709_v7, 0.0 }
 0xb62   :  { %1730 = vadd.xlane.f32.xlu0 %v1729_v21 }
 0xba5   :  { %v1713_v12 = vpop.xlane.xlu1 %1712 }
 0xba6   :  { %v1735_v22 = vmul.f32 %v1713_v12, %v3055_v18 }
 0xba8   :  { %v1743_v40 = vadd.f32 1e-05, %v1735_v22 }
 0xbaa   :  { %2710 = vrsqrt.f32 %v1743_v40  ;;  %vm1757_vm13 = vweird.f32 %v1743_v40 }
 0xbad   :  { %v1686_v42 = vpop.xlane.xlu1 %1685  ;;  %v1716_v43 = vpop.xlane.xlu0 %1715 }
 0xbae   :  { %v1694_v45 = vmul.f32 %v1686_v42, %v3055_v18  ;;  %v1736_v48 = vmul.f32 %v1716_v43, %v3055_v18 }
 0xbb0   :  { %v2711_v0 = vpop.eup %2710  ;;  %v3615_v50 = vsub.f32 %v1661_v51, %v1694_v45  ;;  %v1744_v52 = vadd.f32 1e-05, %v1736_v48 }
 0xbb1   :  { %v1752_v28 = vmul.f32 %v2711_v0, %v1743_v40  ;;  %vm1758_vm2 = vweird.f32 %v2711_v0 }
 0xbb2   :  { %2712 = vrsqrt.f32 %v1744_v52  ;;  %v1710_v53 = vmul.f32 %v3615_v50, %v3615_v50  ;;  %vm1759_vm14 = vmor %vm1757_vm13, %vm1758_vm2  ;;  %vm1767_vm4 = vweird.f32 %v1744_v52 }
 0xbb3   :  { %v1753_v54 = vmul.f32 %v2711_v0, %v1752_v28 }
 0xbb4   :  { %v1732_v59 = vsel %vm565_vm5, %v1710_v53, 0.0 }
 0xbb5   :  { %v1754_v60 = vmul.f32 0.5, %v1753_v54  ;;  %1733 = vadd.xlane.f32.xlu1 %v1732_v59  ;;  %v1719_v55 = vpop.xlane.xlu2 %1718 }
 0xbb6   :  { %v1737_v62 = vmul.f32 %v1719_v55, %v3055_v18 }
 0xbb7   :  { %v1755_v31 = vsub.f32 1.5, %v1754_v60 }
 0xbb8   :  { %v2713_v47 = vpop.eup %2712  ;;  %v1745_v32 = vadd.f32 1e-05, %v1737_v62 }
 0xbb9   :  { %v1756_v51 = vmul.f32 %v2711_v0, %v1755_v31  ;;  %v1762_v63 = vmul.f32 %v2713_v47, %v1744_v52  ;;  %vm1768_vm15 = vweird.f32 %v2713_v47 }
 0xbba   :  { %2714 = vrsqrt.f32 %v1745_v32  ;;  %vm1769_vm6 = vmor %vm1767_vm4, %vm1768_vm15  ;;  %vm1777_vm9 = vweird.f32 %v1745_v32 }
 0xbbb   :  { %v1760_v1 = vsel %vm1759_vm14, %v2711_v0, %v1756_v51  ;;  %v1763_v14 = vmul.f32 %v2713_v47, %v1762_v63 }
 0xbbc   :  { %v1831_v2 = vmul.f32 %v1760_v1, %v3557_v4 }
 0xbbd   :  { %v1764_v56 = vmul.f32 0.5, %v1763_v14  ;;  %v1722_v8 = vpop.xlane.xlu0 %1721 }
 0xbbe   :  { %v1840_v10 = vmul.f32 %v3622_v13, %v1831_v2  ;;  %v1738_v15 = vmul.f32 %v1722_v8, %v3055_v18 }
 0xbbf   :  { %v1765_v17 = vsub.f32 1.5, %v1764_v56 }
 0xbc0   :  { %v2715_v5 = vpop.eup %2714  ;;  %v1849_v20 = vadd.f32 %v3625_v57, %v1840_v10  ;;  %v1746_v39 = vadd.f32 1e-05, %v1738_v15 }
 0xbc1   :  { %v1766_v23 = vmul.f32 %v2713_v47, %v1765_v17  ;;  %v1772_v3 = vmul.f32 %v2715_v5, %v1745_v32  ;;  %vm1778_vm7 = vweird.f32 %v2715_v5 }
 0xbc2   :  { %v3632_v27 = vadd.f32 %v1849_v20, %v3353_v26  ;;  %2716 = vrsqrt.f32 %v1746_v39  ;;  %vm1779_vm10 = vmor %vm1777_vm9, %vm1778_vm7  ;;  %vm1787_vm12 = vweird.f32 %v1746_v39 }
 0xbc3   :  { %v1770_v4 = vsel %vm1769_vm6, %v2713_v47, %v1766_v23  ;;  %v1773_v30 = vmul.f32 %v2715_v5, %v1772_v3 }
 0xbc4   :  { %v1832_v33 = vmul.f32 %v1770_v4, %v3564_v36  ;;  %2575 = vmatmul.msk.f32.vlgmr.msrb.gmra.mxu3 %vm66_vm0, %v3632_v27 }
 0xbc5   :  { %v1774_v7 = vmul.f32 0.5, %v1773_v30  ;;  %v1725_v21 = vpop.xlane.xlu1 %1724 }
 0xbc6   :  { %v1739_v6 = vmul.f32 %v1725_v21, %v3055_v18  ;;  %v1841_v11 = vmul.f32 %v3622_v13, %v1832_v33 }
 0xbc7   :  { %v1775_v37 = vsub.f32 1.5, %v1774_v7 }
 0xbc8   :  { %v2717_v44 = vpop.eup %2716  ;;  %v1747_v26 = vadd.f32 1e-05, %v1739_v6  ;;  %v1850_v12 = vadd.f32 %v3625_v57, %v1841_v11 }
 0xbc9   :  { %v1776_v22 = vmul.f32 %v2715_v5, %v1775_v37  ;;  %v1782_v40 = vmul.f32 %v2717_v44, %v1746_v39  ;;  %vm1788_vm11 = vweird.f32 %v2717_v44 }
 0xbca   :  { %2718 = vrsqrt.f32 %v1747_v26  ;;  %v3641_v36 = vadd.f32 %v1850_v12, %v3366_v41  ;;  %vm1789_vm2 = vmor %vm1787_vm12, %vm1788_vm11  ;;  %vm1797_vm14 = vweird.f32 %v1747_v26 }
 0xbcb   :  { %v1780_v42 = vsel %vm1779_vm10, %v2715_v5, %v1776_v22  ;;  %v1783_v43 = vmul.f32 %v2717_v44, %v1782_v40 }
 0xbcc   :  { %v1833_v45 = vmul.f32 %v1780_v42, %v3571_v34  ;;  %2576 = vmatmul.msk.f32.gmra.mxu3 %vm66_vm0, %v3641_v36 }
 0xbcd   :  { %v1784_v48 = vmul.f32 0.5, %v1783_v43  ;;  %v1728_v0 = vpop.xlane.xlu2 %1727  ;;  %v1181_v43 = vld [vmem:[%s3946_s1 + $0x168] sm:$0xff] }
 0xbce   :  { %v1740_v52 = vmul.f32 %v1728_v0, %v3055_v18  ;;  %v1842_v28 = vmul.f32 %v3622_v13, %v1833_v45  ;;  %v1179_v45 = vld [vmem:[%s3946_s1 + $0x158] sm:$0xff] }
 0xbcf   :  { %v1785_v53 = vsub.f32 1.5, %v1784_v48  ;;  %v1178_v48 = vld [vmem:[%s3946_s1 + $0x150] sm:$0xff] }
 0xbd0   :  { %v2719_v54 = vpop.eup %2718  ;;  %v1748_v59 = vadd.f32 1e-05, %v1740_v52  ;;  %v1851_v41 = vadd.f32 %v3625_v57, %v1842_v28  ;;  %v1177_v28 = vld [vmem:[%s3946_s1 + $0x148] sm:$0xff] }
 0xbd1   :  { %v1786_v60 = vmul.f32 %v2717_v44, %v1785_v53  ;;  %v1792_v55 = vmul.f32 %v2719_v54, %v1747_v26  ;;  %vm1798_vm13 = vweird.f32 %v2719_v54  ;;  %v1176_v53 = vld [vmem:[%s3946_s1 + $0x140] sm:$0xff] }
 0xbd2   :  { %2720 = vrsqrt.f32 %v1748_v59  ;;  %v3650_v34 = vadd.f32 %v1851_v41, %v3379_v61  ;;  %vm1799_vm15 = vmor %vm1797_vm14, %vm1798_vm13  ;;  %vm1807_vm6 = vweird.f32 %v1748_v59 }
 0xbd3   :  { %v1790_v62 = vsel %vm1789_vm2, %v2717_v44, %v1786_v60  ;;  %v1793_v31 = vmul.f32 %v2719_v54, %v1792_v55 }
 0xbd4   :  { %v1834_v47 = vmul.f32 %v1790_v62, %v3577_v46  ;;  %2577 = vmatmul.msk.f32.gmra.mxu3 %vm66_vm0, %v3650_v34 }
 0xbd5   :  { %v1794_v32 = vmul.f32 0.5, %v1793_v31  ;;  %v1731_v51 = vpop.xlane.xlu0 %1730 }
 0xbd6   :  { %v1741_v63 = vmul.f32 %v1731_v51, %v3055_v18  ;;  %v1843_v1 = vmul.f32 %v3622_v13, %v1834_v47 }
 0xbd7   :  { %v1795_v14 = vsub.f32 1.5, %v1794_v32 }
 0xbd8   :  { %v2721_v2 = vpop.eup %2720  ;;  %v1749_v56 = vadd.f32 1e-05, %v1741_v63  ;;  %v1852_v61 = vadd.f32 %v3625_v57, %v1843_v1  ;;  %v1865_v1 = vperm.slane %v3537_v49, 4 }
 0xbd9   :  { %v1796_v8 = vmul.f32 %v2719_v54, %v1795_v14  ;;  %v1802_v10 = vmul.f32 %v2721_v2, %v1748_v59  ;;  %vm1808_vm4 = vweird.f32 %v2721_v2 }
 0xbda   :  { %2722 = vrsqrt.f32 %v1749_v56  ;;  %v3659_v46 = vadd.f32 %v1852_v61, %v3392_v9  ;;  %vm1809_vm7 = vmor %vm1807_vm6, %vm1808_vm4  ;;  %vm1817_vm10 = vweird.f32 %v1749_v56 }
 0xbdb   :  { %v1800_v15 = vsel %vm1799_vm15, %v2719_v54, %v1796_v8  ;;  %v1803_v17 = vmul.f32 %v2721_v2, %v1802_v10 }
 0xbdc   :  { %v1835_v5 = vmul.f32 %v1800_v15, %v3583_v19  ;;  %2578 = vmatmul.msk.f32.gmra.mxu3 %vm66_vm0, %v3659_v46 }
 0xbdd   :  { %v1804_v20 = vmul.f32 0.5, %v1803_v17 }
 0xbde   :  { %v1844_v39 = vmul.f32 %v3622_v13, %v1835_v5 }
 0xbdf   :  { %v1805_v23 = vsub.f32 1.5, %v1804_v20 }
 0xbe0   :  { %v2723_v3 = vpop.eup %2722  ;;  %v1853_v4 = vadd.f32 %v3625_v57, %v1844_v39 }
 0xbe1   :  { %v1806_v30 = vmul.f32 %v2721_v2, %v1805_v23  ;;  %v1812_v33 = vmul.f32 %v2723_v3, %v1749_v56  ;;  %vm1818_vm9 = vweird.f32 %v2723_v3 }
 0xbe2   :  { %v3667_v9 = vadd.f32 %v1853_v4, %v3404_v25  ;;  %vm1819_vm11 = vmor %vm1817_vm10, %vm1818_vm9 }
 0xbe3   :  { %v1810_v7 = vsel %vm1809_vm7, %v2721_v2, %v1806_v30  ;;  %v1813_v19 = vmul.f32 %v2723_v3, %v1812_v33 }
 0xbe4   :  { %v1836_v21 = vmul.f32 %v1810_v7, %v3589_v24  ;;  %2579 = vmatmul.msk.f32.gmra.mxu3 %vm66_vm0, %v3667_v9 }
 0xbe5   :  { %v1814_v6 = vmul.f32 0.5, %v1813_v19 }
 0xbe6   :  { %v1845_v11 = vmul.f32 %v3622_v13, %v1836_v21 }
 0xbe7   :  { %v1815_v37 = vsub.f32 1.5, %v1814_v6 }
 0xbe8   :  { %v1854_v44 = vadd.f32 %v3625_v57, %v1845_v11  ;;  %v1939_v11 = vperm.slane %v3537_v49, 3 }
 0xbe9   :  { %v1816_v26 = vmul.f32 %v2723_v3, %v1815_v37 }
 0xbea   :  { %v3675_v25 = vadd.f32 %v1854_v44, %v3416_v16  ;;  %v1183_v16 = vld [vmem:[%s3946_s1 + $0x178] sm:$0xff] }
 0xbeb   :  { %v1820_v12 = vsel %vm1819_vm11, %v2723_v3, %v1816_v26  ;;  %1972 = vmatpush.msra.mxu0 %v1183_v16 }
 0xbec   :  { %v1837_v22 = vmul.f32 %v1820_v12, %v3595_v35  ;;  %2580 = vmatmul.msk.f32.gmra.mxu3 %vm66_vm0, %v3675_v25  ;;  %v1182_v35 = vld [vmem:[%s3946_s1 + $0x170] sm:$0xff] }
 0xbed   :  { %1973 = vmatpush.msra.mxu0 %v1182_v35 }
 0xbee   :  { %v1846_v24 = vmul.f32 %v3622_v13, %v1837_v22 }
 0xbef   :  { %1974 = vmatpush.msra.mxu0 %v1181_v43 }
 0xbf0   :  { %v1855_v40 = vadd.f32 %v3625_v57, %v1846_v24 }
 0xbf2   :  { %v3683_v42 = vadd.f32 %v1855_v40, %v3428_v38  ;;  %v1180_v38 = vld [vmem:[%s3946_s1 + $0x160] sm:$0xff] }
 0xbf3   :  { %1975 = vmatpush.msra.mxu0 %v1180_v38 }
 0xbf4   :  { %2581 = vmatmul.msk.f32.gmra.mxu3 %vm66_vm0, %v3683_v42 }
 0xbf5   :  { %1976 = vmatpush.msra.mxu0 %v1179_v45 }
 0xbf7   :  { %1977 = vmatpush.msra.mxu0 %v1178_v48 }
 0xbf9   :  { %1978 = vmatpush.msra.mxu0 %v1177_v28 }
 0xbfb   :  { %1979 = vmatpush.msra.mxu0 %v1176_v53 }
 0xc28   :  { %v1734_v0 = vpop.xlane.xlu1 %1733 }
 0xc29   :  { %v1742_v52 = vmul.f32 %v1734_v0, %v3055_v18 }
 0xc2b   :  { %v1750_v54 = vadd.f32 1e-05, %v1742_v52 }
 0xc2d   :  { %2724 = vrsqrt.f32 %v1750_v54  ;;  %vm1827_vm2 = vweird.f32 %v1750_v54 }
 0xc33   :  { %v2725_v59 = vpop.eup %2724 }
 0xc34   :  { %v1822_v41 = vmul.f32 %v2725_v59, %v1750_v54  ;;  %vm1828_vm12 = vweird.f32 %v2725_v59 }
 0xc35   :  { %vm1829_vm13 = vmor %vm1827_vm2, %vm1828_vm12 }
 0xc36   :  { %v1823_v60 = vmul.f32 %v2725_v59, %v1822_v41 }
 0xc38   :  { %v1824_v55 = vmul.f32 0.5, %v1823_v60 }
 0xc3a   :  { %v1825_v62 = vsub.f32 1.5, %v1824_v55 }
 0xc3c   :  { %v1826_v31 = vmul.f32 %v2725_v59, %v1825_v62 }
 0xc3e   :  { %v1830_v47 = vsel %vm1829_vm13, %v2725_v59, %v1826_v31 }
 0xc3f   :  { %v1838_v32 = vmul.f32 %v1830_v47, %v3615_v50 }
 0xc41   :  { %v1847_v51 = vmul.f32 %v3622_v13, %v1838_v32 }
 0xc43   :  { %v1856_v63 = vadd.f32 %v3625_v57, %v1847_v51 }
 0xc45   :  { %v3717_v14 = vadd.f32 %v1856_v63, %v3441_v58 }
 0xc47   :  { %v1907_v2 = vpop.f32.mrf.mxu3  ;;  %2582 = vmatmul.msk.f32.gmra.mxu3 %vm66_vm0, %v3717_v14 }
 0xc48   :  { %v1908_v56 = vadd.f32 %v1907_v2, %v1865_v1 }
 0xc4a   :  { %v1931_v61 = vmax.f32 %v1908_v56, 0.0 }
 0xc4c   :  { %2583 = vmatmul.msk.f32.vlgmr.msra.gmra.mxu0 %vm829_vm8, %v1931_v61 }
 0xc4f   :  { %v1910_v8 = vpop.f32.mrf.mxu3 }
 0xc50   :  { %v1911_v10 = vadd.f32 %v1910_v8, %v1865_v1 }
 0xc52   :  { %v1932_v50 = vmax.f32 %v1911_v10, 0.0 }
 0xc54   :  { %2584 = vmatmul.msk.f32.gmra.mxu0 %vm829_vm8, %v1932_v50 }
 0xc57   :  { %v1913_v15 = vpop.f32.mrf.mxu3 }
 0xc58   :  { %v1914_v17 = vadd.f32 %v1913_v15, %v1865_v1 }
 0xc5a   :  { %v1933_v5 = vmax.f32 %v1914_v17, 0.0 }
 0xc5c   :  { %2585 = vmatmul.msk.f32.gmra.mxu0 %vm829_vm8, %v1933_v5 }
 0xc5f   :  { %v1916_v58 = vpop.f32.mrf.mxu3 }
 0xc60   :  { %v1917_v20 = vadd.f32 %v1916_v58, %v1865_v1 }
 0xc62   :  { %v1934_v39 = vmax.f32 %v1917_v20, 0.0 }
 0xc64   :  { %2586 = vmatmul.msk.f32.gmra.mxu0 %vm829_vm8, %v1934_v39 }
 0xc67   :  { %v1919_v23 = vpop.f32.mrf.mxu3 }
 0xc68   :  { %v1920_v3 = vadd.f32 %v1919_v23, %v1865_v1 }
 0xc6a   :  { %v1935_v4 = vmax.f32 %v1920_v3, 0.0 }
 0xc6c   :  { %2587 = vmatmul.msk.f32.gmra.mxu0 %vm829_vm8, %v1935_v4 }
 0xc6f   :  { %v1922_v30 = vpop.f32.mrf.mxu3 }
 0xc70   :  { %v1923_v33 = vadd.f32 %v1922_v30, %v1865_v1 }
 0xc72   :  { %v1936_v7 = vmax.f32 %v1923_v33, 0.0 }
 0xc74   :  { %2588 = vmatmul.msk.f32.gmra.mxu0 %vm829_vm8, %v1936_v7 }
 0xc77   :  { %v1925_v19 = vpop.f32.mrf.mxu3 }
 0xc78   :  { %v1926_v21 = vadd.f32 %v1925_v19, %v1865_v1 }
 0xc7a   :  { %v1937_v6 = vmax.f32 %v1926_v21, 0.0 }
 0xc7c   :  { %2589 = vmatmul.msk.f32.gmra.mxu0 %vm829_vm8, %v1937_v6 }
 0xcc9   :  { %v1981_v37 = vpop.f32.mrf.mxu0 }
 0xcca   :  { %v1982_v44 = vadd.f32 %v1981_v37, %v1939_v11  ;;  %v1928_v26 = vpop.f32.mrf.mxu3 }
 0xccb   :  { %v1929_v12 = vadd.f32 %v1928_v26, %v1865_v1 }
 0xccc   :  { %2591 = vmatmul.msk.f32.vlgmr.msra.gmra.mxu1 %vm66_vm0, %v1982_v44 }
 0xccd   :  { %v1938_v22 = vmax.f32 %v1929_v12, 0.0 }
 0xccf   :  { %2590 = vmatmul.msk.f32.gmra.mxu0 %vm829_vm8, %v1938_v22 }
 0xcd1   :  { %v1984_v24 = vpop.f32.mrf.mxu0 }
 0xcd2   :  { %v1985_v40 = vadd.f32 %v1984_v24, %v1939_v11 }
 0xcd4   :  { %2592 = vmatmul.msk.f32.gmra.mxu1 %vm66_vm0, %v1985_v40 }
 0xcd9   :  { %v1987_v16 = vpop.f32.mrf.mxu0 }
 0xcda   :  { %v1988_v35 = vadd.f32 %v1987_v16, %v1939_v11 }
 0xcdc   :  { %2593 = vmatmul.msk.f32.gmra.mxu1 %vm66_vm0, %v1988_v35 }
 0xce1   :  { %v1990_v43 = vpop.f32.mrf.mxu0 }
 0xce2   :  { %v1991_v38 = vadd.f32 %v1990_v43, %v1939_v11 }
 0xce4   :  { %2594 = vmatmul.msk.f32.gmra.mxu1 %vm66_vm0, %v1991_v38 }
 0xce9   :  { %v1993_v49 = vpop.f32.mrf.mxu0 }
 0xcea   :  { %v1994_v45 = vadd.f32 %v1993_v49, %v1939_v11 }
 0xcec   :  { %2595 = vmatmul.msk.f32.gmra.mxu1 %vm66_vm0, %v1994_v45 }
 0xcf1   :  { %v1996_v48 = vpop.f32.mrf.mxu0 }
 0xcf2   :  { %v1997_v0 = vadd.f32 %v1996_v48, %v1939_v11 }
 0xcf4   :  { %2596 = vmatmul.msk.f32.gmra.mxu1 %vm66_vm0, %v1997_v0 }
 0xcf9   :  { %v1999_v52 = vpop.f32.mrf.mxu0 }
 0xcfa   :  { %v2000_v28 = vadd.f32 %v1999_v52, %v1939_v11 }
 0xcfc   :  { %2597 = vmatmul.msk.f32.gmra.mxu1 %vm66_vm0, %v2000_v28 }
 0xd49   :  { %v2046_v53 = vpop.f32.mrf.mxu1 }
 0xd4a   :  { %v2047_v54 = vadd.f32 %v2046_v53, %v3540_v29 }
 0xd4c   :  { %v2002_v59 = vpop.f32.mrf.mxu0  ;;  %v2070_v41 = vsel %vm66_vm0, %v2047_v54, 0.0 }
 0xd4d   :  { %v2003_v60 = vadd.f32 %v2002_v59, %v1939_v11  ;;  %2071 = vadd.xlane.f32.xlu2 %v2070_v41 }
 0xd4f   :  { %2598 = vmatmul.msk.f32.gmra.mxu1 %vm66_vm0, %v2003_v60 }
 0xd51   :  { %v2049_v55 = vpop.f32.mrf.mxu1 }
 0xd52   :  { %v2050_v62 = vadd.f32 %v2049_v55, %v3540_v29 }
 0xd54   :  { %v2073_v31 = vsel %vm66_vm0, %v2050_v62, 0.0 }
 0xd55   :  { %2074 = vadd.xlane.f32.xlu0 %v2073_v31 }
 0xd59   :  { %v2052_v47 = vpop.f32.mrf.mxu1 }
 0xd5a   :  { %v2053_v32 = vadd.f32 %v2052_v47, %v3540_v29  ;;  %v2273_v47 = vld [vmem:[%s3948_s3 + $0x20] sm:$0xff] }
 0xd5b   :  { %2336 = vmatpush.msra.mxu2 %v2273_v47 }
 0xd5c   :  { %v2076_v51 = vsel %vm66_vm0, %v2053_v32, 0.0 }
 0xd5d   :  { %2077 = vadd.xlane.f32.xlu1 %v2076_v51  ;;  %v2271_v51 = vld [vmem:[%s3948_s3 + $0x10] sm:$0xff] }
 0xd61   :  { %v2055_v63 = vpop.f32.mrf.mxu1 }
 0xd62   :  { %v2056_v1 = vadd.f32 %v2055_v63, %v3540_v29  ;;  %v2270_v63 = vld [vmem:[%s3948_s3 + $0x8] sm:$0xff] }
 0xd64   :  { %v2079_v2 = vsel %vm66_vm0, %v2056_v1, 0.0 }
 0xd65   :  { %2080 = vadd.xlane.f32.xlu2 %v2079_v2 }
 0xd69   :  { %v2058_v56 = vpop.f32.mrf.mxu1 }
 0xd6a   :  { %v2059_v61 = vadd.f32 %v2058_v56, %v3540_v29 }
 0xd6c   :  { %v2082_v8 = vsel %vm66_vm0, %v2059_v61, 0.0 }
 0xd6d   :  { %2083 = vadd.xlane.f32.xlu0 %v2082_v8 }
 0xd71   :  { %v2061_v10 = vpop.f32.mrf.mxu1 }
 0xd72   :  { %v2062_v50 = vadd.f32 %v2061_v10, %v3540_v29 }
 0xd74   :  { %v2085_v15 = vsel %vm66_vm0, %v2062_v50, 0.0 }
 0xd75   :  { %2086 = vadd.xlane.f32.xlu1 %v2085_v15 }
 0xd79   :  { %v2064_v17 = vpop.f32.mrf.mxu1 }
 0xd7a   :  { %v2065_v5 = vadd.f32 %v2064_v17, %v3540_v29 }
 0xd7c   :  { %v2088_v58 = vsel %vm66_vm0, %v2065_v5, 0.0 }
 0xd7d   :  { %2089 = vadd.xlane.f32.xlu0 %v2088_v58 }
 0xdc0   :  { %v2072_v20 = vpop.xlane.xlu2 %2071 }
 0xdc1   :  { %v2094_v39 = vmul.f32 %v2072_v20, %v3055_v18 }
 0xdc3   :  { %v3753_v23 = vsub.f32 %v2047_v54, %v2094_v39 }
 0xdc5   :  { %v2110_v3 = vmul.f32 %v3753_v23, %v3753_v23 }
 0xdc7   :  { %v2118_v4 = vsel %vm66_vm0, %v2110_v3, 0.0 }
 0xdc8   :  { %v2075_v30 = vpop.xlane.xlu0 %2074  ;;  %2119 = vadd.xlane.f32.xlu2 %v2118_v4 }
 0xdc9   :  { %v2095_v33 = vmul.f32 %v2075_v30, %v3055_v18 }
 0xdcb   :  { %v3759_v7 = vsub.f32 %v2050_v62, %v2095_v33 }
 0xdcc   :  { %v2067_v19 = vpop.f32.mrf.mxu1 }
 0xdcd   :  { %v2068_v21 = vadd.f32 %v2067_v19, %v3540_v29  ;;  %v2111_v6 = vmul.f32 %v3759_v7, %v3759_v7 }
 0xdcf   :  { %v2121_v11 = vsel %vm66_vm0, %v2111_v6, 0.0  ;;  %v2091_v37 = vsel %vm565_vm5, %v2068_v21, 0.0 }
 0xdd0   :  { %v2078_v44 = vpop.xlane.xlu1 %2077  ;;  %2122 = vadd.xlane.f32.xlu1 %v2121_v11  ;;  %2092 = vadd.xlane.f32.xlu2 %v2091_v37 }
 0xdd1   :  { %v2096_v26 = vmul.f32 %v2078_v44, %v3055_v18 }
 0xdd3   :  { %v3767_v12 = vsub.f32 %v2053_v32, %v2096_v26  ;;  %v2272_v32 = vld [vmem:[%s3948_s3 + $0x18] sm:$0xff] }
 0xdd4   :  { %2337 = vmatpush.msra.mxu2 %v2272_v32 }
 0xdd5   :  { %v2112_v22 = vmul.f32 %v3767_v12, %v3767_v12 }
 0xdd6   :  { %2338 = vmatpush.msra.mxu2 %v2271_v51 }
 0xdd7   :  { %v2124_v24 = vsel %vm66_vm0, %v2112_v22, 0.0 }
 0xdd8   :  { %2125 = vadd.xlane.f32.xlu0 %v2124_v24  ;;  %v2081_v29 = vpop.xlane.xlu2 %2080  ;;  %2339 = vmatpush.msra.mxu2 %v2270_v63 }
 0xdd9   :  { %v2097_v40 = vmul.f32 %v2081_v29, %v3055_v18 }
 0xddb   :  { %v3773_v16 = vsub.f32 %v2056_v1, %v2097_v40 }
 0xddd   :  { %v2113_v35 = vmul.f32 %v3773_v16, %v3773_v16 }
 0xddf   :  { %v2127_v43 = vsel %vm66_vm0, %v2113_v35, 0.0 }
 0xde0   :  { %v2084_v38 = vpop.xlane.xlu0 %2083  ;;  %2128 = vadd.xlane.f32.xlu1 %v2127_v43 }
 0xde1   :  { %v2098_v49 = vmul.f32 %v2084_v38, %v3055_v18 }
 0xde3   :  { %v3779_v45 = vsub.f32 %v2059_v61, %v2098_v49 }
 0xde5   :  { %v2114_v48 = vmul.f32 %v3779_v45, %v3779_v45 }
 0xde7   :  { %v2130_v0 = vsel %vm66_vm0, %v2114_v48, 0.0 }
 0xde8   :  { %v2087_v52 = vpop.xlane.xlu1 %2086  ;;  %2131 = vadd.xlane.f32.xlu2 %v2130_v0 }
 0xde9   :  { %v2099_v28 = vmul.f32 %v2087_v52, %v3055_v18 }
 0xdeb   :  { %v3785_v53 = vsub.f32 %v2062_v50, %v2099_v28 }
 0xded   :  { %v2115_v54 = vmul.f32 %v3785_v53, %v3785_v53 }
 0xdef   :  { %v2133_v59 = vsel %vm66_vm0, %v2115_v54, 0.0 }
 0xdf0   :  { %v2090_v41 = vpop.xlane.xlu0 %2089  ;;  %2134 = vadd.xlane.f32.xlu0 %v2133_v59 }
 0xdf1   :  { %v2100_v60 = vmul.f32 %v2090_v41, %v3055_v18 }
 0xdf3   :  { %v3791_v55 = vsub.f32 %v2065_v5, %v2100_v60 }
 0xdf5   :  { %v2116_v62 = vmul.f32 %v3791_v55, %v3791_v55 }
 0xdf7   :  { %v2136_v31 = vsel %vm66_vm0, %v2116_v62, 0.0 }
 0xdf8   :  { %2137 = vadd.xlane.f32.xlu1 %v2136_v31 }
 0xe3b   :  { %v2120_v1 = vpop.xlane.xlu2 %2119 }
 0xe3c   :  { %v2142_v2 = vmul.f32 %v2120_v1, %v3055_v18 }
 0xe3e   :  { %v2150_v56 = vadd.f32 1e-05, %v2142_v2 }
 0xe40   :  { %2726 = vrsqrt.f32 %v2150_v56  ;;  %vm2164_vm14 = vweird.f32 %v2150_v56 }
 0xe43   :  { %v2123_v61 = vpop.xlane.xlu1 %2122  ;;  %v2093_v8 = vpop.xlane.xlu2 %2092 }
 0xe44   :  { %v2143_v10 = vmul.f32 %v2123_v61, %v3055_v18  ;;  %v2101_v50 = vmul.f32 %v2093_v8, %v3055_v18 }
 0xe46   :  { %v2727_v15 = vpop.eup %2726  ;;  %v2151_v17 = vadd.f32 1e-05, %v2143_v10  ;;  %v3811_v5 = vsub.f32 %v2068_v21, %v2101_v50 }
 0xe47   :  { %v2159_v58 = vmul.f32 %v2727_v15, %v2150_v56  ;;  %vm2165_vm8 = vweird.f32 %v2727_v15 }
 0xe48   :  { %2728 = vrsqrt.f32 %v2151_v17  ;;  %v2117_v20 = vmul.f32 %v3811_v5, %v3811_v5  ;;  %vm2166_vm15 = vmor %vm2164_vm14, %vm2165_vm8  ;;  %vm2174_vm4 = vweird.f32 %v2151_v17 }
 0xe49   :  { %v2160_v39 = vmul.f32 %v2727_v15, %v2159_v58 }
 0xe4a   :  { %v2139_v3 = vsel %vm565_vm5, %v2117_v20, 0.0 }
 0xe4b   :  { %v2161_v4 = vmul.f32 0.5, %v2160_v39  ;;  %v2126_v30 = vpop.xlane.xlu0 %2125  ;;  %2140 = vadd.xlane.f32.xlu2 %v2139_v3 }
 0xe4c   :  { %v2144_v33 = vmul.f32 %v2126_v30, %v3055_v18 }
 0xe4d   :  { %v2162_v19 = vsub.f32 1.5, %v2161_v4 }
 0xe4e   :  { %v2729_v6 = vpop.eup %2728  ;;  %v2152_v11 = vadd.f32 1e-05, %v2144_v33 }
 0xe4f   :  { %v2163_v37 = vmul.f32 %v2727_v15, %v2162_v19  ;;  %v2169_v21 = vmul.f32 %v2729_v6, %v2151_v17  ;;  %vm2175_vm5 = vweird.f32 %v2729_v6 }
 0xe50   :  { %2730 = vrsqrt.f32 %v2152_v11  ;;  %vm2176_vm6 = vmor %vm2174_vm4, %vm2175_vm5  ;;  %vm2184_vm9 = vweird.f32 %v2152_v11 }
 0xe51   :  { %v2167_v44 = vsel %vm2166_vm15, %v2727_v15, %v2163_v37  ;;  %v2170_v26 = vmul.f32 %v2729_v6, %v2169_v21 }
 0xe52   :  { %v2238_v22 = vmul.f32 %v2167_v44, %v3753_v23 }
 0xe53   :  { %v2171_v24 = vmul.f32 0.5, %v2170_v26  ;;  %v2129_v29 = vpop.xlane.xlu1 %2128 }
 0xe54   :  { %v2246_v40 = vmul.f32 %v2238_v22, %v3622_v13  ;;  %v2145_v35 = vmul.f32 %v2129_v29, %v3055_v18 }
 0xe55   :  { %v2172_v43 = vsub.f32 1.5, %v2171_v24 }
 0xe56   :  { %v2731_v38 = vpop.eup %2730  ;;  %v2254_v49 = vadd.f32 %v2246_v40, %v3625_v57  ;;  %v2153_v48 = vadd.f32 1e-05, %v2145_v35 }
 0xe57   :  { %v2173_v0 = vmul.f32 %v2729_v6, %v2172_v43  ;;  %v2179_v52 = vmul.f32 %v2731_v38, %v2152_v11  ;;  %vm2185_vm7 = vweird.f32 %v2731_v38 }
 0xe58   :  { %v2262_v28 = vadd.f32 %v2254_v49, %v3632_v27  ;;  %2732 = vrsqrt.f32 %v2153_v48  ;;  %vm2186_vm10 = vmor %vm2184_vm9, %vm2185_vm7  ;;  %vm2194_vm12 = vweird.f32 %v2153_v48 }
 0xe59   :  { %v2177_v23 = vsel %vm2176_vm6, %v2729_v6, %v2173_v0  ;;  %v2180_v54 = vmul.f32 %v2731_v38, %v2179_v52 }
 0xe5a   :  { %v2239_v59 = vmul.f32 %v2177_v23, %v3759_v7  ;;  %2599 = vmatmul.msk.f32.vlgmr.msra.gmra.mxu2 %vm66_vm0, %v2262_v28 }
 0xe5b   :  { %v2181_v41 = vmul.f32 0.5, %v2180_v54  ;;  %v2132_v60 = vpop.xlane.xlu2 %2131 }
 0xe5c   :  { %v2146_v62 = vmul.f32 %v2132_v60, %v3055_v18  ;;  %v2247_v31 = vmul.f32 %v2239_v59, %v3622_v13 }
 0xe5d   :  { %v2182_v47 = vsub.f32 1.5, %v2181_v41 }
 0xe5e   :  { %v2733_v32 = vpop.eup %2732  ;;  %v2154_v51 = vadd.f32 1e-05, %v2146_v62  ;;  %v2255_v27 = vadd.f32 %v2247_v31, %v3625_v57 }
 0xe5f   :  { %v2183_v63 = vmul.f32 %v2731_v38, %v2182_v47  ;;  %v2189_v1 = vmul.f32 %v2733_v32, %v2153_v48  ;;  %vm2195_vm11 = vweird.f32 %v2733_v32 }
 0xe60   :  { %2734 = vrsqrt.f32 %v2154_v51  ;;  %v2263_v7 = vadd.f32 %v2255_v27, %v3641_v36  ;;  %vm2196_vm2 = vmor %vm2194_vm12, %vm2195_vm11  ;;  %vm2204_vm8 = vweird.f32 %v2154_v51 }
 0xe61   :  { %v2187_v2 = vsel %vm2186_vm10, %v2731_v38, %v2183_v63  ;;  %v2190_v56 = vmul.f32 %v2733_v32, %v2189_v1 }
 0xe62   :  { %v2240_v61 = vmul.f32 %v2187_v2, %v3767_v12  ;;  %2600 = vmatmul.msk.f32.gmra.mxu2 %vm66_vm0, %v2263_v7 }
 0xe63   :  { %v2191_v8 = vmul.f32 0.5, %v2190_v56  ;;  %v2135_v10 = vpop.xlane.xlu0 %2134 }
 0xe64   :  { %v2147_v50 = vmul.f32 %v2135_v10, %v3055_v18  ;;  %v2248_v15 = vmul.f32 %v2240_v61, %v3622_v13 }
 0xe65   :  { %v2192_v17 = vsub.f32 1.5, %v2191_v8 }
 0xe66   :  { %v2735_v58 = vpop.eup %2734  ;;  %v2155_v20 = vadd.f32 1e-05, %v2147_v50  ;;  %v2256_v39 = vadd.f32 %v2248_v15, %v3625_v57 }
 0xe67   :  { %v2193_v3 = vmul.f32 %v2733_v32, %v2192_v17  ;;  %v2199_v36 = vmul.f32 %v2735_v58, %v2154_v51  ;;  %vm2205_vm13 = vweird.f32 %v2735_v58 }
 0xe68   :  { %2736 = vrsqrt.f32 %v2155_v20  ;;  %v2264_v12 = vadd.f32 %v2256_v39, %v3650_v34  ;;  %vm2206_vm14 = vmor %vm2204_vm8, %vm2205_vm13  ;;  %vm2214_vm5 = vweird.f32 %v2155_v20 }
 0xe69   :  { %v2197_v4 = vsel %vm2196_vm2, %v2733_v32, %v2193_v3  ;;  %v2200_v30 = vmul.f32 %v2735_v58, %v2199_v36 }
 0xe6a   :  { %v2241_v33 = vmul.f32 %v2197_v4, %v3773_v16  ;;  %2601 = vmatmul.msk.f32.gmra.mxu2 %vm66_vm0, %v2264_v12  ;;  %v2281_v4 = vld [vmem:[%s3948_s3 + $0x60] sm:$0xf] }
 0xe6b   :  { %v2201_v19 = vmul.f32 0.5, %v2200_v30  ;;  %v2138_v6 = vpop.xlane.xlu1 %2137 }
 0xe6c   :  { %v2148_v11 = vmul.f32 %v2138_v6, %v3055_v18  ;;  %v2249_v37 = vmul.f32 %v2241_v33, %v3622_v13  ;;  %v2278_v33 = vld [vmem:[%s3948_s3 + $0x48] sm:$0xff]  ;;  %v2277_v6 = vld [vmem:[%s3948_s3 + $0x40] sm:$0xff] }
 0xe6d   :  { %v2202_v21 = vsub.f32 1.5, %v2201_v19 }
 0xe6e   :  { %v2737_v44 = vpop.eup %2736  ;;  %v2156_v26 = vadd.f32 1e-05, %v2148_v11  ;;  %v2257_v22 = vadd.f32 %v2249_v37, %v3625_v57  ;;  %v2276_v37 = vld [vmem:[%s3948_s3 + $0x38] sm:$0xff] }
 0xe6f   :  { %v2203_v24 = vmul.f32 %v2735_v58, %v2202_v21  ;;  %v2209_v34 = vmul.f32 %v2737_v44, %v2155_v20  ;;  %vm2215_vm15 = vweird.f32 %v2737_v44 }
 0xe70   :  { %2738 = vrsqrt.f32 %v2156_v26  ;;  %v2265_v16 = vadd.f32 %v2257_v22, %v3659_v46  ;;  %vm2216_vm4 = vmor %vm2214_vm5, %vm2215_vm15  ;;  %vm2224_vm7 = vweird.f32 %v2156_v26  ;;  %v2274_v22 = vld [vmem:[%s3948_s3 + $0x28] sm:$0xff] }
 0xe71   :  { %v2207_v29 = vsel %vm2206_vm14, %v2735_v58, %v2203_v24  ;;  %v2210_v40 = vmul.f32 %v2737_v44, %v2209_v34 }
 0xe72   :  { %v2242_v35 = vmul.f32 %v2207_v29, %v3779_v45  ;;  %2602 = vmatmul.msk.f32.gmra.mxu2 %vm66_vm0, %v2265_v16  ;;  %v2282_v16 = vld [vmem:[%s3948_s3] sm:$0x3]  ;;  %v2298_v29 = vld [vmem:[%s3949_s4 + $0x78] sm:$0xff] }
 0xe73   :  { %v2211_v43 = vmul.f32 0.5, %v2210_v40  ;;  %v2297_v40 = vld [vmem:[%s3949_s4 + $0x70] sm:$0xff] }
 0xe74   :  { %v2250_v38 = vmul.f32 %v2242_v35, %v3622_v13  ;;  %v2296_v35 = vld [vmem:[%s3949_s4 + $0x68] sm:$0xff] }
 0xe75   :  { %v2212_v49 = vsub.f32 1.5, %v2211_v43  ;;  %v2295_v43 = vld [vmem:[%s3949_s4 + $0x60] sm:$0xff] }
 0xe76   :  { %v2739_v48 = vpop.eup %2738  ;;  %v2258_v0 = vadd.f32 %v2250_v38, %v3625_v57  ;;  %v2294_v38 = vld [vmem:[%s3949_s4 + $0x58] sm:$0xff] }
 0xe77   :  { %v2213_v52 = vmul.f32 %v2737_v44, %v2212_v49  ;;  %v2219_v28 = vmul.f32 %v2739_v48, %v2156_v26  ;;  %vm2225_vm6 = vweird.f32 %v2739_v48  ;;  %v2293_v49 = vld [vmem:[%s3949_s4 + $0x50] sm:$0xff] }
 0xe78   :  { %v2266_v46 = vadd.f32 %v2258_v0, %v3667_v9  ;;  %vm2226_vm9 = vmor %vm2224_vm7, %vm2225_vm6  ;;  %v2291_v0 = vld [vmem:[%s3949_s4 + $0x40] sm:$0xff] }
 0xe79   :  { %v2217_v23 = vsel %vm2216_vm4, %v2737_v44, %v2213_v52  ;;  %v2220_v54 = vmul.f32 %v2739_v48, %v2219_v28  ;;  %v2275_v44 = vld [vmem:[%s3948_s3 + $0x30] sm:$0xff]  ;;  %v2290_v52 = vld [vmem:[%s3949_s4 + $0x38] sm:$0xff] }
 0xe7a   :  { %v2243_v45 = vmul.f32 %v2217_v23, %v3785_v53  ;;  %2603 = vmatmul.msk.f32.gmra.mxu2 %vm66_vm0, %v2266_v46  ;;  %v2289_v28 = vld [vmem:[%s3949_s4 + $0x30] sm:$0xff]  ;;  %v2288_v46 = vld [vmem:[%s3949_s4 + $0x28] sm:$0xff]  ;;  %v2287_v23 = vld [vmem:[%s3949_s4 + $0x20] sm:$0xff] }
 0xe7b   :  { %v2221_v59 = vmul.f32 0.5, %v2220_v54  ;;  %v2286_v54 = vld [vmem:[%s3949_s4 + $0x18] sm:$0xff] }
 0xe7c   :  { %v2251_v41 = vmul.f32 %v2243_v45, %v3622_v13  ;;  %v2285_v45 = vld [vmem:[%s3949_s4 + $0x10] sm:$0xff] }
 0xe7d   :  { %v2222_v60 = vsub.f32 1.5, %v2221_v59  ;;  %v2284_v59 = vld [vmem:[%s3949_s4 + $0x8] sm:$0xff] }
 0xe7e   :  { %v2259_v62 = vadd.f32 %v2251_v41, %v3625_v57  ;;  %v2283_v41 = vld [vmem:[%s3949_s4] sm:$0xff] }
 0xe7f   :  { %v2223_v31 = vmul.f32 %v2739_v48, %v2222_v60 }
 0xe80   :  { %v2267_v47 = vadd.f32 %v2259_v62, %v3675_v25  ;;  %v2611_v62 = vld [vmem:[%s3949_s4 + $0x80] ss:$0 sm:$0xff] }
 0xe81   :  { %v2227_v32 = vsel %vm2226_vm9, %v2739_v48, %v2223_v31  ;;  %v2292_v48 = vld [vmem:[%s3949_s4 + $0x48] sm:$0xff] }
 0xe82   :  { %v2244_v9 = vmul.f32 %v2227_v32, %v3791_v55  ;;  %2604 = vmatmul.msk.f32.gmra.mxu2 %vm66_vm0, %v2267_v47 }
 0xe84   :  { %v2252_v53 = vmul.f32 %v2244_v9, %v3622_v13 }
 0xe86   :  { %v2260_v51 = vadd.f32 %v2252_v53, %v3625_v57 }
 0xe88   :  { %v2268_v27 = vadd.f32 %v2260_v51, %v3683_v42 }
 0xe8a   :  { %2605 = vmatmul.msk.f32.gmra.mxu2 %vm66_vm0, %v2268_v27 }
 0xebe   :  { %v2141_v63 = vpop.xlane.xlu2 %2140 }
 0xebf   :  { %v2149_v1 = vmul.f32 %v2141_v63, %v3055_v18 }
 0xec1   :  { %v2157_v7 = vadd.f32 1e-05, %v2149_v1 }
 0xec3   :  { %2740 = vrsqrt.f32 %v2157_v7  ;;  %vm2234_vm11 = vweird.f32 %v2157_v7 }
 0xec9   :  { %v2741_v2 = vpop.eup %2740 }
 0xeca   :  { %v2229_v25 = vmul.f32 %v2741_v2, %v2157_v7  ;;  %vm2235_vm10 = vweird.f32 %v2741_v2 }
 0xecb   :  { %vm2236_vm12 = vmor %vm2234_vm11, %vm2235_vm10 }
 0xecc   :  { %v2230_v56 = vmul.f32 %v2741_v2, %v2229_v25 }
 0xece   :  { %v2231_v61 = vmul.f32 0.5, %v2230_v56 }
 0xed0   :  { %v2232_v55 = vsub.f32 1.5, %v2231_v61 }
 0xed2   :  { %v2233_v8 = vmul.f32 %v2741_v2, %v2232_v55 }
 0xed4   :  { %v2237_v10 = vsel %vm2236_vm12, %v2741_v2, %v2233_v8 }
 0xed5   :  { %v2245_v50 = vmul.f32 %v2237_v10, %v3811_v5 }
 0xed7   :  { %v2253_v42 = vmul.f32 %v2245_v50, %v3622_v13  ;;  %v2280_v13 = vld [vmem:[%s3948_s3 + $0x58] sm:$0xff] }
 0xed9   :  { %v2261_v15 = vadd.f32 %v2253_v42, %v3625_v57 }
 0xedb   :  { %v2269_v18 = vadd.f32 %v2261_v15, %v3717_v14  ;;  %v2279_v14 = vld [vmem:[%s3948_s3 + $0x50] sm:$0xff] }
 0xedd   :  { %2606 = vmatmul.msk.f32.gmra.mxu2 %vm66_vm0, %v2269_v18  ;;  %v2341_v17 = vpop.f32.mrf.mxu2 }
 0xede   :  { %v2365_v34 = vmul.f32 %v2341_v17, %v2274_v22 }
 0xee5   :  { %v2344_v58 = vpop.f32.mrf.mxu2 }
 0xee6   :  { %v2366_v24 = vmul.f32 %v2344_v58, %v2275_v44 }
 0xeed   :  { %v2347_v20 = vpop.f32.mrf.mxu2 }
 0xeee   :  { %v2367_v26 = vmul.f32 %v2347_v20, %v2276_v37 }
 0xef5   :  { %v2350_v39 = vpop.f32.mrf.mxu2 }
 0xef6   :  { %v2368_v21 = vmul.f32 %v2350_v39, %v2277_v6 }
 0xefd   :  { %v2353_v3 = vpop.f32.mrf.mxu2 }
 0xefe   :  { %v2369_v11 = vmul.f32 %v2353_v3, %v2278_v33 }
 0xf05   :  { %v2356_v36 = vpop.f32.mrf.mxu2 }
 0xf06   :  { %v2370_v19 = vmul.f32 %v2356_v36, %v2279_v14 }
 0xf0d   :  { %v2359_v12 = vpop.f32.mrf.mxu2 }
 0xf0e   :  { %v2371_v30 = vmul.f32 %v2359_v12, %v2280_v13 }
 0xf60   :  { %v2362_v57 = vpop.f32.mrf.mxu2 }
 0xf61   :  { %v2372_v5 = vmul.f32 %v2362_v57, %v2281_v4 }
 0xf63   :  { %2607 = vmatpush.msk.msra.mxu3 %vm433_vm3, %v2372_v5 }
 0xf65   :  { %2388 = vmatpush.msra.mxu3 %v2371_v30 }
 0xf67   :  { %2389 = vmatpush.msra.mxu3 %v2370_v19 }
 0xf69   :  { %2390 = vmatpush.msra.mxu3 %v2369_v11 }
 0xf6b   :  { %2391 = vmatpush.msra.mxu3 %v2368_v21 }
 0xf6d   :  { %2392 = vmatpush.msra.mxu3 %v2367_v26 }
 0xf6f   :  { %2393 = vmatpush.msra.mxu3 %v2366_v24 }
 0xf71   :  { %2394 = vmatpush.msra.mxu3 %v2365_v34 }
 0xf72   :  { %2608 = vmatmul.msk.f32.vlgmr.msra.gmra.mxu3 %vm319_vm1, %v2282_v16 }
 0xf73   :  { %2400 = vmatpush.msrb.mxu3 %v2298_v29 }
 0xf75   :  { %2401 = vmatpush.msrb.mxu3 %v2297_v40 }
 0xf77   :  { %2402 = vmatpush.msrb.mxu3 %v2296_v35 }
 0xf79   :  { %2403 = vmatpush.msrb.mxu3 %v2295_v43 }
 0xf7b   :  { %2404 = vmatpush.msrb.mxu3 %v2294_v38 }
 0xf7d   :  { %2405 = vmatpush.msrb.mxu3 %v2293_v49 }
 0xf7f   :  { %2406 = vmatpush.msrb.mxu3 %v2292_v48 }
 0xf81   :  { %2407 = vmatpush.msrb.mxu3 %v2291_v0 }
 0xf83   :  { %2408 = vmatpush.msrb.mxu3 %v2290_v52 }
 0xf85   :  { %2409 = vmatpush.msrb.mxu3 %v2289_v28 }
 0xf87   :  { %2410 = vmatpush.msrb.mxu3 %v2288_v46 }
 0xf89   :  { %2411 = vmatpush.msrb.mxu3 %v2287_v23 }
 0xf8b   :  { %2412 = vmatpush.msrb.mxu3 %v2286_v54 }
 0xf8d   :  { %2413 = vmatpush.msrb.mxu3 %v2285_v45 }
 0xf8f   :  { %2414 = vmatpush.msrb.mxu3 %v2284_v59 }
 0xf91   :  { %2415 = vmatpush.msrb.mxu3 %v2283_v41 }
 0xff5   :  { %v2396_v60 = vpop.f32.mrf.mxu3 }
 0xff6   :  { %2416 = vmatmul.f32.vlgmr.msrb.gmra.mxu3 %v2396_v60 }
0x1079   :  { %v2417_v31 = vpop.f32.mrf.mxu3 }
0x107a   :  { %v2418_v47 = vadd.f32 %v2611_v62, %v2417_v31 }
0x107c   :  { %2420 = vst [vmem:[#allocation2] sm:$0x3] %v2418_v47 }
0x107d   :  { %2431 = dma.vmem_to_hbm [thread:$0]  %s2427_s8, 32, %s2429_s0, [#allocation3]  }
0x107e   :  { %2775 = dma.done.wait [#allocation3], 32  }
0x107f   :  { %2776 = vsyncadd [#allocation3], 4294967264 }
0x1080   :  { %2436 = vsyncpa [#allocation3], 1 }

</bundles_post_ra>
